<compile_context>
chip_gen: v7x
topology: tpu7x:2x2x1
jax: 0.10.0
libtpu: 0.0.40
codegen_flags: <defaults>
</compile_context>

<pallas_src>
import jax
import jax.numpy as jnp
import numpy as np
from jax.experimental import pallas as pl
from jax.experimental.pallas import tpu as pltpu  # noqa: F401  (TPU backend)

STANDARD_CONV = (
    {"channel_num": 32, "kernel_size": 8, "stride": 4, "padding": 0},
    {"channel_num": 64, "kernel_size": 4, "stride": 2, "padding": 0},
    {"channel_num": 64, "kernel_size": 3, "stride": 1, "padding": 0},
)
BN_EPS = 1e-5


# ------------------------------ fused kernel --------------------------------

def _bn_relu(z, gb):
    """z: (M, C) f32 pre-activation; gb: (2, C) = [gamma; beta]. Training-mode BN."""
    mean = jnp.mean(z, axis=0, keepdims=True)
    var = jnp.mean(z * z, axis=0, keepdims=True) - mean * mean   # one-pass stats
    y = (z - mean) * jax.lax.rsqrt(var + BN_EPS)
    return jnp.maximum(gb[0:1, :] * y + gb[1:2, :], 0.0)


def _fused_encoder_kernel(*args):
    """Args: p0, w0, gb0, (sel_l, w_l, gb_l)*, fc_w, fc_b, head_w, head_b, out_ref."""
    o_ref = args[-1]
    refs = args[:-1]

    # --- conv0 as im2col GEMM (bias omitted: BN mean subtraction cancels it) ---
    p0_ref, w0_ref, gb0_ref = refs[0], refs[1], refs[2]
    z = jnp.dot(p0_ref[...], w0_ref[...], preferred_element_type=jnp.float32)
    y = _bn_relu(z, gb0_ref[...])                       # (M0, C0) f32, rows = (n,h,w)

    # --- deeper convs: per-(kh,kw) slab matmuls via one-hot row selection ------
    idx = 3
    n_inner = (len(refs) - 3 - 4) // 3
    for _ in range(n_inner):
        s_ref, w_ref, gb_ref = refs[idx], refs[idx + 1], refs[idx + 2]
        idx += 3
        n_slab, m_out, _ = s_ref.shape                  # (k*k, M_out, M_in)
        c_out = w_ref.shape[2]
        yb = y.astype(jnp.bfloat16)
        acc = jnp.zeros((m_out, c_out), jnp.float32)
        for t in range(n_slab):                         # unrolled at trace time
            rows = jnp.dot(s_ref[t], yb, preferred_element_type=jnp.float32)
            acc = acc + jnp.dot(rows.astype(jnp.bfloat16), w_ref[t],
                                preferred_element_type=jnp.float32)
        y = _bn_relu(acc, gb_ref[...])

    # --- flatten (final spatial is 1x1 for STANDARD_CONV on 36x36) + FC head ---
    fcw_ref, fcb_ref, hw_ref, hb_ref = refs[idx], refs[idx + 1], refs[idx + 2], refs[idx + 3]
    hid = jnp.dot(y.astype(jnp.bfloat16), fcw_ref[...],
                  preferred_element_type=jnp.float32) + fcb_ref[...]
    hid = jnp.maximum(hid, 0.0)
    out = jnp.dot(hid.astype(jnp.bfloat16), hw_ref[...],
                  preferred_element_type=jnp.float32) + hb_ref[...]
    o_ref[...] = out


def _full_spec(shape):
    nd = len(shape)
    return pl.BlockSpec(shape, lambda i, _nd=nd: (0,) * _nd)


# --------------------------------- glue -------------------------------------

def im2col_nhwc(x, k, s):
    """x: (N,H,W,C) -> patches (N*Ho*Wo, k*k*C), column order (kh, kw, Cin).

    Uses static strided slices + stack (no XLA gather)."""
    n, h, w, c = x.shape
    ho = (h - k) // s + 1
    wo = (w - k) // s + 1
    cols = []
    for kh in range(k):
        for kw in range(k):
            sl = jax.lax.slice(
                x, (0, kh, kw, 0),
                (n, kh + s * (ho - 1) + 1, kw + s * (wo - 1) + 1, c),
                (1, s, s, 1))                                   # (n, ho, wo, c)
            cols.append(sl)
    patches = jnp.stack(cols, axis=3)                           # (n, ho, wo, k*k, c)
    return patches.reshape(n * ho * wo, k * k * c), ho, wo


def _build_selection(n, h_in, w_in, h_out, w_out, k, s, p):
    """One-hot row-selection matrices, shape (k*k, n*h_out*w_out, n*h_in*w_in)."""
    sel = np.zeros((k * k, n * h_out * w_out, n * h_in * w_in), np.float32)
    for kh in range(k):
        for kw in range(k):
            t = kh * k + kw
            for b in range(n):
                for ho in range(h_out):
                    hi = s * ho + kh - p
                    if hi < 0 or hi >= h_in:
                        continue                                # zero padding row
                    for wo in range(w_out):
                        wi = s * wo + kw - p
                        if wi < 0 or wi >= w_in:
                            continue
                        ro = (b * h_out + ho) * w_out + wo
                        ri = (b * h_in + hi) * w_in + wi
                        sel[t, ro, ri] = 1.0
    return sel


def prepare_params(params, conv_layers=STANDARD_CONV):
    """One-time re-layout of PyTorch-style params into kernel-ready operands."""
    prep = {}
    w0 = params["conv0_w"]                                      # (Cout, Cin, k, k)
    prep["w0"] = jnp.transpose(w0, (2, 3, 1, 0)).reshape(-1, w0.shape[0]).astype(jnp.bfloat16)
    prep["gb0"] = jnp.stack([params["bn0_g"], params["bn0_b"]]).astype(jnp.float32)
    for li in range(1, len(conv_layers)):
        w = params[f"conv{li}_w"]
        c_out, c_in, k, _ = w.shape
        prep[f"w{li}"] = jnp.transpose(w, (2, 3, 1, 0)).reshape(k * k, c_in, c_out).astype(jnp.bfloat16)
        prep[f"gb{li}"] = jnp.stack([params[f"bn{li}_g"], params[f"bn{li}_b"]]).astype(jnp.float32)
    # NOTE: conv biases intentionally not prepared -- BN cancels them exactly.
    prep["fc_w"] = params["fc_w"].astype(jnp.bfloat16)
    prep["fc_b"] = params["fc_b"].reshape(1, -1).astype(jnp.float32)
    prep["head_w"] = params["head_w"].astype(jnp.bfloat16)
    prep["head_b"] = params["head_b"].reshape(1, -1).astype(jnp.float32)
    return prep


def encoder_2d_forward(x, prep, conv_layers=STANDARD_CONV):
    """Returns encodings [batch, z_dim]. x is NCHW (or CHW single example)."""
    if x.ndim == 3:                                   # apply_tensor_constraints
        x = x[None]
    n = x.shape[0]
    xh = jnp.transpose(x.astype(jnp.float32), (0, 2, 3, 1))     # NCHW -> NHWC

    k0, s0, p0 = (conv_layers[0][key] for key in ("kernel_size", "stride", "padding"))
    if p0:
        xh = jnp.pad(xh, ((0, 0), (p0, p0), (p0, p0), (0, 0)))
    patches, h_prev, w_prev = im2col_nhwc(xh, k0, s0)
    operands = [patches.astype(jnp.bfloat16), prep["w0"], prep["gb0"]]

    for li in range(1, len(conv_layers)):
        layer = conv_layers[li]
        k, s, p = layer["kernel_size"], layer["stride"], layer["padding"]
        h_out = (h_prev + 2 * p - k) // s + 1
        w_out = (w_prev + 2 * p - k) // s + 1
        sel = _build_selection(n, h_prev, w_prev, h_out, w_out, k, s, p)
        operands += [jnp.asarray(sel, jnp.bfloat16), prep[f"w{li}"], prep[f"gb{li}"]]
        h_prev, w_prev = h_out, w_out

    # TODO(synk): general NCHW flatten when the final spatial extent is > 1x1
    # (STANDARD_CONV on 36x36 input ends at 1x1, so flatten == identity here).
    assert h_prev == 1 and w_prev == 1, "fused kernel assumes final spatial 1x1"

    operands += [prep["fc_w"], prep["fc_b"], prep["head_w"], prep["head_b"]]
    zd = prep["head_w"].shape[1]

    return pl.pallas_call(
        _fused_encoder_kernel,
        grid=(1,),
        in_specs=[_full_spec(op.shape) for op in operands],
        out_specs=_full_spec((n, zd)),
        out_shape=jax.ShapeDtypeStruct((n, zd), jnp.float32),
    )(*operands)


# --------------------------- deterministic params ----------------------------

def init_params(key, x_dim, z_dim, conv_layers=STANDARD_CONV, fc_dim=512):
    params = {}
    c_prev, h_prev, w_prev = x_dim
    keys = iter(jax.random.split(key, 4 * len(conv_layers) + 4))
    for li, layer in enumerate(conv_layers):
        c_out, k, s, p = layer["channel_num"], layer["kernel_size"], layer["stride"], layer["padding"]
        params[f"conv{li}_w"] = 0.05 * jax.random.normal(next(keys), (c_out, c_prev, k, k), jnp.float32)
        params[f"conv{li}_b"] = 0.05 * jax.random.normal(next(keys), (c_out,), jnp.float32)
        params[f"bn{li}_g"] = 1.0 + 0.05 * jax.random.normal(next(keys), (c_out,), jnp.float32)
        params[f"bn{li}_b"] = 0.05 * jax.random.normal(next(keys), (c_out,), jnp.float32)
        c_prev = c_out
        h_prev = (h_prev + 2 * p - k) // s + 1
        w_prev = (w_prev + 2 * p - k) // s + 1
    feat = c_prev * h_prev * w_prev
    params["fc_w"] = 0.05 * jax.random.normal(next(keys), (feat, fc_dim), jnp.float32)
    params["fc_b"] = 0.05 * jax.random.normal(next(keys), (fc_dim,), jnp.float32)
    params["head_w"] = 0.05 * jax.random.normal(next(keys), (fc_dim, z_dim[0]), jnp.float32)
    params["head_b"] = 0.05 * jax.random.normal(next(keys), (z_dim[0],), jnp.float32)
    return params


# ------------------------------ pure-JAX reference ---------------------------

def reference_forward(x, params, conv_layers=STANDARD_CONV):
    h = x.astype(jnp.float32)
    for li, layer in enumerate(conv_layers):
        s, p = layer["stride"], layer["padding"]
        h = jax.lax.conv_general_dilated(
            h, params[f"conv{li}_w"], (s, s), [(p, p), (p, p)],
            dimension_numbers=("NCHW", "OIHW", "NCHW"),
            precision=jax.lax.Precision.HIGHEST)
        h = h + params[f"conv{li}_b"].reshape(1, -1, 1, 1)      # bias (cancelled by BN)
        mean = jnp.mean(h, axis=(0, 2, 3), keepdims=True)
        var = jnp.mean((h - mean) ** 2, axis=(0, 2, 3), keepdims=True)
        h = (h - mean) * jax.lax.rsqrt(var + BN_EPS)
        h = params[f"bn{li}_g"].reshape(1, -1, 1, 1) * h + params[f"bn{li}_b"].reshape(1, -1, 1, 1)
        h = jnp.maximum(h, 0.0)
    flat = h.reshape(h.shape[0], -1)
    hid = jnp.maximum(flat @ params["fc_w"] + params["fc_b"], 0.0)
    return hid @ params["head_w"] + params["head_b"]


# ----------------------------------- main ------------------------------------

if __name__ == "__main__":
    x_dim = (4, 36, 36)     # (C, H, W): 36 -> 8 -> 3 -> 1 through STANDARD_CONV
    z_dim = (16,)
    fc_dim = 128
    batch = 2

    key = jax.random.PRNGKey(0)
    k_params, k_x = jax.random.split(key)
    params = init_params(k_params, x_dim, z_dim, STANDARD_CONV, fc_dim)
    prep = prepare_params(params, STANDARD_CONV)
    x = jax.random.normal(k_x, (batch,) + x_dim, jnp.float32)   # NCHW, as in PyTorch

    fwd = jax.jit(lambda xx, pp: encoder_2d_forward(xx, pp, STANDARD_CONV))
    z = fwd(x, prep)
    jax.block_until_ready(z)

    z_ref = reference_forward(x, params, STANDARD_CONV)
    assert z.shape == (batch, z_dim[0])
    np.testing.assert_allclose(np.asarray(z), np.asarray(z_ref), rtol=5e-2, atol=5e-2)

    print("KERNEL_OK")
</pallas_src>

<mosaic_0001>
module attributes {stable_mosaic.version = 11 : i64} {
  func.func @_fused_encoder_kernel(%arg0: i32, %arg1: memref<128x256xbf16, #tpu.memory_space<vmem>>, %arg2: memref<256x32xbf16, #tpu.memory_space<vmem>>, %arg3: memref<2x32xf32, #tpu.memory_space<vmem>>, %arg4: memref<16x18x128xbf16, #tpu.memory_space<vmem>>, %arg5: memref<16x32x64xbf16, #tpu.memory_space<vmem>>, %arg6: memref<2x64xf32, #tpu.memory_space<vmem>>, %arg7: memref<9x2x18xbf16, #tpu.memory_space<vmem>>, %arg8: memref<9x64x64xbf16, #tpu.memory_space<vmem>>, %arg9: memref<2x64xf32, #tpu.memory_space<vmem>>, %arg10: memref<64x128xbf16, #tpu.memory_space<vmem>>, %arg11: memref<1x128xf32, #tpu.memory_space<vmem>>, %arg12: memref<128x16xbf16, #tpu.memory_space<vmem>>, %arg13: memref<1x16xf32, #tpu.memory_space<vmem>>, %arg14: memref<2x16xf32, #tpu.memory_space<vmem>>) attributes {dimension_semantics = [#tpu.dimension_semantics<arbitrary>], iteration_bounds = array<i64: 1>, scalar_prefetch = 0 : i64, scratch_operands = 0 : i64, tpu.core_type = #tpu.core_type<tc>, window_params = [{pipeline_mode = #tpu.pipeline_mode<synchronous>, transform_indices = @transform_0, window_bounds = array<i64: 128, 256>}, {pipeline_mode = #tpu.pipeline_mode<synchronous>, transform_indices = @transform_1, window_bounds = array<i64: 256, 32>}, {pipeline_mode = #tpu.pipeline_mode<synchronous>, transform_indices = @transform_2, window_bounds = array<i64: 2, 32>}, {pipeline_mode = #tpu.pipeline_mode<synchronous>, transform_indices = @transform_3, window_bounds = array<i64: 16, 18, 128>}, {pipeline_mode = #tpu.pipeline_mode<synchronous>, transform_indices = @transform_4, window_bounds = array<i64: 16, 32, 64>}, {pipeline_mode = #tpu.pipeline_mode<synchronous>, transform_indices = @transform_5, window_bounds = array<i64: 2, 64>}, {pipeline_mode = #tpu.pipeline_mode<synchronous>, transform_indices = @transform_6, window_bounds = array<i64: 9, 2, 18>}, {pipeline_mode = #tpu.pipeline_mode<synchronous>, transform_indices = @transform_7, window_bounds = array<i64: 9, 64, 64>}, {pipeline_mode = #tpu.pipeline_mode<synchronous>, transform_indices = @transform_8, window_bounds = array<i64: 2, 64>}, {pipeline_mode = #tpu.pipeline_mode<synchronous>, transform_indices = @transform_9, window_bounds = array<i64: 64, 128>}, {pipeline_mode = #tpu.pipeline_mode<synchronous>, transform_indices = @transform_10, window_bounds = array<i64: 1, 128>}, {pipeline_mode = #tpu.pipeline_mode<synchronous>, transform_indices = @transform_11, window_bounds = array<i64: 128, 16>}, {pipeline_mode = #tpu.pipeline_mode<synchronous>, transform_indices = @transform_12, window_bounds = array<i64: 1, 16>}, {pipeline_mode = #tpu.pipeline_mode<synchronous>, transform_indices = @transform_13, window_bounds = array<i64: 2, 16>}]} {
    %c0 = arith.constant 0 : index
    %c0_0 = arith.constant 0 : index
    %0 = vector.load %arg1[%c0, %c0_0] : memref<128x256xbf16, #tpu.memory_space<vmem>>, vector<128x256xbf16>
    %c0_1 = arith.constant 0 : index
    %c0_2 = arith.constant 0 : index
    %1 = vector.load %arg2[%c0_1, %c0_2] : memref<256x32xbf16, #tpu.memory_space<vmem>>, vector<256x32xbf16>
    %cst = arith.constant dense<0.000000e+00> : vector<128x32xf32>
    %2 = tpu.matmul %0, %1, %cst {dimension_numbers = #tpu.dot_dimension_numbers<[1], [0], [0], [1], [0, 0, 1, 1], [], []>} : vector<128x256xbf16>, vector<256x32xbf16>, vector<128x32xf32> -> vector<128x32xf32>
    %c0_3 = arith.constant 0 : index
    %c0_4 = arith.constant 0 : index
    %3 = vector.load %arg3[%c0_3, %c0_4] : memref<2x32xf32, #tpu.memory_space<vmem>>, vector<2x32xf32>
    %cst_5 = arith.constant dense<0.000000e+00> : vector<32xf32>
    %4 = vector.multi_reduction <add>, %2, %cst_5 [0] : vector<128x32xf32> to vector<32xf32>
    %5 = vector.shape_cast %4 : vector<32xf32> to vector<1x32xf32>
    %cst_6 = arith.constant 1.280000e+02 : f32
    %6 = vector.broadcast %cst_6 : f32 to vector<1x32xf32>
    %7 = arith.divf %5, %6 : vector<1x32xf32>
    %8 = arith.mulf %2, %2 : vector<128x32xf32>
    %cst_7 = arith.constant dense<0.000000e+00> : vector<32xf32>
    %9 = vector.multi_reduction <add>, %8, %cst_7 [0] : vector<128x32xf32> to vector<32xf32>
    %10 = vector.shape_cast %9 : vector<32xf32> to vector<1x32xf32>
    %cst_8 = arith.constant 1.280000e+02 : f32
    %11 = vector.broadcast %cst_8 : f32 to vector<1x32xf32>
    %12 = arith.divf %10, %11 : vector<1x32xf32>
    %13 = arith.mulf %7, %7 : vector<1x32xf32>
    %14 = arith.subf %12, %13 : vector<1x32xf32>
    %15 = vector.broadcast %7 : vector<1x32xf32> to vector<128x32xf32>
    %16 = arith.subf %2, %15 : vector<128x32xf32>
    %cst_9 = arith.constant 9.99999974E-6 : f32
    %17 = vector.broadcast %cst_9 : f32 to vector<1x32xf32>
    %18 = arith.addf %14, %17 : vector<1x32xf32>
    %19 = math.rsqrt %18 : vector<1x32xf32>
    %20 = vector.broadcast %19 : vector<1x32xf32> to vector<128x32xf32>
    %21 = arith.mulf %16, %20 : vector<128x32xf32>
    %22 = vector.extract_strided_slice %3 {offsets = [0, 0], sizes = [1, 32], strides = [1, 1]} : vector<2x32xf32> to vector<1x32xf32>
    %23 = vector.broadcast %22 : vector<1x32xf32> to vector<128x32xf32>
    %24 = arith.mulf %23, %21 : vector<128x32xf32>
    %25 = vector.extract_strided_slice %3 {offsets = [1, 0], sizes = [1, 32], strides = [1, 1]} : vector<2x32xf32> to vector<1x32xf32>
    %26 = vector.broadcast %25 : vector<1x32xf32> to vector<128x32xf32>
    %27 = arith.addf %24, %26 : vector<128x32xf32>
    %cst_10 = arith.constant 0.000000e+00 : f32
    %28 = vector.broadcast %cst_10 : f32 to vector<128x32xf32>
    %29 = arith.maximumf %27, %28 : vector<128x32xf32>
    %30 = arith.truncf %29 : vector<128x32xf32> to vector<128x32xbf16>
    %cst_11 = arith.constant 0.000000e+00 : f32
    %31 = vector.broadcast %cst_11 : f32 to vector<18x64xf32>
    %c0_12 = arith.constant 0 : index
    %c0_13 = arith.constant 0 : index
    %c0_14 = arith.constant 0 : index
    %32 = vector.load %arg4[%c0_12, %c0_13, %c0_14] : memref<16x18x128xbf16, #tpu.memory_space<vmem>>, vector<1x18x128xbf16>
    %33 = vector.shape_cast %32 : vector<1x18x128xbf16> to vector<18x128xbf16>
    %cst_15 = arith.constant dense<0.000000e+00> : vector<18x32xf32>
    %34 = tpu.matmul %33, %30, %cst_15 {dimension_numbers = #tpu.dot_dimension_numbers<[1], [0], [0], [1], [0, 0, 1, 1], [], []>} : vector<18x128xbf16>, vector<128x32xbf16>, vector<18x32xf32> -> vector<18x32xf32>
    %35 = arith.truncf %34 : vector<18x32xf32> to vector<18x32xbf16>
    %c0_16 = arith.constant 0 : index
    %c0_17 = arith.constant 0 : index
    %c0_18 = arith.constant 0 : index
    %36 = vector.load %arg5[%c0_16, %c0_17, %c0_18] : memref<16x32x64xbf16, #tpu.memory_space<vmem>>, vector<1x32x64xbf16>
    %37 = vector.shape_cast %36 : vector<1x32x64xbf16> to vector<32x64xbf16>
    %cst_19 = arith.constant dense<0.000000e+00> : vector<18x64xf32>
    %38 = tpu.matmul %35, %37, %cst_19 {dimension_numbers = #tpu.dot_dimension_numbers<[1], [0], [0], [1], [0, 0, 1, 1], [], []>} : vector<18x32xbf16>, vector<32x64xbf16>, vector<18x64xf32> -> vector<18x64xf32>
    %39 = arith.addf %31, %38 : vector<18x64xf32>
    %c1 = arith.constant 1 : index
    %c0_20 = arith.constant 0 : index
    %c0_21 = arith.constant 0 : index
    %40 = vector.load %arg4[%c1, %c0_20, %c0_21] : memref<16x18x128xbf16, #tpu.memory_space<vmem>>, vector<1x18x128xbf16>
    %41 = vector.shape_cast %40 : vector<1x18x128xbf16> to vector<18x128xbf16>
    %cst_22 = arith.constant dense<0.000000e+00> : vector<18x32xf32>
    %42 = tpu.matmul %41, %30, %cst_22 {dimension_numbers = #tpu.dot_dimension_numbers<[1], [0], [0], [1], [0, 0, 1, 1], [], []>} : vector<18x128xbf16>, vector<128x32xbf16>, vector<18x32xf32> -> vector<18x32xf32>
    %43 = arith.truncf %42 : vector<18x32xf32> to vector<18x32xbf16>
    %c1_23 = arith.constant 1 : index
    %c0_24 = arith.constant 0 : index
    %c0_25 = arith.constant 0 : index
    %44 = vector.load %arg5[%c1_23, %c0_24, %c0_25] : memref<16x32x64xbf16, #tpu.memory_space<vmem>>, vector<1x32x64xbf16>
    %45 = vector.shape_cast %44 : vector<1x32x64xbf16> to vector<32x64xbf16>
    %cst_26 = arith.constant dense<0.000000e+00> : vector<18x64xf32>
    %46 = tpu.matmul %43, %45, %cst_26 {dimension_numbers = #tpu.dot_dimension_numbers<[1], [0], [0], [1], [0, 0, 1, 1], [], []>} : vector<18x32xbf16>, vector<32x64xbf16>, vector<18x64xf32> -> vector<18x64xf32>
    %47 = arith.addf %39, %46 : vector<18x64xf32>
    %c2 = arith.constant 2 : index
    %c0_27 = arith.constant 0 : index
    %c0_28 = arith.constant 0 : index
    %48 = vector.load %arg4[%c2, %c0_27, %c0_28] : memref<16x18x128xbf16, #tpu.memory_space<vmem>>, vector<1x18x128xbf16>
    %49 = vector.shape_cast %48 : vector<1x18x128xbf16> to vector<18x128xbf16>
    %cst_29 = arith.constant dense<0.000000e+00> : vector<18x32xf32>
    %50 = tpu.matmul %49, %30, %cst_29 {dimension_numbers = #tpu.dot_dimension_numbers<[1], [0], [0], [1], [0, 0, 1, 1], [], []>} : vector<18x128xbf16>, vector<128x32xbf16>, vector<18x32xf32> -> vector<18x32xf32>
    %51 = arith.truncf %50 : vector<18x32xf32> to vector<18x32xbf16>
    %c2_30 = arith.constant 2 : index
    %c0_31 = arith.constant 0 : index
    %c0_32 = arith.constant 0 : index
    %52 = vector.load %arg5[%c2_30, %c0_31, %c0_32] : memref<16x32x64xbf16, #tpu.memory_space<vmem>>, vector<1x32x64xbf16>
    %53 = vector.shape_cast %52 : vector<1x32x64xbf16> to vector<32x64xbf16>
    %cst_33 = arith.constant dense<0.000000e+00> : vector<18x64xf32>
    %54 = tpu.matmul %51, %53, %cst_33 {dimension_numbers = #tpu.dot_dimension_numbers<[1], [0], [0], [1], [0, 0, 1, 1], [], []>} : vector<18x32xbf16>, vector<32x64xbf16>, vector<18x64xf32> -> vector<18x64xf32>
    %55 = arith.addf %47, %54 : vector<18x64xf32>
    %c3 = arith.constant 3 : index
    %c0_34 = arith.constant 0 : index
    %c0_35 = arith.constant 0 : index
    %56 = vector.load %arg4[%c3, %c0_34, %c0_35] : memref<16x18x128xbf16, #tpu.memory_space<vmem>>, vector<1x18x128xbf16>
    %57 = vector.shape_cast %56 : vector<1x18x128xbf16> to vector<18x128xbf16>
    %cst_36 = arith.constant dense<0.000000e+00> : vector<18x32xf32>
    %58 = tpu.matmul %57, %30, %cst_36 {dimension_numbers = #tpu.dot_dimension_numbers<[1], [0], [0], [1], [0, 0, 1, 1], [], []>} : vector<18x128xbf16>, vector<128x32xbf16>, vector<18x32xf32> -> vector<18x32xf32>
    %59 = arith.truncf %58 : vector<18x32xf32> to vector<18x32xbf16>
    %c3_37 = arith.constant 3 : index
    %c0_38 = arith.constant 0 : index
    %c0_39 = arith.constant 0 : index
    %60 = vector.load %arg5[%c3_37, %c0_38, %c0_39] : memref<16x32x64xbf16, #tpu.memory_space<vmem>>, vector<1x32x64xbf16>
    %61 = vector.shape_cast %60 : vector<1x32x64xbf16> to vector<32x64xbf16>
    %cst_40 = arith.constant dense<0.000000e+00> : vector<18x64xf32>
    %62 = tpu.matmul %59, %61, %cst_40 {dimension_numbers = #tpu.dot_dimension_numbers<[1], [0], [0], [1], [0, 0, 1, 1], [], []>} : vector<18x32xbf16>, vector<32x64xbf16>, vector<18x64xf32> -> vector<18x64xf32>
    %63 = arith.addf %55, %62 : vector<18x64xf32>
    %c4 = arith.constant 4 : index
    %c0_41 = arith.constant 0 : index
    %c0_42 = arith.constant 0 : index
    %64 = vector.load %arg4[%c4, %c0_41, %c0_42] : memref<16x18x128xbf16, #tpu.memory_space<vmem>>, vector<1x18x128xbf16>
    %65 = vector.shape_cast %64 : vector<1x18x128xbf16> to vector<18x128xbf16>
    %cst_43 = arith.constant dense<0.000000e+00> : vector<18x32xf32>
    %66 = tpu.matmul %65, %30, %cst_43 {dimension_numbers = #tpu.dot_dimension_numbers<[1], [0], [0], [1], [0, 0, 1, 1], [], []>} : vector<18x128xbf16>, vector<128x32xbf16>, vector<18x32xf32> -> vector<18x32xf32>
    %67 = arith.truncf %66 : vector<18x32xf32> to vector<18x32xbf16>
    %c4_44 = arith.constant 4 : index
    %c0_45 = arith.constant 0 : index
    %c0_46 = arith.constant 0 : index
    %68 = vector.load %arg5[%c4_44, %c0_45, %c0_46] : memref<16x32x64xbf16, #tpu.memory_space<vmem>>, vector<1x32x64xbf16>
    %69 = vector.shape_cast %68 : vector<1x32x64xbf16> to vector<32x64xbf16>
    %cst_47 = arith.constant dense<0.000000e+00> : vector<18x64xf32>
    %70 = tpu.matmul %67, %69, %cst_47 {dimension_numbers = #tpu.dot_dimension_numbers<[1], [0], [0], [1], [0, 0, 1, 1], [], []>} : vector<18x32xbf16>, vector<32x64xbf16>, vector<18x64xf32> -> vector<18x64xf32>
    %71 = arith.addf %63, %70 : vector<18x64xf32>
    %c5 = arith.constant 5 : index
    %c0_48 = arith.constant 0 : index
    %c0_49 = arith.constant 0 : index
    %72 = vector.load %arg4[%c5, %c0_48, %c0_49] : memref<16x18x128xbf16, #tpu.memory_space<vmem>>, vector<1x18x128xbf16>
    %73 = vector.shape_cast %72 : vector<1x18x128xbf16> to vector<18x128xbf16>
    %cst_50 = arith.constant dense<0.000000e+00> : vector<18x32xf32>
    %74 = tpu.matmul %73, %30, %cst_50 {dimension_numbers = #tpu.dot_dimension_numbers<[1], [0], [0], [1], [0, 0, 1, 1], [], []>} : vector<18x128xbf16>, vector<128x32xbf16>, vector<18x32xf32> -> vector<18x32xf32>
    %75 = arith.truncf %74 : vector<18x32xf32> to vector<18x32xbf16>
    %c5_51 = arith.constant 5 : index
    %c0_52 = arith.constant 0 : index
    %c0_53 = arith.constant 0 : index
    %76 = vector.load %arg5[%c5_51, %c0_52, %c0_53] : memref<16x32x64xbf16, #tpu.memory_space<vmem>>, vector<1x32x64xbf16>
    %77 = vector.shape_cast %76 : vector<1x32x64xbf16> to vector<32x64xbf16>
    %cst_54 = arith.constant dense<0.000000e+00> : vector<18x64xf32>
    %78 = tpu.matmul %75, %77, %cst_54 {dimension_numbers = #tpu.dot_dimension_numbers<[1], [0], [0], [1], [0, 0, 1, 1], [], []>} : vector<18x32xbf16>, vector<32x64xbf16>, vector<18x64xf32> -> vector<18x64xf32>
    %79 = arith.addf %71, %78 : vector<18x64xf32>
    %c6 = arith.constant 6 : index
    %c0_55 = arith.constant 0 : index
    %c0_56 = arith.constant 0 : index
    %80 = vector.load %arg4[%c6, %c0_55, %c0_56] : memref<16x18x128xbf16, #tpu.memory_space<vmem>>, vector<1x18x128xbf16>
    %81 = vector.shape_cast %80 : vector<1x18x128xbf16> to vector<18x128xbf16>
    %cst_57 = arith.constant dense<0.000000e+00> : vector<18x32xf32>
    %82 = tpu.matmul %81, %30, %cst_57 {dimension_numbers = #tpu.dot_dimension_numbers<[1], [0], [0], [1], [0, 0, 1, 1], [], []>} : vector<18x128xbf16>, vector<128x32xbf16>, vector<18x32xf32> -> vector<18x32xf32>
    %83 = arith.truncf %82 : vector<18x32xf32> to vector<18x32xbf16>
    %c6_58 = arith.constant 6 : index
    %c0_59 = arith.constant 0 : index
    %c0_60 = arith.constant 0 : index
    %84 = vector.load %arg5[%c6_58, %c0_59, %c0_60] : memref<16x32x64xbf16, #tpu.memory_space<vmem>>, vector<1x32x64xbf16>
    %85 = vector.shape_cast %84 : vector<1x32x64xbf16> to vector<32x64xbf16>
    %cst_61 = arith.constant dense<0.000000e+00> : vector<18x64xf32>
    %86 = tpu.matmul %83, %85, %cst_61 {dimension_numbers = #tpu.dot_dimension_numbers<[1], [0], [0], [1], [0, 0, 1, 1], [], []>} : vector<18x32xbf16>, vector<32x64xbf16>, vector<18x64xf32> -> vector<18x64xf32>
    %87 = arith.addf %79, %86 : vector<18x64xf32>
    %c7 = arith.constant 7 : index
    %c0_62 = arith.constant 0 : index
    %c0_63 = arith.constant 0 : index
    %88 = vector.load %arg4[%c7, %c0_62, %c0_63] : memref<16x18x128xbf16, #tpu.memory_space<vmem>>, vector<1x18x128xbf16>
    %89 = vector.shape_cast %88 : vector<1x18x128xbf16> to vector<18x128xbf16>
    %cst_64 = arith.constant dense<0.000000e+00> : vector<18x32xf32>
    %90 = tpu.matmul %89, %30, %cst_64 {dimension_numbers = #tpu.dot_dimension_numbers<[1], [0], [0], [1], [0, 0, 1, 1], [], []>} : vector<18x128xbf16>, vector<128x32xbf16>, vector<18x32xf32> -> vector<18x32xf32>
    %91 = arith.truncf %90 : vector<18x32xf32> to vector<18x32xbf16>
    %c7_65 = arith.constant 7 : index
    %c0_66 = arith.constant 0 : index
    %c0_67 = arith.constant 0 : index
    %92 = vector.load %arg5[%c7_65, %c0_66, %c0_67] : memref<16x32x64xbf16, #tpu.memory_space<vmem>>, vector<1x32x64xbf16>
    %93 = vector.shape_cast %92 : vector<1x32x64xbf16> to vector<32x64xbf16>
    %cst_68 = arith.constant dense<0.000000e+00> : vector<18x64xf32>
    %94 = tpu.matmul %91, %93, %cst_68 {dimension_numbers = #tpu.dot_dimension_numbers<[1], [0], [0], [1], [0, 0, 1, 1], [], []>} : vector<18x32xbf16>, vector<32x64xbf16>, vector<18x64xf32> -> vector<18x64xf32>
    %95 = arith.addf %87, %94 : vector<18x64xf32>
    %c8 = arith.constant 8 : index
    %c0_69 = arith.constant 0 : index
    %c0_70 = arith.constant 0 : index
    %96 = vector.load %arg4[%c8, %c0_69, %c0_70] : memref<16x18x128xbf16, #tpu.memory_space<vmem>>, vector<1x18x128xbf16>
    %97 = vector.shape_cast %96 : vector<1x18x128xbf16> to vector<18x128xbf16>
    %cst_71 = arith.constant dense<0.000000e+00> : vector<18x32xf32>
    %98 = tpu.matmul %97, %30, %cst_71 {dimension_numbers = #tpu.dot_dimension_numbers<[1], [0], [0], [1], [0, 0, 1, 1], [], []>} : vector<18x128xbf16>, vector<128x32xbf16>, vector<18x32xf32> -> vector<18x32xf32>
    %99 = arith.truncf %98 : vector<18x32xf32> to vector<18x32xbf16>
    %c8_72 = arith.constant 8 : index
    %c0_73 = arith.constant 0 : index
    %c0_74 = arith.constant 0 : index
    %100 = vector.load %arg5[%c8_72, %c0_73, %c0_74] : memref<16x32x64xbf16, #tpu.memory_space<vmem>>, vector<1x32x64xbf16>
    %101 = vector.shape_cast %100 : vector<1x32x64xbf16> to vector<32x64xbf16>
    %cst_75 = arith.constant dense<0.000000e+00> : vector<18x64xf32>
    %102 = tpu.matmul %99, %101, %cst_75 {dimension_numbers = #tpu.dot_dimension_numbers<[1], [0], [0], [1], [0, 0, 1, 1], [], []>} : vector<18x32xbf16>, vector<32x64xbf16>, vector<18x64xf32> -> vector<18x64xf32>
    %103 = arith.addf %95, %102 : vector<18x64xf32>
    %c9 = arith.constant 9 : index
    %c0_76 = arith.constant 0 : index
    %c0_77 = arith.constant 0 : index
    %104 = vector.load %arg4[%c9, %c0_76, %c0_77] : memref<16x18x128xbf16, #tpu.memory_space<vmem>>, vector<1x18x128xbf16>
    %105 = vector.shape_cast %104 : vector<1x18x128xbf16> to vector<18x128xbf16>
    %cst_78 = arith.constant dense<0.000000e+00> : vector<18x32xf32>
    %106 = tpu.matmul %105, %30, %cst_78 {dimension_numbers = #tpu.dot_dimension_numbers<[1], [0], [0], [1], [0, 0, 1, 1], [], []>} : vector<18x128xbf16>, vector<128x32xbf16>, vector<18x32xf32> -> vector<18x32xf32>
    %107 = arith.truncf %106 : vector<18x32xf32> to vector<18x32xbf16>
    %c9_79 = arith.constant 9 : index
    %c0_80 = arith.constant 0 : index
    %c0_81 = arith.constant 0 : index
    %108 = vector.load %arg5[%c9_79, %c0_80, %c0_81] : memref<16x32x64xbf16, #tpu.memory_space<vmem>>, vector<1x32x64xbf16>
    %109 = vector.shape_cast %108 : vector<1x32x64xbf16> to vector<32x64xbf16>
    %cst_82 = arith.constant dense<0.000000e+00> : vector<18x64xf32>
    %110 = tpu.matmul %107, %109, %cst_82 {dimension_numbers = #tpu.dot_dimension_numbers<[1], [0], [0], [1], [0, 0, 1, 1], [], []>} : vector<18x32xbf16>, vector<32x64xbf16>, vector<18x64xf32> -> vector<18x64xf32>
    %111 = arith.addf %103, %110 : vector<18x64xf32>
    %c10 = arith.constant 10 : index
    %c0_83 = arith.constant 0 : index
    %c0_84 = arith.constant 0 : index
    %112 = vector.load %arg4[%c10, %c0_83, %c0_84] : memref<16x18x128xbf16, #tpu.memory_space<vmem>>, vector<1x18x128xbf16>
    %113 = vector.shape_cast %112 : vector<1x18x128xbf16> to vector<18x128xbf16>
    %cst_85 = arith.constant dense<0.000000e+00> : vector<18x32xf32>
    %114 = tpu.matmul %113, %30, %cst_85 {dimension_numbers = #tpu.dot_dimension_numbers<[1], [0], [0], [1], [0, 0, 1, 1], [], []>} : vector<18x128xbf16>, vector<128x32xbf16>, vector<18x32xf32> -> vector<18x32xf32>
    %115 = arith.truncf %114 : vector<18x32xf32> to vector<18x32xbf16>
    %c10_86 = arith.constant 10 : index
    %c0_87 = arith.constant 0 : index
    %c0_88 = arith.constant 0 : index
    %116 = vector.load %arg5[%c10_86, %c0_87, %c0_88] : memref<16x32x64xbf16, #tpu.memory_space<vmem>>, vector<1x32x64xbf16>
    %117 = vector.shape_cast %116 : vector<1x32x64xbf16> to vector<32x64xbf16>
    %cst_89 = arith.constant dense<0.000000e+00> : vector<18x64xf32>
    %118 = tpu.matmul %115, %117, %cst_89 {dimension_numbers = #tpu.dot_dimension_numbers<[1], [0], [0], [1], [0, 0, 1, 1], [], []>} : vector<18x32xbf16>, vector<32x64xbf16>, vector<18x64xf32> -> vector<18x64xf32>
    %119 = arith.addf %111, %118 : vector<18x64xf32>
    %c11 = arith.constant 11 : index
    %c0_90 = arith.constant 0 : index
    %c0_91 = arith.constant 0 : index
    %120 = vector.load %arg4[%c11, %c0_90, %c0_91] : memref<16x18x128xbf16, #tpu.memory_space<vmem>>, vector<1x18x128xbf16>
    %121 = vector.shape_cast %120 : vector<1x18x128xbf16> to vector<18x128xbf16>
    %cst_92 = arith.constant dense<0.000000e+00> : vector<18x32xf32>
    %122 = tpu.matmul %121, %30, %cst_92 {dimension_numbers = #tpu.dot_dimension_numbers<[1], [0], [0], [1], [0, 0, 1, 1], [], []>} : vector<18x128xbf16>, vector<128x32xbf16>, vector<18x32xf32> -> vector<18x32xf32>
    %123 = arith.truncf %122 : vector<18x32xf32> to vector<18x32xbf16>
    %c11_93 = arith.constant 11 : index
    %c0_94 = arith.constant 0 : index
    %c0_95 = arith.constant 0 : index
    %124 = vector.load %arg5[%c11_93, %c0_94, %c0_95] : memref<16x32x64xbf16, #tpu.memory_space<vmem>>, vector<1x32x64xbf16>
    %125 = vector.shape_cast %124 : vector<1x32x64xbf16> to vector<32x64xbf16>
    %cst_96 = arith.constant dense<0.000000e+00> : vector<18x64xf32>
    %126 = tpu.matmul %123, %125, %cst_96 {dimension_numbers = #tpu.dot_dimension_numbers<[1], [0], [0], [1], [0, 0, 1, 1], [], []>} : vector<18x32xbf16>, vector<32x64xbf16>, vector<18x64xf32> -> vector<18x64xf32>
    %127 = arith.addf %119, %126 : vector<18x64xf32>
    %c12 = arith.constant 12 : index
    %c0_97 = arith.constant 0 : index
    %c0_98 = arith.constant 0 : index
    %128 = vector.load %arg4[%c12, %c0_97, %c0_98] : memref<16x18x128xbf16, #tpu.memory_space<vmem>>, vector<1x18x128xbf16>
    %129 = vector.shape_cast %128 : vector<1x18x128xbf16> to vector<18x128xbf16>
    %cst_99 = arith.constant dense<0.000000e+00> : vector<18x32xf32>
    %130 = tpu.matmul %129, %30, %cst_99 {dimension_numbers = #tpu.dot_dimension_numbers<[1], [0], [0], [1], [0, 0, 1, 1], [], []>} : vector<18x128xbf16>, vector<128x32xbf16>, vector<18x32xf32> -> vector<18x32xf32>
    %131 = arith.truncf %130 : vector<18x32xf32> to vector<18x32xbf16>
    %c12_100 = arith.constant 12 : index
    %c0_101 = arith.constant 0 : index
    %c0_102 = arith.constant 0 : index
    %132 = vector.load %arg5[%c12_100, %c0_101, %c0_102] : memref<16x32x64xbf16, #tpu.memory_space<vmem>>, vector<1x32x64xbf16>
    %133 = vector.shape_cast %132 : vector<1x32x64xbf16> to vector<32x64xbf16>
    %cst_103 = arith.constant dense<0.000000e+00> : vector<18x64xf32>
    %134 = tpu.matmul %131, %133, %cst_103 {dimension_numbers = #tpu.dot_dimension_numbers<[1], [0], [0], [1], [0, 0, 1, 1], [], []>} : vector<18x32xbf16>, vector<32x64xbf16>, vector<18x64xf32> -> vector<18x64xf32>
    %135 = arith.addf %127, %134 : vector<18x64xf32>
    %c13 = arith.constant 13 : index
    %c0_104 = arith.constant 0 : index
    %c0_105 = arith.constant 0 : index
    %136 = vector.load %arg4[%c13, %c0_104, %c0_105] : memref<16x18x128xbf16, #tpu.memory_space<vmem>>, vector<1x18x128xbf16>
    %137 = vector.shape_cast %136 : vector<1x18x128xbf16> to vector<18x128xbf16>
    %cst_106 = arith.constant dense<0.000000e+00> : vector<18x32xf32>
    %138 = tpu.matmul %137, %30, %cst_106 {dimension_numbers = #tpu.dot_dimension_numbers<[1], [0], [0], [1], [0, 0, 1, 1], [], []>} : vector<18x128xbf16>, vector<128x32xbf16>, vector<18x32xf32> -> vector<18x32xf32>
    %139 = arith.truncf %138 : vector<18x32xf32> to vector<18x32xbf16>
    %c13_107 = arith.constant 13 : index
    %c0_108 = arith.constant 0 : index
    %c0_109 = arith.constant 0 : index
    %140 = vector.load %arg5[%c13_107, %c0_108, %c0_109] : memref<16x32x64xbf16, #tpu.memory_space<vmem>>, vector<1x32x64xbf16>
    %141 = vector.shape_cast %140 : vector<1x32x64xbf16> to vector<32x64xbf16>
    %cst_110 = arith.constant dense<0.000000e+00> : vector<18x64xf32>
    %142 = tpu.matmul %139, %141, %cst_110 {dimension_numbers = #tpu.dot_dimension_numbers<[1], [0], [0], [1], [0, 0, 1, 1], [], []>} : vector<18x32xbf16>, vector<32x64xbf16>, vector<18x64xf32> -> vector<18x64xf32>
    %143 = arith.addf %135, %142 : vector<18x64xf32>
    %c14 = arith.constant 14 : index
    %c0_111 = arith.constant 0 : index
    %c0_112 = arith.constant 0 : index
    %144 = vector.load %arg4[%c14, %c0_111, %c0_112] : memref<16x18x128xbf16, #tpu.memory_space<vmem>>, vector<1x18x128xbf16>
    %145 = vector.shape_cast %144 : vector<1x18x128xbf16> to vector<18x128xbf16>
    %cst_113 = arith.constant dense<0.000000e+00> : vector<18x32xf32>
    %146 = tpu.matmul %145, %30, %cst_113 {dimension_numbers = #tpu.dot_dimension_numbers<[1], [0], [0], [1], [0, 0, 1, 1], [], []>} : vector<18x128xbf16>, vector<128x32xbf16>, vector<18x32xf32> -> vector<18x32xf32>
    %147 = arith.truncf %146 : vector<18x32xf32> to vector<18x32xbf16>
    %c14_114 = arith.constant 14 : index
    %c0_115 = arith.constant 0 : index
    %c0_116 = arith.constant 0 : index
    %148 = vector.load %arg5[%c14_114, %c0_115, %c0_116] : memref<16x32x64xbf16, #tpu.memory_space<vmem>>, vector<1x32x64xbf16>
    %149 = vector.shape_cast %148 : vector<1x32x64xbf16> to vector<32x64xbf16>
    %cst_117 = arith.constant dense<0.000000e+00> : vector<18x64xf32>
    %150 = tpu.matmul %147, %149, %cst_117 {dimension_numbers = #tpu.dot_dimension_numbers<[1], [0], [0], [1], [0, 0, 1, 1], [], []>} : vector<18x32xbf16>, vector<32x64xbf16>, vector<18x64xf32> -> vector<18x64xf32>
    %151 = arith.addf %143, %150 : vector<18x64xf32>
    %c15 = arith.constant 15 : index
    %c0_118 = arith.constant 0 : index
    %c0_119 = arith.constant 0 : index
    %152 = vector.load %arg4[%c15, %c0_118, %c0_119] : memref<16x18x128xbf16, #tpu.memory_space<vmem>>, vector<1x18x128xbf16>
    %153 = vector.shape_cast %152 : vector<1x18x128xbf16> to vector<18x128xbf16>
    %cst_120 = arith.constant dense<0.000000e+00> : vector<18x32xf32>
    %154 = tpu.matmul %153, %30, %cst_120 {dimension_numbers = #tpu.dot_dimension_numbers<[1], [0], [0], [1], [0, 0, 1, 1], [], []>} : vector<18x128xbf16>, vector<128x32xbf16>, vector<18x32xf32> -> vector<18x32xf32>
    %155 = arith.truncf %154 : vector<18x32xf32> to vector<18x32xbf16>
    %c15_121 = arith.constant 15 : index
    %c0_122 = arith.constant 0 : index
    %c0_123 = arith.constant 0 : index
    %156 = vector.load %arg5[%c15_121, %c0_122, %c0_123] : memref<16x32x64xbf16, #tpu.memory_space<vmem>>, vector<1x32x64xbf16>
    %157 = vector.shape_cast %156 : vector<1x32x64xbf16> to vector<32x64xbf16>
    %cst_124 = arith.constant dense<0.000000e+00> : vector<18x64xf32>
    %158 = tpu.matmul %155, %157, %cst_124 {dimension_numbers = #tpu.dot_dimension_numbers<[1], [0], [0], [1], [0, 0, 1, 1], [], []>} : vector<18x32xbf16>, vector<32x64xbf16>, vector<18x64xf32> -> vector<18x64xf32>
    %159 = arith.addf %151, %158 : vector<18x64xf32>
    %c0_125 = arith.constant 0 : index
    %c0_126 = arith.constant 0 : index
    %160 = vector.load %arg6[%c0_125, %c0_126] : memref<2x64xf32, #tpu.memory_space<vmem>>, vector<2x64xf32>
    %cst_127 = arith.constant dense<0.000000e+00> : vector<64xf32>
    %161 = vector.multi_reduction <add>, %159, %cst_127 [0] : vector<18x64xf32> to vector<64xf32>
    %162 = vector.shape_cast %161 : vector<64xf32> to vector<1x64xf32>
    %cst_128 = arith.constant 1.800000e+01 : f32
    %163 = vector.broadcast %cst_128 : f32 to vector<1x64xf32>
    %164 = arith.divf %162, %163 : vector<1x64xf32>
    %165 = arith.mulf %159, %159 : vector<18x64xf32>
    %cst_129 = arith.constant dense<0.000000e+00> : vector<64xf32>
    %166 = vector.multi_reduction <add>, %165, %cst_129 [0] : vector<18x64xf32> to vector<64xf32>
    %167 = vector.shape_cast %166 : vector<64xf32> to vector<1x64xf32>
    %cst_130 = arith.constant 1.800000e+01 : f32
    %168 = vector.broadcast %cst_130 : f32 to vector<1x64xf32>
    %169 = arith.divf %167, %168 : vector<1x64xf32>
    %170 = arith.mulf %164, %164 : vector<1x64xf32>
    %171 = arith.subf %169, %170 : vector<1x64xf32>
    %172 = vector.broadcast %164 : vector<1x64xf32> to vector<18x64xf32>
    %173 = arith.subf %159, %172 : vector<18x64xf32>
    %cst_131 = arith.constant 9.99999974E-6 : f32
    %174 = vector.broadcast %cst_131 : f32 to vector<1x64xf32>
    %175 = arith.addf %171, %174 : vector<1x64xf32>
    %176 = math.rsqrt %175 : vector<1x64xf32>
    %177 = vector.broadcast %176 : vector<1x64xf32> to vector<18x64xf32>
    %178 = arith.mulf %173, %177 : vector<18x64xf32>
    %179 = vector.extract_strided_slice %160 {offsets = [0, 0], sizes = [1, 64], strides = [1, 1]} : vector<2x64xf32> to vector<1x64xf32>
    %180 = vector.broadcast %179 : vector<1x64xf32> to vector<18x64xf32>
    %181 = arith.mulf %180, %178 : vector<18x64xf32>
    %182 = vector.extract_strided_slice %160 {offsets = [1, 0], sizes = [1, 64], strides = [1, 1]} : vector<2x64xf32> to vector<1x64xf32>
    %183 = vector.broadcast %182 : vector<1x64xf32> to vector<18x64xf32>
    %184 = arith.addf %181, %183 : vector<18x64xf32>
    %cst_132 = arith.constant 0.000000e+00 : f32
    %185 = vector.broadcast %cst_132 : f32 to vector<18x64xf32>
    %186 = arith.maximumf %184, %185 : vector<18x64xf32>
    %187 = arith.truncf %186 : vector<18x64xf32> to vector<18x64xbf16>
    %cst_133 = arith.constant 0.000000e+00 : f32
    %188 = vector.broadcast %cst_133 : f32 to vector<2x64xf32>
    %c0_134 = arith.constant 0 : index
    %c0_135 = arith.constant 0 : index
    %c0_136 = arith.constant 0 : index
    %189 = vector.load %arg7[%c0_134, %c0_135, %c0_136] : memref<9x2x18xbf16, #tpu.memory_space<vmem>>, vector<1x2x18xbf16>
    %190 = vector.shape_cast %189 : vector<1x2x18xbf16> to vector<2x18xbf16>
    %cst_137 = arith.constant dense<0.000000e+00> : vector<2x64xf32>
    %191 = tpu.matmul %190, %187, %cst_137 {dimension_numbers = #tpu.dot_dimension_numbers<[1], [0], [0], [1], [0, 0, 1, 1], [], []>} : vector<2x18xbf16>, vector<18x64xbf16>, vector<2x64xf32> -> vector<2x64xf32>
    %192 = arith.truncf %191 : vector<2x64xf32> to vector<2x64xbf16>
    %c0_138 = arith.constant 0 : index
    %c0_139 = arith.constant 0 : index
    %c0_140 = arith.constant 0 : index
    %193 = vector.load %arg8[%c0_138, %c0_139, %c0_140] : memref<9x64x64xbf16, #tpu.memory_space<vmem>>, vector<1x64x64xbf16>
    %194 = vector.shape_cast %193 : vector<1x64x64xbf16> to vector<64x64xbf16>
    %cst_141 = arith.constant dense<0.000000e+00> : vector<2x64xf32>
    %195 = tpu.matmul %192, %194, %cst_141 {dimension_numbers = #tpu.dot_dimension_numbers<[1], [0], [0], [1], [0, 0, 1, 1], [], []>} : vector<2x64xbf16>, vector<64x64xbf16>, vector<2x64xf32> -> vector<2x64xf32>
    %196 = arith.addf %188, %195 : vector<2x64xf32>
    %c1_142 = arith.constant 1 : index
    %c0_143 = arith.constant 0 : index
    %c0_144 = arith.constant 0 : index
    %197 = vector.load %arg7[%c1_142, %c0_143, %c0_144] : memref<9x2x18xbf16, #tpu.memory_space<vmem>>, vector<1x2x18xbf16>
    %198 = vector.shape_cast %197 : vector<1x2x18xbf16> to vector<2x18xbf16>
    %cst_145 = arith.constant dense<0.000000e+00> : vector<2x64xf32>
    %199 = tpu.matmul %198, %187, %cst_145 {dimension_numbers = #tpu.dot_dimension_numbers<[1], [0], [0], [1], [0, 0, 1, 1], [], []>} : vector<2x18xbf16>, vector<18x64xbf16>, vector<2x64xf32> -> vector<2x64xf32>
    %200 = arith.truncf %199 : vector<2x64xf32> to vector<2x64xbf16>
    %c1_146 = arith.constant 1 : index
    %c0_147 = arith.constant 0 : index
    %c0_148 = arith.constant 0 : index
    %201 = vector.load %arg8[%c1_146, %c0_147, %c0_148] : memref<9x64x64xbf16, #tpu.memory_space<vmem>>, vector<1x64x64xbf16>
    %202 = vector.shape_cast %201 : vector<1x64x64xbf16> to vector<64x64xbf16>
    %cst_149 = arith.constant dense<0.000000e+00> : vector<2x64xf32>
    %203 = tpu.matmul %200, %202, %cst_149 {dimension_numbers = #tpu.dot_dimension_numbers<[1], [0], [0], [1], [0, 0, 1, 1], [], []>} : vector<2x64xbf16>, vector<64x64xbf16>, vector<2x64xf32> -> vector<2x64xf32>
    %204 = arith.addf %196, %203 : vector<2x64xf32>
    %c2_150 = arith.constant 2 : index
    %c0_151 = arith.constant 0 : index
    %c0_152 = arith.constant 0 : index
    %205 = vector.load %arg7[%c2_150, %c0_151, %c0_152] : memref<9x2x18xbf16, #tpu.memory_space<vmem>>, vector<1x2x18xbf16>
    %206 = vector.shape_cast %205 : vector<1x2x18xbf16> to vector<2x18xbf16>
    %cst_153 = arith.constant dense<0.000000e+00> : vector<2x64xf32>
    %207 = tpu.matmul %206, %187, %cst_153 {dimension_numbers = #tpu.dot_dimension_numbers<[1], [0], [0], [1], [0, 0, 1, 1], [], []>} : vector<2x18xbf16>, vector<18x64xbf16>, vector<2x64xf32> -> vector<2x64xf32>
    %208 = arith.truncf %207 : vector<2x64xf32> to vector<2x64xbf16>
    %c2_154 = arith.constant 2 : index
    %c0_155 = arith.constant 0 : index
    %c0_156 = arith.constant 0 : index
    %209 = vector.load %arg8[%c2_154, %c0_155, %c0_156] : memref<9x64x64xbf16, #tpu.memory_space<vmem>>, vector<1x64x64xbf16>
    %210 = vector.shape_cast %209 : vector<1x64x64xbf16> to vector<64x64xbf16>
    %cst_157 = arith.constant dense<0.000000e+00> : vector<2x64xf32>
    %211 = tpu.matmul %208, %210, %cst_157 {dimension_numbers = #tpu.dot_dimension_numbers<[1], [0], [0], [1], [0, 0, 1, 1], [], []>} : vector<2x64xbf16>, vector<64x64xbf16>, vector<2x64xf32> -> vector<2x64xf32>
    %212 = arith.addf %204, %211 : vector<2x64xf32>
    %c3_158 = arith.constant 3 : index
    %c0_159 = arith.constant 0 : index
    %c0_160 = arith.constant 0 : index
    %213 = vector.load %arg7[%c3_158, %c0_159, %c0_160] : memref<9x2x18xbf16, #tpu.memory_space<vmem>>, vector<1x2x18xbf16>
    %214 = vector.shape_cast %213 : vector<1x2x18xbf16> to vector<2x18xbf16>
    %cst_161 = arith.constant dense<0.000000e+00> : vector<2x64xf32>
    %215 = tpu.matmul %214, %187, %cst_161 {dimension_numbers = #tpu.dot_dimension_numbers<[1], [0], [0], [1], [0, 0, 1, 1], [], []>} : vector<2x18xbf16>, vector<18x64xbf16>, vector<2x64xf32> -> vector<2x64xf32>
    %216 = arith.truncf %215 : vector<2x64xf32> to vector<2x64xbf16>
    %c3_162 = arith.constant 3 : index
    %c0_163 = arith.constant 0 : index
    %c0_164 = arith.constant 0 : index
    %217 = vector.load %arg8[%c3_162, %c0_163, %c0_164] : memref<9x64x64xbf16, #tpu.memory_space<vmem>>, vector<1x64x64xbf16>
    %218 = vector.shape_cast %217 : vector<1x64x64xbf16> to vector<64x64xbf16>
    %cst_165 = arith.constant dense<0.000000e+00> : vector<2x64xf32>
    %219 = tpu.matmul %216, %218, %cst_165 {dimension_numbers = #tpu.dot_dimension_numbers<[1], [0], [0], [1], [0, 0, 1, 1], [], []>} : vector<2x64xbf16>, vector<64x64xbf16>, vector<2x64xf32> -> vector<2x64xf32>
    %220 = arith.addf %212, %219 : vector<2x64xf32>
    %c4_166 = arith.constant 4 : index
    %c0_167 = arith.constant 0 : index
    %c0_168 = arith.constant 0 : index
    %221 = vector.load %arg7[%c4_166, %c0_167, %c0_168] : memref<9x2x18xbf16, #tpu.memory_space<vmem>>, vector<1x2x18xbf16>
    %222 = vector.shape_cast %221 : vector<1x2x18xbf16> to vector<2x18xbf16>
    %cst_169 = arith.constant dense<0.000000e+00> : vector<2x64xf32>
    %223 = tpu.matmul %222, %187, %cst_169 {dimension_numbers = #tpu.dot_dimension_numbers<[1], [0], [0], [1], [0, 0, 1, 1], [], []>} : vector<2x18xbf16>, vector<18x64xbf16>, vector<2x64xf32> -> vector<2x64xf32>
    %224 = arith.truncf %223 : vector<2x64xf32> to vector<2x64xbf16>
    %c4_170 = arith.constant 4 : index
    %c0_171 = arith.constant 0 : index
    %c0_172 = arith.constant 0 : index
    %225 = vector.load %arg8[%c4_170, %c0_171, %c0_172] : memref<9x64x64xbf16, #tpu.memory_space<vmem>>, vector<1x64x64xbf16>
    %226 = vector.shape_cast %225 : vector<1x64x64xbf16> to vector<64x64xbf16>
    %cst_173 = arith.constant dense<0.000000e+00> : vector<2x64xf32>
    %227 = tpu.matmul %224, %226, %cst_173 {dimension_numbers = #tpu.dot_dimension_numbers<[1], [0], [0], [1], [0, 0, 1, 1], [], []>} : vector<2x64xbf16>, vector<64x64xbf16>, vector<2x64xf32> -> vector<2x64xf32>
    %228 = arith.addf %220, %227 : vector<2x64xf32>
    %c5_174 = arith.constant 5 : index
    %c0_175 = arith.constant 0 : index
    %c0_176 = arith.constant 0 : index
    %229 = vector.load %arg7[%c5_174, %c0_175, %c0_176] : memref<9x2x18xbf16, #tpu.memory_space<vmem>>, vector<1x2x18xbf16>
    %230 = vector.shape_cast %229 : vector<1x2x18xbf16> to vector<2x18xbf16>
    %cst_177 = arith.constant dense<0.000000e+00> : vector<2x64xf32>
    %231 = tpu.matmul %230, %187, %cst_177 {dimension_numbers = #tpu.dot_dimension_numbers<[1], [0], [0], [1], [0, 0, 1, 1], [], []>} : vector<2x18xbf16>, vector<18x64xbf16>, vector<2x64xf32> -> vector<2x64xf32>
    %232 = arith.truncf %231 : vector<2x64xf32> to vector<2x64xbf16>
    %c5_178 = arith.constant 5 : index
    %c0_179 = arith.constant 0 : index
    %c0_180 = arith.constant 0 : index
    %233 = vector.load %arg8[%c5_178, %c0_179, %c0_180] : memref<9x64x64xbf16, #tpu.memory_space<vmem>>, vector<1x64x64xbf16>
    %234 = vector.shape_cast %233 : vector<1x64x64xbf16> to vector<64x64xbf16>
    %cst_181 = arith.constant dense<0.000000e+00> : vector<2x64xf32>
    %235 = tpu.matmul %232, %234, %cst_181 {dimension_numbers = #tpu.dot_dimension_numbers<[1], [0], [0], [1], [0, 0, 1, 1], [], []>} : vector<2x64xbf16>, vector<64x64xbf16>, vector<2x64xf32> -> vector<2x64xf32>
    %236 = arith.addf %228, %235 : vector<2x64xf32>
    %c6_182 = arith.constant 6 : index
    %c0_183 = arith.constant 0 : index
    %c0_184 = arith.constant 0 : index
    %237 = vector.load %arg7[%c6_182, %c0_183, %c0_184] : memref<9x2x18xbf16, #tpu.memory_space<vmem>>, vector<1x2x18xbf16>
    %238 = vector.shape_cast %237 : vector<1x2x18xbf16> to vector<2x18xbf16>
    %cst_185 = arith.constant dense<0.000000e+00> : vector<2x64xf32>
    %239 = tpu.matmul %238, %187, %cst_185 {dimension_numbers = #tpu.dot_dimension_numbers<[1], [0], [0], [1], [0, 0, 1, 1], [], []>} : vector<2x18xbf16>, vector<18x64xbf16>, vector<2x64xf32> -> vector<2x64xf32>
    %240 = arith.truncf %239 : vector<2x64xf32> to vector<2x64xbf16>
    %c6_186 = arith.constant 6 : index
    %c0_187 = arith.constant 0 : index
    %c0_188 = arith.constant 0 : index
    %241 = vector.load %arg8[%c6_186, %c0_187, %c0_188] : memref<9x64x64xbf16, #tpu.memory_space<vmem>>, vector<1x64x64xbf16>
    %242 = vector.shape_cast %241 : vector<1x64x64xbf16> to vector<64x64xbf16>
    %cst_189 = arith.constant dense<0.000000e+00> : vector<2x64xf32>
    %243 = tpu.matmul %240, %242, %cst_189 {dimension_numbers = #tpu.dot_dimension_numbers<[1], [0], [0], [1], [0, 0, 1, 1], [], []>} : vector<2x64xbf16>, vector<64x64xbf16>, vector<2x64xf32> -> vector<2x64xf32>
    %244 = arith.addf %236, %243 : vector<2x64xf32>
    %c7_190 = arith.constant 7 : index
    %c0_191 = arith.constant 0 : index
    %c0_192 = arith.constant 0 : index
    %245 = vector.load %arg7[%c7_190, %c0_191, %c0_192] : memref<9x2x18xbf16, #tpu.memory_space<vmem>>, vector<1x2x18xbf16>
    %246 = vector.shape_cast %245 : vector<1x2x18xbf16> to vector<2x18xbf16>
    %cst_193 = arith.constant dense<0.000000e+00> : vector<2x64xf32>
    %247 = tpu.matmul %246, %187, %cst_193 {dimension_numbers = #tpu.dot_dimension_numbers<[1], [0], [0], [1], [0, 0, 1, 1], [], []>} : vector<2x18xbf16>, vector<18x64xbf16>, vector<2x64xf32> -> vector<2x64xf32>
    %248 = arith.truncf %247 : vector<2x64xf32> to vector<2x64xbf16>
    %c7_194 = arith.constant 7 : index
    %c0_195 = arith.constant 0 : index
    %c0_196 = arith.constant 0 : index
    %249 = vector.load %arg8[%c7_194, %c0_195, %c0_196] : memref<9x64x64xbf16, #tpu.memory_space<vmem>>, vector<1x64x64xbf16>
    %250 = vector.shape_cast %249 : vector<1x64x64xbf16> to vector<64x64xbf16>
    %cst_197 = arith.constant dense<0.000000e+00> : vector<2x64xf32>
    %251 = tpu.matmul %248, %250, %cst_197 {dimension_numbers = #tpu.dot_dimension_numbers<[1], [0], [0], [1], [0, 0, 1, 1], [], []>} : vector<2x64xbf16>, vector<64x64xbf16>, vector<2x64xf32> -> vector<2x64xf32>
    %252 = arith.addf %244, %251 : vector<2x64xf32>
    %c8_198 = arith.constant 8 : index
    %c0_199 = arith.constant 0 : index
    %c0_200 = arith.constant 0 : index
    %253 = vector.load %arg7[%c8_198, %c0_199, %c0_200] : memref<9x2x18xbf16, #tpu.memory_space<vmem>>, vector<1x2x18xbf16>
    %254 = vector.shape_cast %253 : vector<1x2x18xbf16> to vector<2x18xbf16>
    %cst_201 = arith.constant dense<0.000000e+00> : vector<2x64xf32>
    %255 = tpu.matmul %254, %187, %cst_201 {dimension_numbers = #tpu.dot_dimension_numbers<[1], [0], [0], [1], [0, 0, 1, 1], [], []>} : vector<2x18xbf16>, vector<18x64xbf16>, vector<2x64xf32> -> vector<2x64xf32>
    %256 = arith.truncf %255 : vector<2x64xf32> to vector<2x64xbf16>
    %c8_202 = arith.constant 8 : index
    %c0_203 = arith.constant 0 : index
    %c0_204 = arith.constant 0 : index
    %257 = vector.load %arg8[%c8_202, %c0_203, %c0_204] : memref<9x64x64xbf16, #tpu.memory_space<vmem>>, vector<1x64x64xbf16>
    %258 = vector.shape_cast %257 : vector<1x64x64xbf16> to vector<64x64xbf16>
    %cst_205 = arith.constant dense<0.000000e+00> : vector<2x64xf32>
    %259 = tpu.matmul %256, %258, %cst_205 {dimension_numbers = #tpu.dot_dimension_numbers<[1], [0], [0], [1], [0, 0, 1, 1], [], []>} : vector<2x64xbf16>, vector<64x64xbf16>, vector<2x64xf32> -> vector<2x64xf32>
    %260 = arith.addf %252, %259 : vector<2x64xf32>
    %c0_206 = arith.constant 0 : index
    %c0_207 = arith.constant 0 : index
    %261 = vector.load %arg9[%c0_206, %c0_207] : memref<2x64xf32, #tpu.memory_space<vmem>>, vector<2x64xf32>
    %cst_208 = arith.constant dense<0.000000e+00> : vector<64xf32>
    %262 = vector.multi_reduction <add>, %260, %cst_208 [0] : vector<2x64xf32> to vector<64xf32>
    %263 = vector.shape_cast %262 : vector<64xf32> to vector<1x64xf32>
    %cst_209 = arith.constant 2.000000e+00 : f32
    %264 = vector.broadcast %cst_209 : f32 to vector<1x64xf32>
    %265 = arith.divf %263, %264 : vector<1x64xf32>
    %266 = arith.mulf %260, %260 : vector<2x64xf32>
    %cst_210 = arith.constant dense<0.000000e+00> : vector<64xf32>
    %267 = vector.multi_reduction <add>, %266, %cst_210 [0] : vector<2x64xf32> to vector<64xf32>
    %268 = vector.shape_cast %267 : vector<64xf32> to vector<1x64xf32>
    %cst_211 = arith.constant 2.000000e+00 : f32
    %269 = vector.broadcast %cst_211 : f32 to vector<1x64xf32>
    %270 = arith.divf %268, %269 : vector<1x64xf32>
    %271 = arith.mulf %265, %265 : vector<1x64xf32>
    %272 = arith.subf %270, %271 : vector<1x64xf32>
    %273 = vector.broadcast %265 : vector<1x64xf32> to vector<2x64xf32>
    %274 = arith.subf %260, %273 : vector<2x64xf32>
    %cst_212 = arith.constant 9.99999974E-6 : f32
    %275 = vector.broadcast %cst_212 : f32 to vector<1x64xf32>
    %276 = arith.addf %272, %275 : vector<1x64xf32>
    %277 = math.rsqrt %276 : vector<1x64xf32>
    %278 = vector.broadcast %277 : vector<1x64xf32> to vector<2x64xf32>
    %279 = arith.mulf %274, %278 : vector<2x64xf32>
    %280 = vector.extract_strided_slice %261 {offsets = [0, 0], sizes = [1, 64], strides = [1, 1]} : vector<2x64xf32> to vector<1x64xf32>
    %281 = vector.broadcast %280 : vector<1x64xf32> to vector<2x64xf32>
    %282 = arith.mulf %281, %279 : vector<2x64xf32>
    %283 = vector.extract_strided_slice %261 {offsets = [1, 0], sizes = [1, 64], strides = [1, 1]} : vector<2x64xf32> to vector<1x64xf32>
    %284 = vector.broadcast %283 : vector<1x64xf32> to vector<2x64xf32>
    %285 = arith.addf %282, %284 : vector<2x64xf32>
    %cst_213 = arith.constant 0.000000e+00 : f32
    %286 = vector.broadcast %cst_213 : f32 to vector<2x64xf32>
    %287 = arith.maximumf %285, %286 : vector<2x64xf32>
    %288 = arith.truncf %287 : vector<2x64xf32> to vector<2x64xbf16>
    %c0_214 = arith.constant 0 : index
    %c0_215 = arith.constant 0 : index
    %289 = vector.load %arg10[%c0_214, %c0_215] : memref<64x128xbf16, #tpu.memory_space<vmem>>, vector<64x128xbf16>
    %cst_216 = arith.constant dense<0.000000e+00> : vector<2x128xf32>
    %290 = tpu.matmul %288, %289, %cst_216 {dimension_numbers = #tpu.dot_dimension_numbers<[1], [0], [0], [1], [0, 0, 1, 1], [], []>} : vector<2x64xbf16>, vector<64x128xbf16>, vector<2x128xf32> -> vector<2x128xf32>
    %c0_217 = arith.constant 0 : index
    %c0_218 = arith.constant 0 : index
    %291 = vector.load %arg11[%c0_217, %c0_218] : memref<1x128xf32, #tpu.memory_space<vmem>>, vector<1x128xf32>
    %292 = vector.broadcast %291 : vector<1x128xf32> to vector<2x128xf32>
    %293 = arith.addf %290, %292 : vector<2x128xf32>
    %cst_219 = arith.constant 0.000000e+00 : f32
    %294 = vector.broadcast %cst_219 : f32 to vector<2x128xf32>
    %295 = arith.maximumf %293, %294 : vector<2x128xf32>
    %296 = arith.truncf %295 : vector<2x128xf32> to vector<2x128xbf16>
    %c0_220 = arith.constant 0 : index
    %c0_221 = arith.constant 0 : index
    %297 = vector.load %arg12[%c0_220, %c0_221] : memref<128x16xbf16, #tpu.memory_space<vmem>>, vector<128x16xbf16>
    %cst_222 = arith.constant dense<0.000000e+00> : vector<2x16xf32>
    %298 = tpu.matmul %296, %297, %cst_222 {dimension_numbers = #tpu.dot_dimension_numbers<[1], [0], [0], [1], [0, 0, 1, 1], [], []>} : vector<2x128xbf16>, vector<128x16xbf16>, vector<2x16xf32> -> vector<2x16xf32>
    %c0_223 = arith.constant 0 : index
    %c0_224 = arith.constant 0 : index
    %299 = vector.load %arg13[%c0_223, %c0_224] : memref<1x16xf32, #tpu.memory_space<vmem>>, vector<1x16xf32>
    %300 = vector.broadcast %299 : vector<1x16xf32> to vector<2x16xf32>
    %301 = arith.addf %298, %300 : vector<2x16xf32>
    %c0_225 = arith.constant 0 : index
    %c0_226 = arith.constant 0 : index
    %302 = vector.load %arg14[%c0_225, %c0_226] : memref<2x16xf32, #tpu.memory_space<vmem>>, vector<2x16xf32>
    tpu.vector_store %arg14[%c0_225, %c0_226], %301 {strides = array<i32>} : memref<2x16xf32, #tpu.memory_space<vmem>>, vector<2x16xf32>,
    return
  }
  func.func @transform_0(%arg0: i32) -> (i32, i32) {
    %c0_i32 = arith.constant 0 : i32
    %c0_i32_0 = arith.constant 0 : i32
    %c0_i32_1 = arith.constant 0 : i32
    return %c0_i32, %c0_i32_0 : i32, i32
  }
  func.func @transform_1(%arg0: i32) -> (i32, i32) {
    %c0_i32 = arith.constant 0 : i32
    %c0_i32_0 = arith.constant 0 : i32
    %c0_i32_1 = arith.constant 0 : i32
    return %c0_i32, %c0_i32_0 : i32, i32
  }
  func.func @transform_2(%arg0: i32) -> (i32, i32) {
    %c0_i32 = arith.constant 0 : i32
    %c0_i32_0 = arith.constant 0 : i32
    %c0_i32_1 = arith.constant 0 : i32
    return %c0_i32, %c0_i32_0 : i32, i32
  }
  func.func @transform_3(%arg0: i32) -> (i32, i32, i32) {
    %c0_i32 = arith.constant 0 : i32
    %c0_i32_0 = arith.constant 0 : i32
    %c0_i32_1 = arith.constant 0 : i32
    %c0_i32_2 = arith.constant 0 : i32
    return %c0_i32, %c0_i32_0, %c0_i32_1 : i32, i32, i32
  }
  func.func @transform_4(%arg0: i32) -> (i32, i32, i32) {
    %c0_i32 = arith.constant 0 : i32
    %c0_i32_0 = arith.constant 0 : i32
    %c0_i32_1 = arith.constant 0 : i32
    %c0_i32_2 = arith.constant 0 : i32
    return %c0_i32, %c0_i32_0, %c0_i32_1 : i32, i32, i32
  }
  func.func @transform_5(%arg0: i32) -> (i32, i32) {
    %c0_i32 = arith.constant 0 : i32
    %c0_i32_0 = arith.constant 0 : i32
    %c0_i32_1 = arith.constant 0 : i32
    return %c0_i32, %c0_i32_0 : i32, i32
  }
  func.func @transform_6(%arg0: i32) -> (i32, i32, i32) {
    %c0_i32 = arith.constant 0 : i32
    %c0_i32_0 = arith.constant 0 : i32
    %c0_i32_1 = arith.constant 0 : i32
    %c0_i32_2 = arith.constant 0 : i32
    return %c0_i32, %c0_i32_0, %c0_i32_1 : i32, i32, i32
  }
  func.func @transform_7(%arg0: i32) -> (i32, i32, i32) {
    %c0_i32 = arith.constant 0 : i32
    %c0_i32_0 = arith.constant 0 : i32
    %c0_i32_1 = arith.constant 0 : i32
    %c0_i32_2 = arith.constant 0 : i32
    return %c0_i32, %c0_i32_0, %c0_i32_1 : i32, i32, i32
  }
  func.func @transform_8(%arg0: i32) -> (i32, i32) {
    %c0_i32 = arith.constant 0 : i32
    %c0_i32_0 = arith.constant 0 : i32
    %c0_i32_1 = arith.constant 0 : i32
    return %c0_i32, %c0_i32_0 : i32, i32
  }
  func.func @transform_9(%arg0: i32) -> (i32, i32) {
    %c0_i32 = arith.constant 0 : i32
    %c0_i32_0 = arith.constant 0 : i32
    %c0_i32_1 = arith.constant 0 : i32
    return %c0_i32, %c0_i32_0 : i32, i32
  }
  func.func @transform_10(%arg0: i32) -> (i32, i32) {
    %c0_i32 = arith.constant 0 : i32
    %c0_i32_0 = arith.constant 0 : i32
    %c0_i32_1 = arith.constant 0 : i32
    return %c0_i32, %c0_i32_0 : i32, i32
  }
  func.func @transform_11(%arg0: i32) -> (i32, i32) {
    %c0_i32 = arith.constant 0 : i32
    %c0_i32_0 = arith.constant 0 : i32
    %c0_i32_1 = arith.constant 0 : i32
    return %c0_i32, %c0_i32_0 : i32, i32
  }
  func.func @transform_12(%arg0: i32) -> (i32, i32) {
    %c0_i32 = arith.constant 0 : i32
    %c0_i32_0 = arith.constant 0 : i32
    %c0_i32_1 = arith.constant 0 : i32
    return %c0_i32, %c0_i32_0 : i32, i32
  }
  func.func @transform_13(%arg0: i32) -> (i32, i32) {
    %c0_i32 = arith.constant 0 : i32
    %c0_i32_0 = arith.constant 0 : i32
    %c0_i32_1 = arith.constant 0 : i32
    return %c0_i32, %c0_i32_0 : i32, i32
  }
}

</mosaic_0001>

<bundles_post_ra>
// kernel: _lambda_.1
= control target key start
LH: loop header
LB: loop body
LE: loop exit
PB: predicated region body
PF: predicated region fallthrough
CT: control target
= control target key end

     0   :  { %s7066_s0 = inlined_call_operand.vmem [shape: bf16[128,256], index: 0, kind: input, shape index: {}]   ;;  %s7067_s1 = inlined_call_operand.vmem [shape: bf16[256,32], index: 1, kind: input, shape index: {}]   ;;  %s7068_s2 = inlined_call_operand.vmem [shape: f32[2,32], index: 2, kind: input, shape index: {}]   ;;  %s7069_s3 = inlined_call_operand.vmem [shape: bf16[16,18,128], index: 3, kind: input, shape index: {}]   ;;  %s7070_s4 = inlined_call_operand.vmem [shape: bf16[16,32,64], index: 4, kind: input, shape index: {}]   ;;  %s7071_s5 = inlined_call_operand.vmem [shape: f32[2,64], index: 5, kind: input, shape index: {}]   ;;  %s7072_s6 = inlined_call_operand.vmem [shape: bf16[9,2,18], index: 6, kind: input, shape index: {}]   ;;  %s7073_s7 = inlined_call_operand.vmem [shape: bf16[9,64,64], index: 7, kind: input, shape index: {}]   ;;  %s7074_s8 = inlined_call_operand.vmem [shape: f32[2,64], index: 8, kind: input, shape index: {}]   ;;  %s7075_s9 = inlined_call_operand.vmem [shape: bf16[64,128], index: 9, kind: input, shape index: {}]   ;;  %s7076_s10 = inlined_call_operand.vmem [shape: f32[1,128], index: 10, kind: input, shape index: {}]   ;;  %s7077_s11 = inlined_call_operand.vmem [shape: bf16[128,16], index: 11, kind: input, shape index: {}]   ;;  %s7078_s12 = inlined_call_operand.vmem [shape: f32[1,16], index: 12, kind: input, shape index: {}]   ;;  %s7079_s13 = inlined_call_operand.hbm [shape: f32[2,16], index: 13, kind: output, shape index: {}]  }
   0x1   :  { %v5678_v0 = vld [vmem:[%s7067_s1 + $0x40] sm:$0xff]   ;;  %v5680_v2 = vld [vmem:[%s7067_s1 + $0x48] sm:$0xff]   ;;  %v5682_v4 = vld [vmem:[%s7067_s1 + $0x50] sm:$0xff]  }
   0x2   :  { %v5679_v1 = vld [vmem:[%s7067_s1] sm:$0xff]   ;;  %4552 = vmatprep.subr.bf16.mxu0 %v5678_v0  ;;  %v5681_v3 = vld [vmem:[%s7067_s1 + $0x8] sm:$0xff]   ;;  %v5683_v5 = vld [vmem:[%s7067_s1 + $0x10] sm:$0xff]  }
   0x3   :  { %4553 = vmatpush3.bf16.msra.mxu0 %v5679_v1  ;;  %v5684_v6 = vld [vmem:[%s7067_s1 + $0x58] sm:$0xff]   ;;  %v5686_v8 = vld [vmem:[%s7067_s1 + $0x60] sm:$0xff]   ;;  %v5688_v10 = vld [vmem:[%s7067_s1 + $0x68] sm:$0xff]  }
   0x4   :  { %4554 = vmatprep.subr.bf16.mxu0 %v5680_v2  ;;  %v5685_v7 = vld [vmem:[%s7067_s1 + $0x18] sm:$0xff]   ;;  %v5687_v9 = vld [vmem:[%s7067_s1 + $0x20] sm:$0xff]   ;;  %v5689_v12 = vld [vmem:[%s7067_s1 + $0x28] sm:$0xff]  }
   0x5   :  { %v5696_v11 = vld [vmem:[%s7066_s0 + $0x4] ss:$8 sps:$4 sm:$0xff]   ;;  %v5690_v13 = vld [vmem:[%s7067_s1 + $0x70] sm:$0xff]   ;;  %v5692_v15 = vld [vmem:[%s7067_s1 + $0x78] sm:$0xff]  }
   0x6   :  { %302 = vmatprep.mubr.bf16.mxu0 %v5696_v11  ;;  %v5691_v14 = vld [vmem:[%s7067_s1 + $0x30] sm:$0xff]   ;;  %v5693_v16 = vld [vmem:[%s7067_s1 + $0x38] sm:$0xff]   ;;  %v5694_v17 = vld [vmem:[%s7066_s0] ss:$8 sps:$4 sm:$0xff]  }
   0x7   :  { %4555 = vmatpush3.bf16.msra.mxu0 %v5681_v3  ;;  %v5697_v18 = vld [vmem:[%s7066_s0 + $0x14] ss:$8 sps:$4 sm:$0xff]   ;;  %v5699_v19 = vld [vmem:[%s7066_s0 + $0x10] ss:$8 sps:$4 sm:$0xff]   ;;  %v5700_v20 = vld [vmem:[%s7066_s0 + $0x24] ss:$8 sps:$4 sm:$0xff]  }
   0x8   :  { %4556 = vmatprep.subr.bf16.mxu0 %v5682_v4  ;;  %v5702_v21 = vld [vmem:[%s7066_s0 + $0x20] ss:$8 sps:$4 sm:$0xff]   ;;  %v5703_v22 = vld [vmem:[%s7066_s0 + $0x34] ss:$8 sps:$4 sm:$0xff]   ;;  %v5705_v23 = vld [vmem:[%s7066_s0 + $0x30] ss:$8 sps:$4 sm:$0xff]  }
   0x9   :  { %v5706_v24 = vld [vmem:[%s7066_s0 + $0x44] ss:$8 sps:$4 sm:$0xff]   ;;  %v5708_v25 = vld [vmem:[%s7066_s0 + $0x40] ss:$8 sps:$4 sm:$0xff]   ;;  %v5709_v26 = vld [vmem:[%s7066_s0 + $0x54] ss:$8 sps:$4 sm:$0xff]  }
   0xa   :  { %v5711_v27 = vld [vmem:[%s7066_s0 + $0x50] ss:$8 sps:$4 sm:$0xff]   ;;  %v5712_v28 = vld [vmem:[%s7066_s0 + $0x64] ss:$8 sps:$4 sm:$0xff]   ;;  %v5714_v29 = vld [vmem:[%s7066_s0 + $0x60] ss:$8 sps:$4 sm:$0xff]  }
   0xb   :  { %4557 = vmatpush3.bf16.msra.mxu0 %v5683_v5  ;;  %v5715_v30 = vld [vmem:[%s7066_s0 + $0x74] ss:$8 sps:$4 sm:$0xff]   ;;  %v5717_v31 = vld [vmem:[%s7066_s0 + $0x70] ss:$8 sps:$4 sm:$0xff]  }
   0xc   :  { %4558 = vmatprep.subr.bf16.mxu0 %v5684_v6 }
   0xf   :  { %4559 = vmatpush3.bf16.msra.mxu0 %v5685_v7 }
  0x10   :  { %4560 = vmatprep.subr.bf16.mxu0 %v5686_v8 }
  0x13   :  { %4561 = vmatpush3.bf16.msra.mxu0 %v5687_v9 }
  0x14   :  { %4562 = vmatprep.subr.bf16.mxu0 %v5688_v10 }
  0x17   :  { %4563 = vmatpush3.bf16.msra.mxu0 %v5689_v12 }
  0x18   :  { %4564 = vmatprep.subr.bf16.mxu0 %v5690_v13 }
  0x1b   :  { %4565 = vmatpush3.bf16.msra.mxu0 %v5691_v14 }
  0x1c   :  { %4566 = vmatprep.subr.bf16.mxu0 %v5692_v15 }
  0x1f   :  { %4567 = vmatpush3.bf16.msra.mxu0 %v5693_v16 }
  0x22   :  { %303 = vmatmul.mubr.bf16.vlgmr.msra.gmra.mrb[0].mxu0 %v5694_v17 }
  0x23   :  { %310 = vmatprep.mubr.bf16.mxu0 %v5697_v18 }
  0x2a   :  { %311 = vmatmul.mubr.bf16.gmra.mrb[4].mxu0 %v5699_v19 }
  0x2b   :  { %318 = vmatprep.mubr.bf16.mxu0 %v5700_v20 }
  0x32   :  { %319 = vmatmul.mubr.bf16.gmra.mrb[8].mxu0 %v5702_v21 }
  0x33   :  { %326 = vmatprep.mubr.bf16.mxu0 %v5703_v22 }
  0x3a   :  { %327 = vmatmul.mubr.bf16.gmra.mrb[12].mxu0 %v5705_v23 }
  0x3b   :  { %334 = vmatprep.mubr.bf16.mxu0 %v5706_v24 }
  0x42   :  { %335 = vmatmul.mubr.bf16.gmra.mrb[16].mxu0 %v5708_v25 }
  0x43   :  { %342 = vmatprep.mubr.bf16.mxu0 %v5709_v26 }
  0x4a   :  { %343 = vmatmul.mubr.bf16.gmra.mrb[20].mxu0 %v5711_v27 }
  0x4b   :  { %350 = vmatprep.mubr.bf16.mxu0 %v5712_v28 }
  0x52   :  { %351 = vmatmul.mubr.bf16.gmra.mrb[24].mxu0 %v5714_v29 }
  0x53   :  { %358 = vmatprep.mubr.bf16.mxu0 %v5715_v30 }
  0x5a   :  { %359 = vmatmul.mubr.bf16.gmra.mrb[28].mxu0 %v5717_v31 }
  0x5b   :  { %18 = vsyncpa [#allocation3], 0  ;;  %vm368_vm0 = vcmask 261120   ;;  %v5718_v62 = vld [vmem:[%s7069_s3] sm:$0xff]   ;;  %v5720_v1 = vld [vmem:[%s7069_s3 + $0x18] sm:$0xff]   ;;  %vm5861_vm1 = vmmov 0  }
  0x5c   :  { %4942 = vmatprep.mubr.bf16.mxu1 %v5718_v62  ;;  %4998 = vmatprep.mubr.bf16.mxu0 %v5720_v1  ;;  %vm2763_vm2 = vcmask 523264   ;;  %vm2767_vm3 = vcmask 517120   ;;  %vm2827_vm4 = vcmask 1040384   ;;  %vm2823_vm5 = vcmask 146432  }
  0x5d   :  { %vm4162_vm6 = vcmask 123904  }
  0xf5   :  { %v4568_v32 = vpop.f32.mrb[0].mxu0 }
  0xf6   :  { %v4569_v33 = vpop.f32.mrb[1].mxu0 }
  0xf7   :  { %v6029_v34 = vadd.f32 %v4569_v33, %v4568_v32  ;;  %v4571_v35 = vpop.f32.mrb[2].mxu0 }
  0xf8   :  { %v4572_v36 = vpop.f32.mrb[3].mxu0 }
  0xf9   :  { %v408_v37 = vmul.f32 %v6029_v34, %v6029_v34  ;;  %v6033_v38 = vadd.f32 %v4572_v36, %v4571_v35  ;;  %v369_v39 = vsel %vm368_vm0, %v6029_v34, 0.0 }
  0xfb   :  { %v370_v40 = vsel %vm368_vm0, %v6033_v38, 0.0  ;;  %v409_v41 = vmul.f32 %v6033_v38, %v6033_v38  ;;  %v424_v43 = vsel %vm368_vm0, %v408_v37, 0.0 }
  0xfc   :  { %v371_v42 = vadd.f32 %v370_v40, %v369_v39 }
  0xfd   :  { %v425_v44 = vsel %vm368_vm0, %v409_v41, 0.0  ;;  %v4574_v45 = vpop.f32.mrb[4].mxu0 }
  0xfe   :  { %v426_v46 = vadd.f32 %v425_v44, %v424_v43  ;;  %v4575_v47 = vpop.f32.mrb[5].mxu0 }
  0xff   :  { %v6043_v48 = vadd.f32 %v4575_v47, %v4574_v45  ;;  %v4577_v49 = vpop.f32.mrb[6].mxu0 }
 0x100   :  { %v4578_v50 = vpop.f32.mrb[7].mxu0 }
 0x101   :  { %v372_v51 = vsel %vm368_vm0, %v6043_v48, 0.0  ;;  %v410_v52 = vmul.f32 %v6043_v48, %v6043_v48  ;;  %v6049_v53 = vadd.f32 %v4578_v50, %v4577_v49 }
 0x102   :  { %v373_v54 = vadd.f32 %v372_v51, %v371_v42 }
 0x103   :  { %v427_v55 = vsel %vm368_vm0, %v410_v52, 0.0  ;;  %v374_v56 = vsel %vm368_vm0, %v6049_v53, 0.0  ;;  %v411_v57 = vmul.f32 %v6049_v53, %v6049_v53 }
 0x104   :  { %v428_v58 = vadd.f32 %v427_v55, %v426_v46  ;;  %v375_v59 = vadd.f32 %v374_v56, %v373_v54 }
 0x105   :  { %v429_v60 = vsel %vm368_vm0, %v411_v57, 0.0  ;;  %v4580_v61 = vpop.f32.mrb[8].mxu0 }
 0x106   :  { %v430_v63 = vadd.f32 %v429_v60, %v428_v58  ;;  %v4581_v0 = vpop.f32.mrb[9].mxu0 }
 0x107   :  { %v6063_v2 = vadd.f32 %v4581_v0, %v4580_v61  ;;  %v4583_v3 = vpop.f32.mrb[10].mxu0 }
 0x108   :  { %v4584_v4 = vpop.f32.mrb[11].mxu0 }
 0x109   :  { %v376_v5 = vsel %vm368_vm0, %v6063_v2, 0.0  ;;  %v412_v6 = vmul.f32 %v6063_v2, %v6063_v2  ;;  %v6069_v7 = vadd.f32 %v4584_v4, %v4583_v3 }
 0x10a   :  { %v377_v8 = vadd.f32 %v376_v5, %v375_v59 }
 0x10b   :  { %v431_v9 = vsel %vm368_vm0, %v412_v6, 0.0  ;;  %v378_v10 = vsel %vm368_vm0, %v6069_v7, 0.0  ;;  %v413_v11 = vmul.f32 %v6069_v7, %v6069_v7 }
 0x10c   :  { %v432_v12 = vadd.f32 %v431_v9, %v430_v63  ;;  %v379_v13 = vadd.f32 %v378_v10, %v377_v8 }
 0x10d   :  { %v433_v14 = vsel %vm368_vm0, %v413_v11, 0.0  ;;  %v4586_v15 = vpop.f32.mrb[12].mxu0 }
 0x10e   :  { %v434_v16 = vadd.f32 %v433_v14, %v432_v12  ;;  %v4587_v17 = vpop.f32.mrb[13].mxu0 }
 0x10f   :  { %v6077_v18 = vadd.f32 %v4587_v17, %v4586_v15  ;;  %v4589_v19 = vpop.f32.mrb[14].mxu0 }
 0x110   :  { %v4590_v20 = vpop.f32.mrb[15].mxu0 }
 0x111   :  { %v380_v21 = vsel %vm368_vm0, %v6077_v18, 0.0  ;;  %v414_v22 = vmul.f32 %v6077_v18, %v6077_v18  ;;  %v6083_v23 = vadd.f32 %v4590_v20, %v4589_v19 }
 0x112   :  { %v381_v24 = vadd.f32 %v380_v21, %v379_v13 }
 0x113   :  { %v435_v25 = vsel %vm368_vm0, %v414_v22, 0.0  ;;  %v382_v26 = vsel %vm368_vm0, %v6083_v23, 0.0  ;;  %v415_v27 = vmul.f32 %v6083_v23, %v6083_v23 }
 0x114   :  { %v436_v28 = vadd.f32 %v435_v25, %v434_v16  ;;  %v383_v29 = vadd.f32 %v382_v26, %v381_v24 }
 0x115   :  { %v437_v30 = vsel %vm368_vm0, %v415_v27, 0.0  ;;  %v4592_v31 = vpop.f32.mrb[16].mxu0 }
 0x116   :  { %v438_v32 = vadd.f32 %v437_v30, %v436_v28  ;;  %v4593_v33 = vpop.f32.mrb[17].mxu0 }
 0x117   :  { %v6091_v35 = vadd.f32 %v4593_v33, %v4592_v31  ;;  %v4595_v36 = vpop.f32.mrb[18].mxu0 }
 0x118   :  { %v4596_v37 = vpop.f32.mrb[19].mxu0 }
 0x119   :  { %v384_v39 = vsel %vm368_vm0, %v6091_v35, 0.0  ;;  %v416_v40 = vmul.f32 %v6091_v35, %v6091_v35  ;;  %v6097_v41 = vadd.f32 %v4596_v37, %v4595_v36 }
 0x11a   :  { %v385_v42 = vadd.f32 %v384_v39, %v383_v29 }
 0x11b   :  { %v439_v43 = vsel %vm368_vm0, %v416_v40, 0.0  ;;  %v386_v44 = vsel %vm368_vm0, %v6097_v41, 0.0  ;;  %v417_v45 = vmul.f32 %v6097_v41, %v6097_v41 }
 0x11c   :  { %v440_v46 = vadd.f32 %v439_v43, %v438_v32  ;;  %v387_v47 = vadd.f32 %v386_v44, %v385_v42 }
 0x11d   :  { %v441_v49 = vsel %vm368_vm0, %v417_v45, 0.0  ;;  %v4598_v50 = vpop.f32.mrb[20].mxu0 }
 0x11e   :  { %v442_v51 = vadd.f32 %v441_v49, %v440_v46  ;;  %v4599_v52 = vpop.f32.mrb[21].mxu0 }
 0x11f   :  { %v6105_v54 = vadd.f32 %v4599_v52, %v4598_v50  ;;  %v4601_v55 = vpop.f32.mrb[22].mxu0 }
 0x120   :  { %v4602_v56 = vpop.f32.mrb[23].mxu0 }
 0x121   :  { %v388_v57 = vsel %vm368_vm0, %v6105_v54, 0.0  ;;  %v418_v58 = vmul.f32 %v6105_v54, %v6105_v54  ;;  %v6111_v59 = vadd.f32 %v4602_v56, %v4601_v55 }
 0x122   :  { %v389_v60 = vadd.f32 %v388_v57, %v387_v47 }
 0x123   :  { %v443_v61 = vsel %vm368_vm0, %v418_v58, 0.0  ;;  %v390_v62 = vsel %vm368_vm0, %v6111_v59, 0.0  ;;  %v419_v63 = vmul.f32 %v6111_v59, %v6111_v59 }
 0x124   :  { %v444_v0 = vadd.f32 %v443_v61, %v442_v51  ;;  %v391_v1 = vadd.f32 %v390_v62, %v389_v60  ;;  %v498_v61 = vlaneseq }
 0x125   :  { %v445_v3 = vsel %vm368_vm0, %v419_v63, 0.0  ;;  %v4604_v4 = vpop.f32.mrb[24].mxu0 }
 0x126   :  { %v446_v5 = vadd.f32 %v445_v3, %v444_v0  ;;  %v4605_v6 = vpop.f32.mrb[25].mxu0 }
 0x127   :  { %v6119_v8 = vadd.f32 %v4605_v6, %v4604_v4  ;;  %v4607_v9 = vpop.f32.mrb[26].mxu0 }
 0x128   :  { %v4608_v10 = vpop.f32.mrb[27].mxu0 }
 0x129   :  { %v392_v11 = vsel %vm368_vm0, %v6119_v8, 0.0  ;;  %v420_v12 = vmul.f32 %v6119_v8, %v6119_v8  ;;  %v6125_v13 = vadd.f32 %v4608_v10, %v4607_v9 }
 0x12a   :  { %v393_v14 = vadd.f32 %v392_v11, %v391_v1 }
 0x12b   :  { %v447_v15 = vsel %vm368_vm0, %v420_v12, 0.0  ;;  %v394_v16 = vsel %vm368_vm0, %v6125_v13, 0.0  ;;  %v421_v17 = vmul.f32 %v6125_v13, %v6125_v13 }
 0x12c   :  { %v448_v19 = vadd.f32 %v447_v15, %v446_v5  ;;  %v395_v20 = vadd.f32 %v394_v16, %v393_v14 }
 0x12d   :  { %v449_v21 = vsel %vm368_vm0, %v421_v17, 0.0  ;;  %v4610_v22 = vpop.f32.mrb[28].mxu0 }
 0x12e   :  { %v450_v24 = vadd.f32 %v449_v21, %v448_v19  ;;  %v4611_v25 = vpop.f32.mrb[29].mxu0 }
 0x12f   :  { %v6133_v26 = vadd.f32 %v4611_v25, %v4610_v22  ;;  %v4613_v27 = vpop.f32.mrb[30].mxu0 }
 0x130   :  { %v4614_v28 = vpop.f32.mrb[31].mxu0 }
 0x131   :  { %v396_v29 = vsel %vm368_vm0, %v6133_v26, 0.0  ;;  %v422_v30 = vmul.f32 %v6133_v26, %v6133_v26  ;;  %v6139_v31 = vadd.f32 %v4614_v28, %v4613_v27 }
 0x132   :  { %v397_v32 = vadd.f32 %v396_v29, %v395_v20 }
 0x133   :  { %v451_v33 = vsel %vm368_vm0, %v422_v30, 0.0  ;;  %v398_v36 = vsel %vm368_vm0, %v6139_v31, 0.0  ;;  %v423_v37 = vmul.f32 %v6139_v31, %v6139_v31 }
 0x134   :  { %v452_v39 = vadd.f32 %v451_v33, %v450_v24  ;;  %v399_v40 = vadd.f32 %v398_v36, %v397_v32 }
 0x135   :  { %v453_v42 = vsel %vm368_vm0, %v423_v37, 0.0 }
 0x136   :  { %v400_v43 = vrot.slane %v399_v40, 4  ;;  %v454_v44 = vadd.f32 %v453_v42, %v452_v39 }
 0x138   :  { %v401_v45 = vadd.f32 %v400_v43, %v399_v40  ;;  %v455_v46 = vrot.slane %v454_v44, 4 }
 0x13a   :  { %v402_v47 = vrot.slane %v401_v45, 2  ;;  %v456_v49 = vadd.f32 %v455_v46, %v454_v44 }
 0x13c   :  { %v403_v50 = vadd.f32 %v402_v47, %v401_v45  ;;  %v457_v51 = vrot.slane %v456_v49, 2 }
 0x13e   :  { %v404_v52 = vrot.slane %v403_v50, 1  ;;  %v458_v55 = vadd.f32 %v457_v51, %v456_v49 }
 0x140   :  { %v405_v56 = vadd.f32 %v404_v52, %v403_v50  ;;  %v459_v57 = vrot.slane %v458_v55, 1 }
 0x142   :  { %v407_v58 = vmul.f32 0.0078125, %v405_v56  ;;  %v460_v60 = vadd.f32 %v459_v57, %v458_v55 }
 0x144   :  { %v461_v62 = vmul.f32 0.0078125, %v460_v60  ;;  %v462_v63 = vmul.f32 %v407_v58, %v407_v58  ;;  %v464_v0 = vsub.f32 %v6029_v34, %v407_v58  ;;  %v465_v1 = vsub.f32 %v6033_v38, %v407_v58 }
 0x145   :  { %v466_v3 = vsub.f32 %v6043_v48, %v407_v58  ;;  %v467_v4 = vsub.f32 %v6049_v53, %v407_v58  ;;  %v468_v5 = vsub.f32 %v6063_v2, %v407_v58  ;;  %v469_v6 = vsub.f32 %v6069_v7, %v407_v58 }
 0x146   :  { %v463_v9 = vsub.f32 %v461_v62, %v462_v63  ;;  %v470_v10 = vsub.f32 %v6077_v18, %v407_v58  ;;  %v471_v11 = vsub.f32 %v6083_v23, %v407_v58  ;;  %v472_v12 = vsub.f32 %v6091_v35, %v407_v58 }
 0x147   :  { %v473_v14 = vsub.f32 %v6097_v41, %v407_v58  ;;  %v474_v34 = vsub.f32 %v6105_v54, %v407_v58  ;;  %v475_v38 = vsub.f32 %v6111_v59, %v407_v58  ;;  %v476_v48 = vsub.f32 %v6119_v8, %v407_v58  ;;  %v367_v41 = vld [vmem:[%s7068_s2] sm:$0x3] }
 0x148   :  { %v477_v53 = vsub.f32 %v6125_v13, %v407_v58  ;;  %v478_v2 = vsub.f32 %v6133_v26, %v407_v58  ;;  %v479_v7 = vsub.f32 %v6139_v31, %v407_v58  ;;  %v480_v15 = vadd.f32 1e-05, %v463_v9 }
 0x149   :  { %v499_v18 = vshrl.u32 %v498_v61, 7 }
 0x14a   :  { %5830 = vrsqrt.f32 %v480_v15 }
 0x14b   :  { %v6163_v23 = vsub.s32 0, %v499_v18  ;;  %v6165_v35 = vsub.s32 1, %v499_v18 }
 0x14d   :  { %v501_v59 = vrot.slane %v367_v41, %v6163_v23  ;;  %v521_v8 = vrot.slane %v367_v41, %v6165_v35 }
 0x154   :  { %v5831_v54 = vpop.eup %5830 }
 0x155   :  { %v482_v13 = vmul.f32 %v5831_v54, %v464_v0  ;;  %v483_v16 = vmul.f32 %v5831_v54, %v465_v1  ;;  %v484_v17 = vmul.f32 %v5831_v54, %v466_v3  ;;  %v485_v19 = vmul.f32 %v5831_v54, %v467_v4 }
 0x156   :  { %v486_v20 = vmul.f32 %v5831_v54, %v468_v5  ;;  %v487_v21 = vmul.f32 %v5831_v54, %v469_v6  ;;  %v488_v22 = vmul.f32 %v5831_v54, %v470_v10  ;;  %v489_v24 = vmul.f32 %v5831_v54, %v471_v11 }
 0x157   :  { %v490_v25 = vmul.f32 %v5831_v54, %v472_v12  ;;  %v491_v26 = vmul.f32 %v5831_v54, %v473_v14  ;;  %v492_v27 = vmul.f32 %v5831_v54, %v474_v34  ;;  %v493_v28 = vmul.f32 %v5831_v54, %v475_v38 }
 0x158   :  { %v494_v29 = vmul.f32 %v5831_v54, %v476_v48  ;;  %v495_v30 = vmul.f32 %v5831_v54, %v477_v53  ;;  %v496_v31 = vmul.f32 %v5831_v54, %v478_v2  ;;  %v497_v32 = vmul.f32 %v5831_v54, %v479_v7 }
 0x159   :  { %v502_v33 = vmul.f32 %v501_v59, %v482_v13  ;;  %v503_v36 = vmul.f32 %v501_v59, %v483_v16  ;;  %v504_v37 = vmul.f32 %v501_v59, %v484_v17  ;;  %v505_v39 = vmul.f32 %v501_v59, %v485_v19 }
 0x15a   :  { %v506_v40 = vmul.f32 %v501_v59, %v486_v20  ;;  %v507_v42 = vmul.f32 %v501_v59, %v487_v21  ;;  %v508_v43 = vmul.f32 %v501_v59, %v488_v22  ;;  %v509_v44 = vmul.f32 %v501_v59, %v489_v24 }
 0x15b   :  { %v510_v45 = vmul.f32 %v501_v59, %v490_v25  ;;  %v511_v46 = vmul.f32 %v501_v59, %v491_v26  ;;  %v512_v47 = vmul.f32 %v501_v59, %v492_v27  ;;  %v513_v49 = vmul.f32 %v501_v59, %v493_v28  ;;  %v5719_v27 = vld [vmem:[%s7069_s3 + $0x8] ss:$0 sps:$4 sm:$0x11]   ;;  %v5721_v28 = vld [vmem:[%s7069_s3 + $0x20] ss:$0 sps:$4 sm:$0x11]  }
 0x15c   :  { %v514_v50 = vmul.f32 %v501_v59, %v494_v29  ;;  %v515_v51 = vmul.f32 %v501_v59, %v495_v30  ;;  %v516_v52 = vmul.f32 %v501_v59, %v496_v31  ;;  %v517_v55 = vmul.f32 %v501_v59, %v497_v32  ;;  %v5722_v29 = vld [vmem:[%s7069_s3 + $0xc] sm:$0xff]   ;;  %v5723_v31 = vld [vmem:[%s7069_s3 + $0x14] ss:$0 sps:$4 sm:$0x11]  }
 0x15d   :  { %v522_v56 = vadd.f32 %v521_v8, %v502_v33  ;;  %v523_v57 = vadd.f32 %v521_v8, %v503_v36  ;;  %v524_v58 = vadd.f32 %v521_v8, %v504_v37  ;;  %v525_v60 = vadd.f32 %v521_v8, %v505_v39  ;;  %v5724_v30 = vld [vmem:[%s7069_s3 + $0x30] sm:$0xff]   ;;  %v5725_v32 = vld [vmem:[%s7069_s3 + $0x38] ss:$0 sps:$4 sm:$0x11]   ;;  %v5726_v33 = vld [vmem:[%s7069_s3 + $0x3c] sm:$0xff]  }
 0x15e   :  { %v526_v61 = vadd.f32 %v521_v8, %v506_v40  ;;  %v527_v62 = vadd.f32 %v521_v8, %v507_v42  ;;  %v528_v63 = vadd.f32 %v521_v8, %v508_v43  ;;  %v529_v0 = vadd.f32 %v521_v8, %v509_v44  ;;  %v5727_v36 = vld [vmem:[%s7069_s3 + $0x44] ss:$0 sps:$4 sm:$0x11]   ;;  %v5728_v37 = vld [vmem:[%s7069_s3 + $0x54] sm:$0xff]  }
 0x15f   :  { %v530_v1 = vadd.f32 %v521_v8, %v510_v45  ;;  %v531_v3 = vadd.f32 %v521_v8, %v511_v46  ;;  %v532_v4 = vadd.f32 %v521_v8, %v512_v47  ;;  %v533_v5 = vadd.f32 %v521_v8, %v513_v49  ;;  %v5729_v39 = vld [vmem:[%s7069_s3 + $0x5c] ss:$0 sps:$4 sm:$0x11]   ;;  %v5730_v40 = vld [vmem:[%s7069_s3 + $0x60] sm:$0xff]   ;;  %v5738_v42 = vld [vmem:[%s7070_s4 + $0x10] sm:$0xff]  }
 0x160   :  { %v534_v6 = vadd.f32 %v521_v8, %v514_v50  ;;  %v535_v9 = vadd.f32 %v521_v8, %v515_v51  ;;  %v536_v10 = vadd.f32 %v521_v8, %v516_v52  ;;  %v537_v11 = vadd.f32 %v521_v8, %v517_v55  ;;  %v5739_v43 = vld [vmem:[%s7070_s4 + $0x18] sm:$0xff]   ;;  %v6341_v44 = vld [vmem:[%s7070_s4] sm:$0xff]   ;;  %v5731_v45 = vld [vmem:[%s7069_s3 + $0x68] ss:$0 sps:$4 sm:$0x11]  }
 0x161   :  { %v538_v12 = vmax.f32 %v522_v56, 0.0  ;;  %v539_v14 = vmax.f32 %v523_v57, 0.0  ;;  %v540_v34 = vmax.f32 %v524_v58, 0.0  ;;  %v541_v38 = vmax.f32 %v525_v60, 0.0  ;;  %v5732_v46 = vld [vmem:[%s7069_s3 + $0x78] sm:$0xff]   ;;  %v5734_v49 = vld [vmem:[%s7069_s3 + $0x90] sm:$0xff]  }
 0x162   :  { %v542_v48 = vmax.f32 %v526_v61, 0.0  ;;  %v543_v53 = vmax.f32 %v527_v62, 0.0  ;;  %v544_v2 = vmax.f32 %v528_v63, 0.0  ;;  %v545_v7 = vmax.f32 %v529_v0, 0.0  ;;  %v5736_v51 = vld [vmem:[%s7069_s3 + $0x9c] sm:$0xff]  }
 0x163   :  { %v546_v15 = vmax.f32 %v530_v1, 0.0  ;;  %v547_v18 = vmax.f32 %v531_v3, 0.0  ;;  %v548_v41 = vmax.f32 %v532_v4, 0.0  ;;  %v549_v54 = vmax.f32 %v533_v5, 0.0 }
 0x164   :  { %v550_v59 = vmax.f32 %v534_v6, 0.0  ;;  %v551_v13 = vmax.f32 %v535_v9, 0.0  ;;  %v552_v16 = vmax.f32 %v536_v10, 0.0  ;;  %v553_v17 = vmax.f32 %v537_v11, 0.0 }
 0x165   :  { %v6172_v19 = vpack.c.bf16 %v539_v14, %v538_v12  ;;  %v6174_v20 = vpack.c.bf16 %v541_v38, %v540_v34  ;;  %v6176_v8 = vpack.c.bf16 %v543_v53, %v542_v48  ;;  %v6178_v21 = vpack.c.bf16 %v545_v7, %v544_v2  ;;  %v5733_v47 = vld [vmem:[%s7069_s3 + $0x80] ss:$0 sps:$4 sm:$0x11]   ;;  %v5735_v50 = vld [vmem:[%s7069_s3 + $0x98] ss:$0 sps:$4 sm:$0x11]  }
 0x166   :  { %v6180_v22 = vpack.c.bf16 %v547_v18, %v546_v15  ;;  %v6182_v24 = vpack.c.bf16 %v549_v54, %v548_v41  ;;  %v6184_v25 = vpack.c.bf16 %v551_v13, %v550_v59  ;;  %v6186_v26 = vpack.c.bf16 %v553_v17, %v552_v16  ;;  %v5737_v1 = vld [vmem:[%s7069_s3 + $0xa4] ss:$0 sps:$4 sm:$0x11]   ;;  %v5741_v48 = vld [vmem:[%s7070_s4 + $0x8] sm:$0xff]   ;;  %v5746_v41 = vld [vmem:[%s7070_s4 + $0x30] sm:$0xff]  }
 0x167   :  { %4926 = vmatprep.subr.bf16.mxu1 %v6172_v19  ;;  %4982 = vmatprep.subr.bf16.mxu0 %v6172_v19  ;;  %v5742_v53 = vld [vmem:[%s7070_s4 + $0x20] sm:$0xff]   ;;  %v5743_v7 = vld [vmem:[%s7070_s4 + $0x28] sm:$0xff]   ;;  %v5747_v59 = vld [vmem:[%s7070_s4 + $0x38] sm:$0xff]  }
 0x168   :  { %4927 = vmatpush3.bf16.msra.mxu1 %v6172_v19  ;;  %4983 = vmatpush3.bf16.msra.mxu0 %v6172_v19  ;;  %v5744_v15 = vld [vmem:[%s7069_s3 + $0x24] sm:$0xff]   ;;  %v5745_v54 = vld [vmem:[%s7069_s3 + $0x2c] ss:$0 sps:$4 sm:$0x11]  }
 0x169   :  { %4928 = vmatprep.subr.bf16.mxu1 %v6174_v20  ;;  %4984 = vmatprep.subr.bf16.mxu0 %v6174_v20  ;;  %v5748_v13 = vld [vmem:[%s7070_s4 + $0x40] sm:$0xff]  }
 0x16c   :  { %4929 = vmatpush3.bf16.msra.mxu1 %v6174_v20  ;;  %4985 = vmatpush3.bf16.msra.mxu0 %v6174_v20 }
 0x16d   :  { %4930 = vmatprep.subr.bf16.mxu1 %v6176_v8  ;;  %4986 = vmatprep.subr.bf16.mxu0 %v6176_v8 }
 0x170   :  { %4931 = vmatpush3.bf16.msra.mxu1 %v6176_v8  ;;  %4987 = vmatpush3.bf16.msra.mxu0 %v6176_v8 }
 0x171   :  { %4932 = vmatprep.subr.bf16.mxu1 %v6178_v21  ;;  %4988 = vmatprep.subr.bf16.mxu0 %v6178_v21 }
 0x174   :  { %4933 = vmatpush3.bf16.msra.mxu1 %v6178_v21  ;;  %4989 = vmatpush3.bf16.msra.mxu0 %v6178_v21 }
 0x175   :  { %4934 = vmatprep.subr.bf16.mxu1 %v6180_v22  ;;  %4990 = vmatprep.subr.bf16.mxu0 %v6180_v22 }
 0x178   :  { %4935 = vmatpush3.bf16.msra.mxu1 %v6180_v22  ;;  %4991 = vmatpush3.bf16.msra.mxu0 %v6180_v22 }
 0x179   :  { %4936 = vmatprep.subr.bf16.mxu1 %v6182_v24  ;;  %4992 = vmatprep.subr.bf16.mxu0 %v6182_v24 }
 0x17c   :  { %4937 = vmatpush3.bf16.msra.mxu1 %v6182_v24  ;;  %4993 = vmatpush3.bf16.msra.mxu0 %v6182_v24 }
 0x17d   :  { %4938 = vmatprep.subr.bf16.mxu1 %v6184_v25  ;;  %4994 = vmatprep.subr.bf16.mxu0 %v6184_v25 }
 0x180   :  { %4939 = vmatpush3.bf16.msra.mxu1 %v6184_v25  ;;  %4995 = vmatpush3.bf16.msra.mxu0 %v6184_v25 }
 0x181   :  { %4940 = vmatprep.subr.bf16.mxu1 %v6186_v26  ;;  %4996 = vmatprep.subr.bf16.mxu0 %v6186_v26 }
 0x184   :  { %4941 = vmatpush3.bf16.msra.mxu1 %v6186_v26  ;;  %4997 = vmatpush3.bf16.msra.mxu0 %v6186_v26 }
 0x185   :  { %4946 = vmatprep.subr.bf16.mxu1 %v6172_v19  ;;  %5038 = vmatprep.subr.bf16.mxu0 %v6172_v19 }
 0x187   :  { %4943 = vmatmul.mubr.bf16.vlgmr.msra.gmra.mrb[0].mxu1 %v5719_v27  ;;  %4999 = vmatmul.mubr.bf16.vlgmr.msra.gmra.mrb[32].mxu0 %v5721_v28 }
 0x188   :  { %4947 = vmatpush3.bf16.msra.mxu1 %v6172_v19  ;;  %5039 = vmatpush3.bf16.msra.mxu0 %v6172_v19 }
 0x189   :  { %4948 = vmatprep.subr.bf16.mxu1 %v6174_v20  ;;  %5040 = vmatprep.subr.bf16.mxu0 %v6174_v20 }
 0x18a   :  { %4962 = vmatprep.mubr.bf16.mxu1 %v5722_v29  ;;  %5054 = vmatprep.mubr.bf16.mxu0 %v5724_v30 }
 0x18c   :  { %4949 = vmatpush3.bf16.msra.mxu1 %v6174_v20  ;;  %5041 = vmatpush3.bf16.msra.mxu0 %v6174_v20 }
 0x18d   :  { %4950 = vmatprep.subr.bf16.mxu1 %v6176_v8  ;;  %5042 = vmatprep.subr.bf16.mxu0 %v6176_v8 }
 0x190   :  { %4951 = vmatpush3.bf16.msra.mxu1 %v6176_v8  ;;  %5043 = vmatpush3.bf16.msra.mxu0 %v6176_v8 }
 0x191   :  { %4952 = vmatprep.subr.bf16.mxu1 %v6178_v21  ;;  %5044 = vmatprep.subr.bf16.mxu0 %v6178_v21 }
 0x194   :  { %4953 = vmatpush3.bf16.msra.mxu1 %v6178_v21  ;;  %5045 = vmatpush3.bf16.msra.mxu0 %v6178_v21 }
 0x195   :  { %4954 = vmatprep.subr.bf16.mxu1 %v6180_v22  ;;  %5046 = vmatprep.subr.bf16.mxu0 %v6180_v22 }
 0x198   :  { %4955 = vmatpush3.bf16.msra.mxu1 %v6180_v22  ;;  %5047 = vmatpush3.bf16.msra.mxu0 %v6180_v22 }
 0x199   :  { %4956 = vmatprep.subr.bf16.mxu1 %v6182_v24  ;;  %5048 = vmatprep.subr.bf16.mxu0 %v6182_v24 }
 0x19c   :  { %4957 = vmatpush3.bf16.msra.mxu1 %v6182_v24  ;;  %5049 = vmatpush3.bf16.msra.mxu0 %v6182_v24 }
 0x19d   :  { %4958 = vmatprep.subr.bf16.mxu1 %v6184_v25  ;;  %5050 = vmatprep.subr.bf16.mxu0 %v6184_v25 }
 0x1a0   :  { %4959 = vmatpush3.bf16.msra.mxu1 %v6184_v25  ;;  %5051 = vmatpush3.bf16.msra.mxu0 %v6184_v25 }
 0x1a1   :  { %4960 = vmatprep.subr.bf16.mxu1 %v6186_v26  ;;  %5052 = vmatprep.subr.bf16.mxu0 %v6186_v26 }
 0x1a4   :  { %4961 = vmatpush3.bf16.msra.mxu1 %v6186_v26  ;;  %5053 = vmatpush3.bf16.msra.mxu0 %v6186_v26 }
 0x1a5   :  { %5066 = vmatprep.subr.bf16.mxu0 %v6172_v19  ;;  %4966 = vmatprep.subr.bf16.mxu1 %v5738_v42 }
 0x1a7   :  { %4963 = vmatmul.mubr.bf16.vlgmr.msra.gmra.mrb[4].mxu1 %v5723_v31  ;;  %5055 = vmatmul.mubr.bf16.vlgmr.msra.gmra.mrb[36].mxu0 %v5725_v32 }
 0x1a8   :  { %5067 = vmatpush3.bf16.msra.mxu0 %v6172_v19  ;;  %5082 = vmatprep.mubr.bf16.mxu0 %v5726_v33 }
 0x1a9   :  { %5068 = vmatprep.subr.bf16.mxu0 %v6174_v20  ;;  %4967 = vmatpush3.bf16.msra.mxu1 %v5738_v42 }
 0x1aa   :  { %4968 = vmatprep.subr.bf16.mxu1 %v5739_v43 }
 0x1ac   :  { %5069 = vmatpush3.bf16.msra.mxu0 %v6174_v20 }
 0x1ad   :  { %5070 = vmatprep.subr.bf16.mxu0 %v6176_v8  ;;  %4969 = vmatpush3.bf16.msra.mxu1 %v5739_v43 }
 0x1ae   :  { %4974 = vmatprep.subr.bf16.mxu1 %v6341_v44 }
 0x1b0   :  { %5071 = vmatpush3.bf16.msra.mxu0 %v6176_v8 }
 0x1b1   :  { %5072 = vmatprep.subr.bf16.mxu0 %v6178_v21 }
 0x1b4   :  { %5073 = vmatpush3.bf16.msra.mxu0 %v6178_v21 }
 0x1b5   :  { %5074 = vmatprep.subr.bf16.mxu0 %v6180_v22 }
 0x1b8   :  { %5075 = vmatpush3.bf16.msra.mxu0 %v6180_v22 }
 0x1b9   :  { %5076 = vmatprep.subr.bf16.mxu0 %v6182_v24 }
 0x1bc   :  { %5077 = vmatpush3.bf16.msra.mxu0 %v6182_v24 }
 0x1bd   :  { %5078 = vmatprep.subr.bf16.mxu0 %v6184_v25 }
 0x1c0   :  { %5079 = vmatpush3.bf16.msra.mxu0 %v6184_v25 }
 0x1c1   :  { %5080 = vmatprep.subr.bf16.mxu0 %v6186_v26 }
 0x1c4   :  { %5081 = vmatpush3.bf16.msra.mxu0 %v6186_v26 }
 0x1c5   :  { %5122 = vmatprep.subr.bf16.mxu0 %v6172_v19 }
 0x1c7   :  { %5083 = vmatmul.mubr.bf16.vlgmr.msra.gmra.mrb[40].mxu0 %v5727_v36 }
 0x1c8   :  { %5123 = vmatpush3.bf16.msra.mxu0 %v6172_v19  ;;  %5138 = vmatprep.mubr.bf16.mxu0 %v5728_v37 }
 0x1c9   :  { %5124 = vmatprep.subr.bf16.mxu0 %v6174_v20 }
 0x1cc   :  { %5125 = vmatpush3.bf16.msra.mxu0 %v6174_v20 }
 0x1cd   :  { %5126 = vmatprep.subr.bf16.mxu0 %v6176_v8 }
 0x1d0   :  { %5127 = vmatpush3.bf16.msra.mxu0 %v6176_v8 }
 0x1d1   :  { %5128 = vmatprep.subr.bf16.mxu0 %v6178_v21 }
 0x1d4   :  { %5129 = vmatpush3.bf16.msra.mxu0 %v6178_v21 }
 0x1d5   :  { %5130 = vmatprep.subr.bf16.mxu0 %v6180_v22 }
 0x1d8   :  { %5131 = vmatpush3.bf16.msra.mxu0 %v6180_v22 }
 0x1d9   :  { %5132 = vmatprep.subr.bf16.mxu0 %v6182_v24 }
 0x1dc   :  { %5133 = vmatpush3.bf16.msra.mxu0 %v6182_v24 }
 0x1dd   :  { %5134 = vmatprep.subr.bf16.mxu0 %v6184_v25 }
 0x1e0   :  { %5135 = vmatpush3.bf16.msra.mxu0 %v6184_v25 }
 0x1e1   :  { %5136 = vmatprep.subr.bf16.mxu0 %v6186_v26 }
 0x1e4   :  { %5137 = vmatpush3.bf16.msra.mxu0 %v6186_v26 }
 0x1e5   :  { %5150 = vmatprep.subr.bf16.mxu0 %v6172_v19 }
 0x1e7   :  { %5139 = vmatmul.mubr.bf16.vlgmr.msra.gmra.mrb[44].mxu0 %v5729_v39 }
 0x1e8   :  { %5151 = vmatpush3.bf16.msra.mxu0 %v6172_v19  ;;  %5166 = vmatprep.mubr.bf16.mxu0 %v5730_v40 }
 0x1e9   :  { %5152 = vmatprep.subr.bf16.mxu0 %v6174_v20 }
 0x1ec   :  { %5153 = vmatpush3.bf16.msra.mxu0 %v6174_v20 }
 0x1ed   :  { %5154 = vmatprep.subr.bf16.mxu0 %v6176_v8 }
 0x1f0   :  { %5155 = vmatpush3.bf16.msra.mxu0 %v6176_v8 }
 0x1f1   :  { %5156 = vmatprep.subr.bf16.mxu0 %v6178_v21 }
 0x1f4   :  { %5157 = vmatpush3.bf16.msra.mxu0 %v6178_v21 }
 0x1f5   :  { %5158 = vmatprep.subr.bf16.mxu0 %v6180_v22 }
 0x1f8   :  { %5159 = vmatpush3.bf16.msra.mxu0 %v6180_v22 }
 0x1f9   :  { %5160 = vmatprep.subr.bf16.mxu0 %v6182_v24 }
 0x1fc   :  { %5161 = vmatpush3.bf16.msra.mxu0 %v6182_v24 }
 0x1fd   :  { %5162 = vmatprep.subr.bf16.mxu0 %v6184_v25 }
 0x200   :  { %5163 = vmatpush3.bf16.msra.mxu0 %v6184_v25 }
 0x201   :  { %5164 = vmatprep.subr.bf16.mxu0 %v6186_v26 }
 0x204   :  { %5165 = vmatpush3.bf16.msra.mxu0 %v6186_v26 }
 0x205   :  { %5206 = vmatprep.subr.bf16.mxu0 %v6172_v19 }
 0x207   :  { %5167 = vmatmul.mubr.bf16.vlgmr.msra.gmra.mrb[48].mxu0 %v5731_v45  ;;  %v5749_v45 = vld [vmem:[%s7070_s4 + $0x48] sm:$0xff]  }
 0x208   :  { %5207 = vmatpush3.bf16.msra.mxu0 %v6172_v19  ;;  %5222 = vmatprep.mubr.bf16.mxu0 %v5732_v46  ;;  %v5750_v46 = vld [vmem:[%s7070_s4 + $0x50] sm:$0xff]  }
 0x209   :  { %5208 = vmatprep.subr.bf16.mxu0 %v6174_v20 }
 0x20c   :  { %5209 = vmatpush3.bf16.msra.mxu0 %v6174_v20 }
 0x20d   :  { %5210 = vmatprep.subr.bf16.mxu0 %v6176_v8 }
 0x210   :  { %5211 = vmatpush3.bf16.msra.mxu0 %v6176_v8 }
 0x211   :  { %5212 = vmatprep.subr.bf16.mxu0 %v6178_v21 }
 0x214   :  { %5213 = vmatpush3.bf16.msra.mxu0 %v6178_v21 }
 0x215   :  { %5214 = vmatprep.subr.bf16.mxu0 %v6180_v22 }
 0x218   :  { %5215 = vmatpush3.bf16.msra.mxu0 %v6180_v22 }
 0x219   :  { %5216 = vmatprep.subr.bf16.mxu0 %v6182_v24 }
 0x21c   :  { %5217 = vmatpush3.bf16.msra.mxu0 %v6182_v24 }
 0x21d   :  { %5218 = vmatprep.subr.bf16.mxu0 %v6184_v25 }
 0x220   :  { %5219 = vmatpush3.bf16.msra.mxu0 %v6184_v25 }
 0x221   :  { %5220 = vmatprep.subr.bf16.mxu0 %v6186_v26 }
 0x224   :  { %5221 = vmatpush3.bf16.msra.mxu0 %v6186_v26 }
 0x225   :  { %5262 = vmatprep.subr.bf16.mxu0 %v6172_v19 }
 0x227   :  { %5223 = vmatmul.mubr.bf16.vlgmr.msra.gmra.mrb[52].mxu0 %v5733_v47 }
 0x228   :  { %5263 = vmatpush3.bf16.msra.mxu0 %v6172_v19  ;;  %5278 = vmatprep.mubr.bf16.mxu0 %v5734_v49  ;;  %v5751_v49 = vld [vmem:[%s7070_s4 + $0x58] sm:$0xff]  }
 0x229   :  { %5264 = vmatprep.subr.bf16.mxu0 %v6174_v20 }
 0x22c   :  { %5265 = vmatpush3.bf16.msra.mxu0 %v6174_v20 }
 0x22d   :  { %5266 = vmatprep.subr.bf16.mxu0 %v6176_v8 }
 0x230   :  { %5267 = vmatpush3.bf16.msra.mxu0 %v6176_v8 }
 0x231   :  { %5268 = vmatprep.subr.bf16.mxu0 %v6178_v21 }
 0x234   :  { %5269 = vmatpush3.bf16.msra.mxu0 %v6178_v21 }
 0x235   :  { %5270 = vmatprep.subr.bf16.mxu0 %v6180_v22 }
 0x238   :  { %5271 = vmatpush3.bf16.msra.mxu0 %v6180_v22 }
 0x239   :  { %5272 = vmatprep.subr.bf16.mxu0 %v6182_v24 }
 0x23c   :  { %5273 = vmatpush3.bf16.msra.mxu0 %v6182_v24 }
 0x23d   :  { %5274 = vmatprep.subr.bf16.mxu0 %v6184_v25 }
 0x240   :  { %5275 = vmatpush3.bf16.msra.mxu0 %v6184_v25 }
 0x241   :  { %5276 = vmatprep.subr.bf16.mxu0 %v6186_v26 }
 0x244   :  { %5277 = vmatpush3.bf16.msra.mxu0 %v6186_v26 }
 0x245   :  { %5290 = vmatprep.subr.bf16.mxu0 %v6172_v19 }
 0x247   :  { %5279 = vmatmul.mubr.bf16.vlgmr.msra.gmra.mrb[56].mxu0 %v5735_v50  ;;  %v5752_v50 = vld [vmem:[%s7069_s3 + $0x48] sm:$0xff]  }
 0x248   :  { %5291 = vmatpush3.bf16.msra.mxu0 %v6172_v19  ;;  %5306 = vmatprep.mubr.bf16.mxu0 %v5736_v51 }
 0x249   :  { %5292 = vmatprep.subr.bf16.mxu0 %v6174_v20 }
 0x24c   :  { %5293 = vmatpush3.bf16.msra.mxu0 %v6174_v20 }
 0x24d   :  { %5294 = vmatprep.subr.bf16.mxu0 %v6176_v8 }
 0x250   :  { %5295 = vmatpush3.bf16.msra.mxu0 %v6176_v8 }
 0x251   :  { %5296 = vmatprep.subr.bf16.mxu0 %v6178_v21 }
 0x254   :  { %5297 = vmatpush3.bf16.msra.mxu0 %v6178_v21 }
 0x255   :  { %5298 = vmatprep.subr.bf16.mxu0 %v6180_v22 }
 0x258   :  { %5299 = vmatpush3.bf16.msra.mxu0 %v6180_v22 }
 0x259   :  { %5300 = vmatprep.subr.bf16.mxu0 %v6182_v24 }
 0x25a   :  { %v4944_v52 = vpop.f32.mrb[0].mxu1  ;;  %v6406_v55 = vpop.f32.mrb[32].mxu0 }
 0x25b   :  { %v609_v56 = vpop.f32.mrb[1].mxu1  ;;  %v878_v57 = vpop.f32.mrb[33].mxu0  ;;  %v624_v2 = vpack.c.bf16 %v4944_v52, %v4944_v52  ;;  %v893_v18 = vpack.c.bf16 %v6406_v55, %v6406_v55  ;;  %v5754_v52 = vld [vmem:[%s7070_s4 + $0x60] sm:$0xff]   ;;  %v5753_v55 = vld [vmem:[%s7069_s3 + $0x50] ss:$0 sps:$4 sm:$0x11]  }
 0x25c   :  { %v4945_v58 = vpop.f32.mrb[2].mxu1  ;;  %5301 = vmatpush3.bf16.msra.mxu0 %v6182_v24  ;;  %v5001_v60 = vpop.f32.mrb[34].mxu0 }
 0x25d   :  { %v612_v61 = vpop.f32.mrb[3].mxu1  ;;  %5302 = vmatprep.subr.bf16.mxu0 %v6184_v25  ;;  %v881_v62 = vpop.f32.mrb[35].mxu0 }
 0x25e   :  { %v623_v63 = vpack.c.bf16 %v612_v61, %v609_v56  ;;  %v892_v0 = vpack.c.bf16 %v881_v62, %v878_v57  ;;  %v5755_v56 = vld [vmem:[%s7070_s4 + $0x68] sm:$0xff]   ;;  %v5756_v57 = vld [vmem:[%s7070_s4 + $0x70] sm:$0xff]  }
 0x260   :  { %5303 = vmatpush3.bf16.msra.mxu0 %v6184_v25 }
 0x261   :  { %5304 = vmatprep.subr.bf16.mxu0 %v6186_v26 }
 0x264   :  { %5305 = vmatpush3.bf16.msra.mxu0 %v6186_v26 }
 0x265   :  { %5346 = vmatprep.subr.bf16.mxu0 %v6172_v19 }
 0x267   :  { %5307 = vmatmul.mubr.bf16.vlgmr.msra.gmra.mrb[60].mxu0 %v5737_v1 }
 0x268   :  { %5347 = vmatpush3.bf16.msra.mxu0 %v6172_v19 }
 0x269   :  { %5348 = vmatprep.subr.bf16.mxu0 %v6174_v20 }
 0x26c   :  { %5349 = vmatpush3.bf16.msra.mxu0 %v6174_v20 }
 0x26d   :  { %5350 = vmatprep.subr.bf16.mxu0 %v6176_v8 }
 0x270   :  { %5351 = vmatpush3.bf16.msra.mxu0 %v6176_v8 }
 0x271   :  { %5352 = vmatprep.subr.bf16.mxu0 %v6178_v21 }
 0x274   :  { %5353 = vmatpush3.bf16.msra.mxu0 %v6178_v21 }
 0x275   :  { %5354 = vmatprep.subr.bf16.mxu0 %v6180_v22 }
 0x278   :  { %5355 = vmatpush3.bf16.msra.mxu0 %v6180_v22 }
 0x279   :  { %5356 = vmatprep.subr.bf16.mxu0 %v6182_v24 }
 0x27a   :  { %v4964_v3 = vpop.f32.mrb[4].mxu1  ;;  %v6427_v4 = vpop.f32.mrb[36].mxu0 }
 0x27b   :  { %v677_v5 = vpop.f32.mrb[5].mxu1  ;;  %v6429_v6 = vpop.f32.mrb[37].mxu0  ;;  %v692_v38 = vpack.c.bf16 %v4964_v3, %v4964_v3  ;;  %v1169_v47 = vpack.c.bf16 %v6427_v4, %v6427_v4 }
 0x27c   :  { %v4965_v9 = vpop.f32.mrb[6].mxu1  ;;  %5357 = vmatpush3.bf16.msra.mxu0 %v6182_v24  ;;  %v5057_v10 = vpop.f32.mrb[38].mxu0 }
 0x27d   :  { %v680_v11 = vpop.f32.mrb[7].mxu1  ;;  %5358 = vmatprep.subr.bf16.mxu0 %v6184_v25  ;;  %v6433_v12 = vpop.f32.mrb[39].mxu0  ;;  %v5757_v9 = vld [vmem:[%s7070_s4 + $0x78] sm:$0xff]   ;;  %v5758_v10 = vld [vmem:[%s7070_s4 + $0x80] sm:$0xff]  }
 0x27e   :  { %v691_v14 = vpack.c.bf16 %v680_v11, %v677_v5  ;;  %v1168_v34 = vpack.c.bf16 %v6433_v12, %v6429_v6  ;;  %v5759_v12 = vld [vmem:[%s7070_s4 + $0x88] sm:$0xff]  }
 0x280   :  { %4970 = vmatprep.mubr.msk.bf16.mxu1 %vm368_vm0, %v691_v14  ;;  %5359 = vmatpush3.bf16.msra.mxu0 %v6184_v25  ;;  %v5760_v14 = vld [vmem:[%s7069_s3 + $0x6c] sm:$0xff]  }
 0x281   :  { %4971 = vmatmul.mubr.msk.bf16.vlgmr.msra.gmra.mrb[8].mxu1 %vm368_vm0, %v692_v38  ;;  %5360 = vmatprep.subr.bf16.mxu0 %v6186_v26  ;;  %v5762_v38 = vld [vmem:[%s7070_s4 + $0x90] sm:$0xff]  }
 0x282   :  { %4975 = vmatpush3.bf16.msra.mxu1 %v6341_v44  ;;  %4978 = vmatprep.mubr.msk.bf16.mxu1 %vm368_vm0, %v623_v63 }
 0x283   :  { %4976 = vmatprep.subr.bf16.mxu1 %v5741_v48 }
 0x284   :  { %5361 = vmatpush3.bf16.msra.mxu0 %v6186_v26 }
 0x286   :  { %4977 = vmatpush3.bf16.msra.mxu1 %v5741_v48  ;;  %v5761_v48 = vld [vmem:[%s7069_s3 + $0x74] ss:$0 sps:$4 sm:$0x11]  }
 0x287   :  { %5002 = vmatprep.subr.bf16.mxu1 %v5742_v53 }
 0x28d   :  { %4979 = vmatmul.mubr.msk.bf16.vlgmr.msra.gmra.mrb[8].mxu1 %vm368_vm0, %v624_v2  ;;  %v5764_v2 = vld [vmem:[%s7070_s4 + $0xa0] sm:$0xff]  }
 0x28e   :  { %5003 = vmatpush3.bf16.msra.mxu1 %v5742_v53  ;;  %5006 = vmatprep.mubr.msk.bf16.mxu1 %vm368_vm0, %v892_v0  ;;  %v5763_v53 = vld [vmem:[%s7070_s4 + $0x98] sm:$0xff]  }
 0x28f   :  { %5004 = vmatprep.subr.bf16.mxu1 %v5743_v7 }
 0x292   :  { %5005 = vmatpush3.bf16.msra.mxu1 %v5743_v7 }
 0x293   :  { %5010 = vmatprep.subr.bf16.mxu1 %v6172_v19 }
 0x299   :  { %5007 = vmatmul.mubr.msk.bf16.vlgmr.msra.gmra.mrb[8].mxu1 %vm368_vm0, %v893_v18 }
 0x29a   :  { %5011 = vmatpush3.bf16.msra.mxu1 %v6172_v19  ;;  %5026 = vmatprep.mubr.bf16.mxu1 %v5744_v15  ;;  %v5084_v16 = vpop.f32.mrb[40].mxu0 }
 0x29b   :  { %5012 = vmatprep.subr.bf16.mxu1 %v6174_v20  ;;  %v1292_v17 = vpop.f32.mrb[41].mxu0  ;;  %v1307_v51 = vpack.c.bf16 %v5084_v16, %v5084_v16 }
 0x29c   :  { %v5085_v27 = vpop.f32.mrb[42].mxu0 }
 0x29d   :  { %v1295_v28 = vpop.f32.mrb[43].mxu0 }
 0x29e   :  { %5013 = vmatpush3.bf16.msra.mxu1 %v6174_v20  ;;  %v1306_v29 = vpack.c.bf16 %v1295_v28, %v1292_v17 }
 0x29f   :  { %5014 = vmatprep.subr.bf16.mxu1 %v6176_v8 }
 0x2a2   :  { %5015 = vmatpush3.bf16.msra.mxu1 %v6176_v8 }
 0x2a3   :  { %5016 = vmatprep.subr.bf16.mxu1 %v6178_v21 }
 0x2a6   :  { %5017 = vmatpush3.bf16.msra.mxu1 %v6178_v21 }
 0x2a7   :  { %5018 = vmatprep.subr.bf16.mxu1 %v6180_v22 }
 0x2aa   :  { %5019 = vmatpush3.bf16.msra.mxu1 %v6180_v22 }
 0x2ab   :  { %5020 = vmatprep.subr.bf16.mxu1 %v6182_v24 }
 0x2ae   :  { %5021 = vmatpush3.bf16.msra.mxu1 %v6182_v24 }
 0x2af   :  { %5022 = vmatprep.subr.bf16.mxu1 %v6184_v25 }
 0x2b2   :  { %5023 = vmatpush3.bf16.msra.mxu1 %v6184_v25 }
 0x2b3   :  { %5024 = vmatprep.subr.bf16.mxu1 %v6186_v26 }
 0x2b6   :  { %5025 = vmatpush3.bf16.msra.mxu1 %v6186_v26 }
 0x2b7   :  { %5030 = vmatprep.subr.bf16.mxu1 %v5746_v41 }
 0x2b9   :  { %5027 = vmatmul.mubr.bf16.vlgmr.msra.gmra.mrb[12].mxu1 %v5745_v54 }
 0x2ba   :  { %5031 = vmatpush3.bf16.msra.mxu1 %v5746_v41  ;;  %v6489_v30 = vpop.f32.mrb[44].mxu0 }
 0x2bb   :  { %5032 = vmatprep.subr.bf16.mxu1 %v5747_v59  ;;  %v6491_v31 = vpop.f32.mrb[45].mxu0  ;;  %v1583_v11 = vpack.c.bf16 %v6489_v30, %v6489_v30 }
 0x2bc   :  { %v5141_v32 = vpop.f32.mrb[46].mxu0 }
 0x2bd   :  { %v6493_v33 = vpop.f32.mrb[47].mxu0 }
 0x2be   :  { %5033 = vmatpush3.bf16.msra.mxu1 %v5747_v59  ;;  %v1582_v36 = vpack.c.bf16 %v6493_v33, %v6491_v31 }
 0x2bf   :  { %5058 = vmatprep.subr.bf16.mxu1 %v5748_v13 }
 0x2da   :  { %v5168_v58 = vpop.f32.mrb[48].mxu0 }
 0x2db   :  { %v1706_v60 = vpop.f32.mrb[49].mxu0 }
 0x2dc   :  { %v5169_v61 = vpop.f32.mrb[50].mxu0 }
 0x2dd   :  { %v1709_v62 = vpop.f32.mrb[51].mxu0 }
 0x2de   :  { %v1720_v63 = vpack.c.bf16 %v1709_v62, %v1706_v60  ;;  %v5771_v62 = vld [vmem:[%s7070_s4 + $0xc8] sm:$0xff]  }
 0x2fa   :  { %v5224_v7 = vpop.f32.mrb[52].mxu0 }
 0x2fb   :  { %v1982_v15 = vpop.f32.mrb[53].mxu0 }
 0x2fc   :  { %v5225_v18 = vpop.f32.mrb[54].mxu0 }
 0x2fd   :  { %v1985_v41 = vpop.f32.mrb[55].mxu0 }
 0x2fe   :  { %v1996_v54 = vpack.c.bf16 %v1985_v41, %v1982_v15 }
 0x31a   :  { %v6599_v59 = vpop.f32.mrb[56].mxu0 }
 0x38c   :  { %v5028_v37 = vpop.f32.mrb[12].mxu1 }
 0x38d   :  { %v1016_v39 = vpop.f32.mrb[13].mxu1  ;;  %v1031_v44 = vpack.c.bf16 %v5028_v37, %v5028_v37  ;;  %v5766_v37 = vld [vmem:[%s7069_s3 + $0x84] sm:$0xff]  }
 0x38e   :  { %v5029_v40 = vpop.f32.mrb[14].mxu1 }
 0x38f   :  { %v1019_v42 = vpop.f32.mrb[15].mxu1  ;;  %v5768_v40 = vld [vmem:[%s7070_s4 + $0xb0] sm:$0xff]  }
 0x390   :  { %v1030_v43 = vpack.c.bf16 %v1019_v42, %v1016_v39  ;;  %v1997_v39 = vpack.c.bf16 %v5224_v7, %v5224_v7  ;;  %v5767_v42 = vld [vmem:[%s7069_s3 + $0x8c] ss:$0 sps:$4 sm:$0x11]  }
 0x392   :  { %5034 = vmatprep.mubr.msk.bf16.mxu1 %vm368_vm0, %v1030_v43  ;;  %v5769_v43 = vld [vmem:[%s7070_s4 + $0xb8] sm:$0xff]  }
 0x393   :  { %5035 = vmatmul.mubr.msk.bf16.vlgmr.msra.gmra.mrb[8].mxu1 %vm368_vm0, %v1031_v44  ;;  %v5770_v44 = vld [vmem:[%s7070_s4 + $0xc0] sm:$0xff]  }
 0x394   :  { %5059 = vmatpush3.bf16.msra.mxu1 %v5748_v13  ;;  %5062 = vmatprep.mubr.msk.bf16.mxu1 %vm368_vm0, %v1168_v34  ;;  %v1721_v34 = vpack.c.bf16 %v5168_v58, %v5168_v58  ;;  %v6601_v13 = vpop.f32.mrb[57].mxu0 }
 0x395   :  { %5060 = vmatprep.subr.bf16.mxu1 %v5749_v45  ;;  %v5281_v16 = vpop.f32.mrb[58].mxu0 }
 0x396   :  { %v6603_v17 = vpop.f32.mrb[59].mxu0 }
 0x397   :  { %v2272_v27 = vpack.c.bf16 %v6603_v17, %v6601_v13 }
 0x398   :  { %5061 = vmatpush3.bf16.msra.mxu1 %v5749_v45  ;;  %v5308_v45 = vpop.f32.mrb[60].mxu0 }
 0x399   :  { %5086 = vmatprep.subr.bf16.mxu1 %v5750_v46 }
 0x39f   :  { %5063 = vmatmul.mubr.msk.bf16.vlgmr.msra.gmra.mrb[8].mxu1 %vm368_vm0, %v1169_v47 }
 0x3a0   :  { %5087 = vmatpush3.bf16.msra.mxu1 %v5750_v46  ;;  %5090 = vmatprep.mubr.msk.bf16.mxu1 %vm368_vm0, %v1306_v29  ;;  %v2396_v46 = vpop.f32.mrb[61].mxu0 }
 0x3a1   :  { %5088 = vmatprep.subr.bf16.mxu1 %v5751_v49  ;;  %v5309_v47 = vpop.f32.mrb[62].mxu0 }
 0x3a4   :  { %5089 = vmatpush3.bf16.msra.mxu1 %v5751_v49  ;;  %v2399_v49 = vpop.f32.mrb[63].mxu0 }
 0x3a5   :  { %5094 = vmatprep.subr.bf16.mxu1 %v6172_v19 }
 0x3ab   :  { %5091 = vmatmul.mubr.msk.bf16.vlgmr.msra.gmra.mrb[8].mxu1 %vm368_vm0, %v1307_v51  ;;  %v5776_v51 = vld [vmem:[%s7069_s3 + $0xb4] sm:$0xff]  }
 0x3ac   :  { %5095 = vmatpush3.bf16.msra.mxu1 %v6172_v19  ;;  %5110 = vmatprep.mubr.bf16.mxu1 %v5752_v50  ;;  %v2410_v50 = vpack.c.bf16 %v2399_v49, %v2396_v46 }
 0x3ad   :  { %5096 = vmatprep.subr.bf16.mxu1 %v6174_v20  ;;  %5362 = vmatprep.mubr.bf16.mxu0 %v5776_v51 }
 0x3b0   :  { %5097 = vmatpush3.bf16.msra.mxu1 %v6174_v20 }
 0x3b1   :  { %5098 = vmatprep.subr.bf16.mxu1 %v6176_v8 }
 0x3b4   :  { %5099 = vmatpush3.bf16.msra.mxu1 %v6176_v8 }
 0x3b5   :  { %5100 = vmatprep.subr.bf16.mxu1 %v6178_v21 }
 0x3b8   :  { %5101 = vmatpush3.bf16.msra.mxu1 %v6178_v21 }
 0x3b9   :  { %5102 = vmatprep.subr.bf16.mxu1 %v6180_v22 }
 0x3bc   :  { %5103 = vmatpush3.bf16.msra.mxu1 %v6180_v22 }
 0x3bd   :  { %5104 = vmatprep.subr.bf16.mxu1 %v6182_v24 }
 0x3c0   :  { %5105 = vmatpush3.bf16.msra.mxu1 %v6182_v24 }
 0x3c1   :  { %5106 = vmatprep.subr.bf16.mxu1 %v6184_v25 }
 0x3c4   :  { %5107 = vmatpush3.bf16.msra.mxu1 %v6184_v25 }
 0x3c5   :  { %5108 = vmatprep.subr.bf16.mxu1 %v6186_v26 }
 0x3c8   :  { %5109 = vmatpush3.bf16.msra.mxu1 %v6186_v26 }
 0x3c9   :  { %5114 = vmatprep.subr.bf16.mxu1 %v5754_v52 }
 0x3cb   :  { %5111 = vmatmul.mubr.bf16.vlgmr.msra.gmra.mrb[16].mxu1 %v5753_v55 }
 0x3cc   :  { %5115 = vmatpush3.bf16.msra.mxu1 %v5754_v52  ;;  %v5777_v52 = vld [vmem:[%s7069_s3 + $0xbc] ss:$0 sps:$4 sm:$0x11]  }
 0x3cd   :  { %5116 = vmatprep.subr.bf16.mxu1 %v5755_v56  ;;  %5363 = vmatmul.mubr.bf16.vlgmr.msra.gmra.mrb[64].mxu0 %v5777_v52 }
 0x3d0   :  { %5117 = vmatpush3.bf16.msra.mxu1 %v5755_v56 }
 0x3d1   :  { %5142 = vmatprep.subr.bf16.mxu1 %v5756_v57 }
 0x49e   :  { %v5112_v0 = vpop.f32.mrb[16].mxu1 }
 0x49f   :  { %v1430_v1 = vpop.f32.mrb[17].mxu1  ;;  %v1445_v6 = vpack.c.bf16 %v5112_v0, %v5112_v0  ;;  %v2273_v0 = vpack.c.bf16 %v6599_v59, %v6599_v59 }
 0x4a0   :  { %v5113_v3 = vpop.f32.mrb[18].mxu1 }
 0x4a1   :  { %v1433_v4 = vpop.f32.mrb[19].mxu1  ;;  %v5774_v3 = vld [vmem:[%s7069_s3 + $0xa8] sm:$0xff]  }
 0x4a2   :  { %v1444_v5 = vpack.c.bf16 %v1433_v4, %v1430_v1  ;;  %v5773_v1 = vld [vmem:[%s7070_s4 + $0xd8] sm:$0xff]   ;;  %v2411_v4 = vpack.c.bf16 %v5308_v45, %v5308_v45 }
 0x4a4   :  { %5118 = vmatprep.mubr.msk.bf16.mxu1 %vm368_vm0, %v1444_v5 }
 0x4a5   :  { %5119 = vmatmul.mubr.msk.bf16.vlgmr.msra.gmra.mrb[8].mxu1 %vm368_vm0, %v1445_v6 }
 0x4a6   :  { %5143 = vmatpush3.bf16.msra.mxu1 %v5756_v57  ;;  %5146 = vmatprep.mubr.msk.bf16.mxu1 %vm368_vm0, %v1582_v36  ;;  %v5765_v36 = vld [vmem:[%s7070_s4 + $0xa8] sm:$0xff]  }
 0x4a7   :  { %5144 = vmatprep.subr.bf16.mxu1 %v5757_v9 }
 0x4aa   :  { %5145 = vmatpush3.bf16.msra.mxu1 %v5757_v9 }
 0x4ab   :  { %5170 = vmatprep.subr.bf16.mxu1 %v5758_v10 }
 0x4b1   :  { %5147 = vmatmul.mubr.msk.bf16.vlgmr.msra.gmra.mrb[8].mxu1 %vm368_vm0, %v1583_v11 }
 0x4b2   :  { %5171 = vmatpush3.bf16.msra.mxu1 %v5758_v10  ;;  %5174 = vmatprep.mubr.msk.bf16.mxu1 %vm368_vm0, %v1720_v63  ;;  %v5772_v63 = vld [vmem:[%s7070_s4 + $0xd0] sm:$0xff]  }
 0x4b3   :  { %5172 = vmatprep.subr.bf16.mxu1 %v5759_v12 }
 0x4b6   :  { %5173 = vmatpush3.bf16.msra.mxu1 %v5759_v12 }
 0x4b7   :  { %5178 = vmatprep.subr.bf16.mxu1 %v6172_v19 }
 0x4bd   :  { %5175 = vmatmul.mubr.msk.bf16.vlgmr.msra.gmra.mrb[8].mxu1 %vm368_vm0, %v1721_v34  ;;  %v5781_v34 = vld [vmem:[%s7070_s4 + $0xf8] sm:$0xff]  }
 0x4be   :  { %5179 = vmatpush3.bf16.msra.mxu1 %v6172_v19  ;;  %5194 = vmatprep.mubr.bf16.mxu1 %v5760_v14 }
 0x4bf   :  { %5180 = vmatprep.subr.bf16.mxu1 %v6174_v20 }
 0x4c2   :  { %5181 = vmatpush3.bf16.msra.mxu1 %v6174_v20 }
 0x4c3   :  { %5182 = vmatprep.subr.bf16.mxu1 %v6176_v8 }
 0x4c6   :  { %5183 = vmatpush3.bf16.msra.mxu1 %v6176_v8 }
 0x4c7   :  { %5184 = vmatprep.subr.bf16.mxu1 %v6178_v21 }
 0x4ca   :  { %5185 = vmatpush3.bf16.msra.mxu1 %v6178_v21 }
 0x4cb   :  { %5186 = vmatprep.subr.bf16.mxu1 %v6180_v22 }
 0x4ce   :  { %5187 = vmatpush3.bf16.msra.mxu1 %v6180_v22 }
 0x4cf   :  { %5188 = vmatprep.subr.bf16.mxu1 %v6182_v24 }
 0x4d2   :  { %5189 = vmatpush3.bf16.msra.mxu1 %v6182_v24 }
 0x4d3   :  { %5190 = vmatprep.subr.bf16.mxu1 %v6184_v25 }
 0x4d6   :  { %5191 = vmatpush3.bf16.msra.mxu1 %v6184_v25 }
 0x4d7   :  { %5192 = vmatprep.subr.bf16.mxu1 %v6186_v26 }
 0x4da   :  { %5193 = vmatpush3.bf16.msra.mxu1 %v6186_v26 }
 0x4db   :  { %5198 = vmatprep.subr.bf16.mxu1 %v5762_v38 }
 0x4dd   :  { %5195 = vmatmul.mubr.bf16.vlgmr.msra.gmra.mrb[20].mxu1 %v5761_v48  ;;  %v5860_v48 = vmov 0.0  }
 0x4de   :  { %5199 = vmatpush3.bf16.msra.mxu1 %v5762_v38  ;;  %5374 = vmatprep.subr.bf16.mxu0 %v5860_v48 }
 0x4df   :  { %5200 = vmatprep.subr.bf16.mxu1 %v5763_v53  ;;  %5378 = vmatprep.mubr.msk.bf16.mxu0 %vm5861_vm1, %v5860_v48 }
 0x4e2   :  { %5201 = vmatpush3.bf16.msra.mxu1 %v5763_v53 }
 0x4e3   :  { %5226 = vmatprep.subr.bf16.mxu1 %v5764_v2 }
 0x5b0   :  { %v5196_v28 = vpop.f32.mrb[20].mxu1 }
 0x5b1   :  { %v1844_v29 = vpop.f32.mrb[21].mxu1  ;;  %v1859_v33 = vpack.c.bf16 %v5196_v28, %v5196_v28 }
 0x5b2   :  { %v5197_v30 = vpop.f32.mrb[22].mxu1 }
 0x5b3   :  { %v1847_v31 = vpop.f32.mrb[23].mxu1 }
 0x5b4   :  { %v1858_v32 = vpack.c.bf16 %v1847_v31, %v1844_v29 }
 0x5b6   :  { %5202 = vmatprep.mubr.msk.bf16.mxu1 %vm368_vm0, %v1858_v32 }
 0x5b7   :  { %5203 = vmatmul.mubr.msk.bf16.vlgmr.msra.gmra.mrb[8].mxu1 %vm368_vm0, %v1859_v33 }
 0x5b8   :  { %5227 = vmatpush3.bf16.msra.mxu1 %v5764_v2  ;;  %5230 = vmatprep.mubr.msk.bf16.mxu1 %vm368_vm0, %v1996_v54 }
 0x5b9   :  { %5228 = vmatprep.subr.bf16.mxu1 %v5765_v36 }
 0x5bc   :  { %5229 = vmatpush3.bf16.msra.mxu1 %v5765_v36 }
 0x5bd   :  { %5234 = vmatprep.subr.bf16.mxu1 %v6172_v19 }
 0x5c3   :  { %5231 = vmatmul.mubr.msk.bf16.vlgmr.msra.gmra.mrb[8].mxu1 %vm368_vm0, %v1997_v39 }
 0x5c4   :  { %5235 = vmatpush3.bf16.msra.mxu1 %v6172_v19  ;;  %5250 = vmatprep.mubr.bf16.mxu1 %v5766_v37 }
 0x5c5   :  { %5236 = vmatprep.subr.bf16.mxu1 %v6174_v20 }
 0x5c8   :  { %5237 = vmatpush3.bf16.msra.mxu1 %v6174_v20 }
 0x5c9   :  { %5238 = vmatprep.subr.bf16.mxu1 %v6176_v8 }
 0x5cc   :  { %5239 = vmatpush3.bf16.msra.mxu1 %v6176_v8 }
 0x5cd   :  { %5240 = vmatprep.subr.bf16.mxu1 %v6178_v21 }
 0x5d0   :  { %5241 = vmatpush3.bf16.msra.mxu1 %v6178_v21 }
 0x5d1   :  { %5242 = vmatprep.subr.bf16.mxu1 %v6180_v22 }
 0x5d4   :  { %5243 = vmatpush3.bf16.msra.mxu1 %v6180_v22 }
 0x5d5   :  { %5244 = vmatprep.subr.bf16.mxu1 %v6182_v24 }
 0x5d8   :  { %5245 = vmatpush3.bf16.msra.mxu1 %v6182_v24 }
 0x5d9   :  { %5246 = vmatprep.subr.bf16.mxu1 %v6184_v25 }
 0x5dc   :  { %5247 = vmatpush3.bf16.msra.mxu1 %v6184_v25 }
 0x5dd   :  { %5248 = vmatprep.subr.bf16.mxu1 %v6186_v26 }
 0x5e0   :  { %5249 = vmatpush3.bf16.msra.mxu1 %v6186_v26 }
 0x5e1   :  { %5254 = vmatprep.subr.bf16.mxu1 %v5768_v40 }
 0x5e3   :  { %5251 = vmatmul.mubr.bf16.vlgmr.msra.gmra.mrb[24].mxu1 %v5767_v42 }
 0x5e4   :  { %5255 = vmatpush3.bf16.msra.mxu1 %v5768_v40 }
 0x5e5   :  { %5256 = vmatprep.subr.bf16.mxu1 %v5769_v43 }
 0x5e8   :  { %5257 = vmatpush3.bf16.msra.mxu1 %v5769_v43 }
 0x5e9   :  { %5282 = vmatprep.subr.bf16.mxu1 %v5770_v44 }
 0x6b6   :  { %v5252_v55 = vpop.f32.mrb[24].mxu1 }
 0x6b7   :  { %v2120_v56 = vpop.f32.mrb[25].mxu1  ;;  %v2135_v61 = vpack.c.bf16 %v5252_v55, %v5252_v55 }
 0x6b8   :  { %v5253_v57 = vpop.f32.mrb[26].mxu1 }
 0x6b9   :  { %v2123_v58 = vpop.f32.mrb[27].mxu1 }
 0x6ba   :  { %v2134_v60 = vpack.c.bf16 %v2123_v58, %v2120_v56 }
 0x6bc   :  { %5258 = vmatprep.mubr.msk.bf16.mxu1 %vm368_vm0, %v2134_v60 }
 0x6bd   :  { %5259 = vmatmul.mubr.msk.bf16.vlgmr.msra.gmra.mrb[8].mxu1 %vm368_vm0, %v2135_v61  ;;  %v2762_v61 = vld [vmem:[%s7071_s5] sm:$0x3] }
 0x6be   :  { %5283 = vmatpush3.bf16.msra.mxu1 %v5770_v44  ;;  %5286 = vmatprep.mubr.msk.bf16.mxu1 %vm368_vm0, %v2272_v27 }
 0x6bf   :  { %5284 = vmatprep.subr.bf16.mxu1 %v5771_v62 }
 0x6c2   :  { %5285 = vmatpush3.bf16.msra.mxu1 %v5771_v62  ;;  %v2806_v62 = vrot.slane %v2762_v61, %v6163_v23 }
 0x6c3   :  { %5310 = vmatprep.subr.bf16.mxu1 %v5772_v63 }
 0x6c9   :  { %5287 = vmatmul.mubr.msk.bf16.vlgmr.msra.gmra.mrb[8].mxu1 %vm368_vm0, %v2273_v0 }
 0x6ca   :  { %5311 = vmatpush3.bf16.msra.mxu1 %v5772_v63  ;;  %5314 = vmatprep.mubr.msk.bf16.mxu1 %vm368_vm0, %v2410_v50 }
 0x6cb   :  { %5312 = vmatprep.subr.bf16.mxu1 %v5773_v1 }
 0x6ce   :  { %5313 = vmatpush3.bf16.msra.mxu1 %v5773_v1 }
 0x6cf   :  { %5318 = vmatprep.subr.bf16.mxu1 %v6172_v19 }
 0x6d5   :  { %5315 = vmatmul.mubr.msk.bf16.vlgmr.msra.gmra.mrb[8].mxu1 %vm368_vm0, %v2411_v4  ;;  %v2813_v4 = vrot.slane %v2762_v61, %v6165_v35  ;;  %v5796_v61 = vld [vmem:[%s7073_s7 + $0x70] sm:$0xff]  }
 0x6d6   :  { %5319 = vmatpush3.bf16.msra.mxu1 %v6172_v19  ;;  %5334 = vmatprep.mubr.bf16.mxu1 %v5774_v3  ;;  %v5778_v19 = vld [vmem:[%s7070_s4 + $0xe0] sm:$0xff]  }
 0x6d7   :  { %5320 = vmatprep.subr.bf16.mxu1 %v6174_v20 }
 0x6da   :  { %5321 = vmatpush3.bf16.msra.mxu1 %v6174_v20  ;;  %v5775_v20 = vld [vmem:[%s7069_s3 + $0xb0] ss:$0 sps:$4 sm:$0x11]  }
 0x6db   :  { %5322 = vmatprep.subr.bf16.mxu1 %v6176_v8 }
 0x6de   :  { %5323 = vmatpush3.bf16.msra.mxu1 %v6176_v8  ;;  %v5779_v8 = vld [vmem:[%s7070_s4 + $0xe8] sm:$0xff]  }
 0x6df   :  { %5324 = vmatprep.subr.bf16.mxu1 %v6178_v21 }
 0x6e2   :  { %5325 = vmatpush3.bf16.msra.mxu1 %v6178_v21  ;;  %v5780_v21 = vld [vmem:[%s7070_s4 + $0xf0] sm:$0xff]   ;;  %s5862_s4 = smov [#allocation2]  }
 0x6e3   :  { %5326 = vmatprep.subr.bf16.mxu1 %v6180_v22 }
 0x6e6   :  { %5327 = vmatpush3.bf16.msra.mxu1 %v6180_v22  ;;  %v5364_v22 = vpop.f32.mrb[64].mxu0 }
 0x6e7   :  { %5328 = vmatprep.subr.bf16.mxu1 %v6182_v24  ;;  %v2687_v38 = vpack.c.bf16 %v5364_v22, %v5364_v22 }
 0x6ea   :  { %5329 = vmatpush3.bf16.msra.mxu1 %v6182_v24  ;;  %v2672_v24 = vpop.f32.mrb[65].mxu0 }
 0x6eb   :  { %5330 = vmatprep.subr.bf16.mxu1 %v6184_v25 }
 0x6ee   :  { %5331 = vmatpush3.bf16.msra.mxu1 %v6184_v25  ;;  %v5365_v25 = vpop.f32.mrb[66].mxu0 }
 0x6ef   :  { %5332 = vmatprep.subr.bf16.mxu1 %v6186_v26  ;;  %v2675_v5 = vpop.f32.mrb[67].mxu0 }
 0x6f0   :  { %v2686_v6 = vpack.c.bf16 %v2675_v5, %v2672_v24 }
 0x6f2   :  { %5333 = vmatpush3.bf16.msra.mxu1 %v6186_v26 }
 0x6f3   :  { %5338 = vmatprep.subr.bf16.mxu1 %v5778_v19 }
 0x6f5   :  { %5335 = vmatmul.mubr.bf16.vlgmr.msra.gmra.mrb[28].mxu1 %v5775_v20 }
 0x6f6   :  { %5339 = vmatpush3.bf16.msra.mxu1 %v5778_v19 }
 0x6f7   :  { %5340 = vmatprep.subr.bf16.mxu1 %v5779_v8 }
 0x6fa   :  { %5341 = vmatpush3.bf16.msra.mxu1 %v5779_v8 }
 0x6fb   :  { %5366 = vmatprep.subr.bf16.mxu1 %v5780_v21 }
 0x7c8   :  { %v5336_v26 = vpop.f32.mrb[28].mxu1 }
 0x7c9   :  { %v2534_v9 = vpop.f32.mrb[29].mxu1  ;;  %v2549_v14 = vpack.c.bf16 %v5336_v26, %v5336_v26 }
 0x7ca   :  { %v5337_v10 = vpop.f32.mrb[30].mxu1 }
 0x7cb   :  { %v2537_v11 = vpop.f32.mrb[31].mxu1 }
 0x7cc   :  { %v2548_v12 = vpack.c.bf16 %v2537_v11, %v2534_v9  ;;  %v4412_v11 = vld [vmem:[%s7072_s6 + $0x1] sm:$0x1] }
 0x7ce   :  { %5342 = vmatprep.mubr.msk.bf16.mxu1 %vm368_vm0, %v2548_v12  ;;  %v5782_v12 = vld [vmem:[%s7073_s7 + $0x20] sm:$0xff]  }
 0x7cf   :  { %5343 = vmatmul.mubr.msk.bf16.vlgmr.msra.gmra.mrb[8].mxu1 %vm368_vm0, %v2549_v14  ;;  %v2822_v14 = vld [vmem:[%s7072_s6] sm:$0x1] }
 0x7d0   :  { %5367 = vmatpush3.bf16.msra.mxu1 %v5780_v21  ;;  %5370 = vmatprep.mubr.msk.bf16.mxu1 %vm368_vm0, %v2686_v6 }
 0x7d1   :  { %5368 = vmatprep.subr.bf16.mxu1 %v5781_v34 }
 0x7d4   :  { %5369 = vmatpush3.bf16.msra.mxu1 %v5781_v34  ;;  %v5783_v34 = vld [vmem:[%s7073_s7 + $0x28] sm:$0xff]  }
 0x7d5   :  { %5382 = vmatprep.subr.bf16.mxu1 %v5860_v48 }
 0x7db   :  { %5371 = vmatmul.mubr.msk.bf16.vlgmr.msra.gmra.mrb[8].mxu1 %vm368_vm0, %v2687_v38  ;;  %v5784_v38 = vld [vmem:[%s7073_s7 + $0x30] sm:$0xff]  }
 0x7dc   :  { %5386 = vmatprep.mubr.msk.bf16.mxu1 %vm5861_vm1, %v5860_v48 }
 0x8ae   :  { %v5372_v53 = vpop.f32.mrb[8].mxu1 }
 0x8af   :  { %v2745_v2 = vpop.f32.mrb[9].mxu1  ;;  %v2780_v41 = vmul.f32 %v5372_v53, %v5372_v53  ;;  %v2768_v17 = vsel %vm2767_vm3, %v5372_v53, 0.0 }
 0x8b0   :  { %v2778_v7 = vmul.f32 %v2745_v2, %v2745_v2  ;;  %v5373_v15 = vpop.f32.mrb[10].mxu1  ;;  %v2764_v54 = vsel %vm2763_vm2, %v2745_v2, 0.0 }
 0x8b1   :  { %v2748_v18 = vpop.f32.mrb[11].mxu1  ;;  %v2784_v31 = vsel %vm2767_vm3, %v2780_v41, 0.0  ;;  %v5788_v15 = vld [vmem:[%s7073_s7 + $0x10] sm:$0xff]  }
 0x8b2   :  { %v2765_v59 = vsel %vm2763_vm2, %v2748_v18, 0.0  ;;  %v2779_v13 = vmul.f32 %v2748_v18, %v2748_v18  ;;  %v2781_v27 = vsel %vm2763_vm2, %v2778_v7, 0.0  ;;  %v5787_v7 = vld [vmem:[%s7073_s7 + $0x8] sm:$0xff]  }
 0x8b3   :  { %v2766_v16 = vadd.f32 %v2765_v59, %v2764_v54 }
 0x8b4   :  { %v2782_v28 = vsel %vm2763_vm2, %v2779_v13, 0.0 }
 0x8b5   :  { %v2769_v29 = vadd.f32 %v2768_v17, %v2766_v16  ;;  %v2783_v30 = vadd.f32 %v2782_v28, %v2781_v27  ;;  %v5790_v27 = vld [vmem:[%s7073_s7 + $0x40] sm:$0xff]  }
 0x8b7   :  { %v2770_v32 = vrot.slane %v2769_v29, 4  ;;  %v2785_v33 = vadd.f32 %v2784_v31, %v2783_v30 }
 0x8b9   :  { %v2771_v36 = vadd.f32 %v2770_v32, %v2769_v29  ;;  %v2786_v37 = vrot.slane %v2785_v33, 4  ;;  %v5791_v32 = vld [vmem:[%s7073_s7 + $0x48] sm:$0xff]  }
 0x8bb   :  { %v2772_v39 = vrot.slane %v2771_v36, 2  ;;  %v2787_v40 = vadd.f32 %v2786_v37, %v2785_v33  ;;  %v4432_v33 = vld [vmem:[%s7072_s6 + $0x2] sm:$0x1]  ;;  %v4462_v37 = vld [vmem:[%s7072_s6 + $0x4] sm:$0x1] }
 0x8bd   :  { %v2773_v42 = vadd.f32 %v2772_v39, %v2771_v36  ;;  %v2788_v43 = vrot.slane %v2787_v40, 2  ;;  %v4447_v36 = vld [vmem:[%s7072_s6 + $0x3] sm:$0x1]  ;;  %v4477_v39 = vld [vmem:[%s7072_s6 + $0x5] sm:$0x1] }
 0x8bf   :  { %v2774_v44 = vrot.slane %v2773_v42, 1  ;;  %v2789_v45 = vadd.f32 %v2788_v43, %v2787_v40  ;;  %v4492_v40 = vld [vmem:[%s7072_s6 + $0x6] sm:$0x1]  ;;  %v4522_v43 = vld [vmem:[%s7072_s6 + $0x8] sm:$0x1] }
 0x8c1   :  { %v2775_v46 = vadd.f32 %v2774_v44, %v2773_v42  ;;  %v2790_v47 = vrot.slane %v2789_v45, 1  ;;  %v4507_v42 = vld [vmem:[%s7072_s6 + $0x7] sm:$0x1]  ;;  %v5792_v44 = vld [vmem:[%s7073_s7 + $0x50] sm:$0xff]  }
 0x8c3   :  { %v2777_v49 = vmul.f32 0.055555556, %v2775_v46  ;;  %v2791_v50 = vadd.f32 %v2790_v47, %v2789_v45  ;;  %v5793_v45 = vld [vmem:[%s7073_s7 + $0x58] sm:$0xff]  }
 0x8c5   :  { %v2792_v51 = vmul.f32 0.055555556, %v2791_v50  ;;  %v2793_v52 = vmul.f32 %v2777_v49, %v2777_v49  ;;  %v2795_v55 = vsub.f32 %v2745_v2, %v2777_v49  ;;  %v2796_v56 = vsub.f32 %v2748_v18, %v2777_v49  ;;  %v5786_v2 = vld [vmem:[%s7073_s7] sm:$0xff]   ;;  %v5789_v18 = vld [vmem:[%s7073_s7 + $0x18] sm:$0xff]  }
 0x8c6   :  { %v2797_v57 = vsub.f32 %v5372_v53, %v2777_v49  ;;  %v5785_v53 = vld [vmem:[%s7073_s7 + $0x38] sm:$0xff]  }
 0x8c7   :  { %v2794_v58 = vsub.f32 %v2792_v51, %v2793_v52  ;;  %v5794_v52 = vld [vmem:[%s7073_s7 + $0x60] sm:$0xff]  }
 0x8c9   :  { %v2798_v60 = vadd.f32 1e-05, %v2794_v58 }
 0x8cb   :  { %5832 = vrsqrt.f32 %v2798_v60  ;;  %v5795_v60 = vld [vmem:[%s7073_s7 + $0x68] sm:$0xff]  }
 0x8d5   :  { %v5833_v63 = vpop.eup %5832 }
 0x8d6   :  { %v2800_v0 = vmul.f32 %v5833_v63, %v2795_v55  ;;  %v2801_v1 = vmul.f32 %v5833_v63, %v2796_v56  ;;  %v2802_v3 = vmul.f32 %v5833_v63, %v2797_v57 }
 0x8d8   :  { %v2807_v19 = vmul.f32 %v2806_v62, %v2800_v0  ;;  %v2808_v20 = vmul.f32 %v2806_v62, %v2801_v1  ;;  %v2809_v8 = vmul.f32 %v2806_v62, %v2802_v3  ;;  %v5797_v3 = vld [vmem:[%s7073_s7 + $0x78] sm:$0xff]  }
 0x8da   :  { %v2814_v21 = vadd.f32 %v2813_v4, %v2807_v19  ;;  %v2815_v22 = vadd.f32 %v2813_v4, %v2808_v20  ;;  %v2816_v24 = vadd.f32 %v2813_v4, %v2809_v8  ;;  %v5798_v19 = vld [vmem:[%s7073_s7 + $0x80] sm:$0xff]  }
 0x8dc   :  { %v2817_v25 = vmax.f32 %v2814_v21, 0.0  ;;  %v2818_v5 = vmax.f32 %v2815_v22, 0.0  ;;  %v2819_v6 = vmax.f32 %v2816_v24, 0.0  ;;  %v5799_v24 = vld [vmem:[%s7073_s7 + $0x88] sm:$0xff]  }
 0x8de   :  { %v6726_v26 = vpack.c.bf16 %v2818_v5, %v2817_v25  ;;  %v2821_v9 = vpack.c.bf16 %v2819_v6, %v2819_v6  ;;  %v5800_v25 = vld [vmem:[%s7073_s7 + $0x90] sm:$0xff]  }
 0x8e0   :  { %5375 = vmatpush3.bf16.msra.mxu0 %v6726_v26  ;;  %5383 = vmatpush3.bf16.msra.mxu1 %v6726_v26  ;;  %v6732_v10 = vsel %vm2827_vm4, %v2821_v9, 0 }
 0x8e1   :  { %5376 = vmatprep.subr.bf16.mxu0 %v5860_v48  ;;  %5384 = vmatprep.subr.bf16.mxu1 %v5860_v48 }
 0x8e4   :  { %5377 = vmatpush3.bf16.msra.mxu0 %v6732_v10  ;;  %5385 = vmatpush3.bf16.msra.mxu1 %v6732_v10 }
 0x8e5   :  { %5390 = vmatprep.subr.bf16.mxu1 %v5860_v48  ;;  %5402 = vmatprep.subr.bf16.mxu0 %v5860_v48 }
 0x8e7   :  { %5387 = vmatmul.mubr.msk.bf16.vlgmr.msra.gmra.mrb[32].mxu1 %vm2823_vm5, %v4412_v11  ;;  %5379 = vmatmul.mubr.msk.bf16.vlgmr.msra.gmra.mrb[68].mxu0 %vm2823_vm5, %v2822_v14 }
 0x8e8   :  { %5391 = vmatpush3.bf16.msra.mxu1 %v5782_v12  ;;  %5398 = vmatprep.mubr.msk.bf16.mxu1 %vm5861_vm1, %v5860_v48  ;;  %v5802_v12 = vld [vmem:[%s7073_s7 + $0xa0] sm:$0xff]  }
 0x8e9   :  { %5392 = vmatprep.subr.bf16.mxu1 %v5860_v48  ;;  %5410 = vmatprep.mubr.msk.bf16.mxu0 %vm5861_vm1, %v5860_v48 }
 0x8ea   :  { %5403 = vmatpush3.bf16.msra.mxu0 %v5786_v2  ;;  %v5803_v2 = vld [vmem:[%s7073_s7 + $0xa8] sm:$0xff]  }
 0x8eb   :  { %5404 = vmatprep.subr.bf16.mxu0 %v5860_v48 }
 0x8ec   :  { %5393 = vmatpush3.bf16.msra.mxu1 %v5783_v34 }
 0x8ed   :  { %5394 = vmatprep.subr.bf16.mxu1 %v5860_v48 }
 0x8ee   :  { %5405 = vmatpush3.bf16.msra.mxu0 %v5787_v7  ;;  %v5804_v7 = vld [vmem:[%s7073_s7 + $0xb0] sm:$0xff]  }
 0x8ef   :  { %5406 = vmatprep.subr.bf16.mxu0 %v5860_v48 }
 0x8f0   :  { %5395 = vmatpush3.bf16.msra.mxu1 %v5784_v38 }
 0x8f1   :  { %5396 = vmatprep.subr.bf16.mxu1 %v5860_v48 }
 0x8f2   :  { %5407 = vmatpush3.bf16.msra.mxu0 %v5788_v15 }
 0x8f3   :  { %5408 = vmatprep.subr.bf16.mxu0 %v5860_v48 }
 0x8f4   :  { %5397 = vmatpush3.bf16.msra.mxu1 %v5785_v53 }
 0x8f5   :  { %5414 = vmatprep.subr.bf16.mxu1 %v5860_v48 }
 0x8f6   :  { %5409 = vmatpush3.bf16.msra.mxu0 %v5789_v18 }
 0x8f7   :  { %5422 = vmatprep.subr.bf16.mxu0 %v5860_v48 }
 0x9ba   :  { %v2919_v41 = vpop.f32.mrb[32].mxu1  ;;  %v2865_v54 = vpop.f32.mrb[68].mxu0 }
 0x9bb   :  { %v2925_v59 = vpack.c.bf16 %v2919_v41, %v2919_v41  ;;  %v5388_v13 = vpop.f32.mrb[33].mxu1  ;;  %v2871_v16 = vpack.c.bf16 %v2865_v54, %v2865_v54  ;;  %v5380_v17 = vpop.f32.mrb[69].mxu0 }
 0x9bc   :  { %v2922_v28 = vpop.f32.mrb[34].mxu1  ;;  %v2868_v29 = vpop.f32.mrb[70].mxu0 }
 0x9bd   :  { %v5389_v30 = vpop.f32.mrb[35].mxu1  ;;  %5399 = vmatmul.mubr.msk.bf16.vlgmr.msra.gmra.mrb[36].mxu1 %vm2763_vm2, %v2925_v59  ;;  %v5381_v31 = vpop.f32.mrb[71].mxu0  ;;  %5411 = vmatmul.mubr.msk.bf16.vlgmr.msra.gmra.mrb[72].mxu0 %vm2763_vm2, %v2871_v16  ;;  %v5805_v59 = vld [vmem:[%s7073_s7 + $0xb8] sm:$0xff]   ;;  %v5806_v16 = vld [vmem:[%s7073_s7 + $0xc0] sm:$0xff]  }
 0x9be   :  { %5415 = vmatpush3.bf16.msra.mxu1 %v6726_v26  ;;  %5418 = vmatprep.mubr.msk.bf16.mxu1 %vm5861_vm1, %v5860_v48  ;;  %v5807_v30 = vld [vmem:[%s7073_s7 + $0xc8] sm:$0xff]   ;;  %v5808_v31 = vld [vmem:[%s7073_s7 + $0xd0] sm:$0xff]  }
 0x9bf   :  { %5416 = vmatprep.subr.bf16.mxu1 %v5860_v48  ;;  %5423 = vmatpush3.bf16.msra.mxu0 %v5790_v27 }
 0x9c0   :  { %5424 = vmatprep.subr.bf16.mxu0 %v5860_v48  ;;  %5430 = vmatprep.mubr.msk.bf16.mxu0 %vm5861_vm1, %v5860_v48 }
 0x9c2   :  { %5417 = vmatpush3.bf16.msra.mxu1 %v6732_v10 }
 0x9c3   :  { %5434 = vmatprep.subr.bf16.mxu1 %v5860_v48  ;;  %5425 = vmatpush3.bf16.msra.mxu0 %v5791_v32  ;;  %v5809_v32 = vld [vmem:[%s7073_s7 + $0xd8] sm:$0xff]  }
 0x9c4   :  { %5426 = vmatprep.subr.bf16.mxu0 %v5860_v48 }
 0x9c5   :  { %5419 = vmatmul.mubr.msk.bf16.vlgmr.msra.gmra.mrb[40].mxu1 %vm2823_vm5, %v4432_v33 }
 0x9c6   :  { %5435 = vmatpush3.bf16.msra.mxu1 %v6726_v26  ;;  %5438 = vmatprep.mubr.msk.bf16.mxu1 %vm5861_vm1, %v5860_v48 }
 0x9c7   :  { %5436 = vmatprep.subr.bf16.mxu1 %v5860_v48  ;;  %5427 = vmatpush3.bf16.msra.mxu0 %v5792_v44  ;;  %v5815_v44 = vld [vmem:[%s7073_s7 + $0x108] sm:$0xff]  }
 0x9c8   :  { %5428 = vmatprep.subr.bf16.mxu0 %v5860_v48 }
 0x9ca   :  { %5437 = vmatpush3.bf16.msra.mxu1 %v6732_v10 }
 0x9cb   :  { %5454 = vmatprep.subr.bf16.mxu1 %v5860_v48  ;;  %5429 = vmatpush3.bf16.msra.mxu0 %v5793_v45  ;;  %v5816_v45 = vld [vmem:[%s7073_s7 + $0x110] sm:$0xff]  }
 0x9cc   :  { %5442 = vmatprep.subr.bf16.mxu0 %v5860_v48 }
 0x9cd   :  { %5439 = vmatmul.mubr.msk.bf16.vlgmr.msra.gmra.mrb[44].mxu1 %vm2823_vm5, %v4447_v36  ;;  %v5810_v36 = vld [vmem:[%s7073_s7 + $0xe0] sm:$0xff]  }
 0x9ce   :  { %5455 = vmatpush3.bf16.msra.mxu1 %v6726_v26  ;;  %5458 = vmatprep.mubr.msk.bf16.mxu1 %vm5861_vm1, %v5860_v48 }
 0x9cf   :  { %5456 = vmatprep.subr.bf16.mxu1 %v5860_v48 }
 0x9d2   :  { %5457 = vmatpush3.bf16.msra.mxu1 %v6732_v10 }
 0x9d3   :  { %5474 = vmatprep.subr.bf16.mxu1 %v5860_v48 }
 0x9d5   :  { %5459 = vmatmul.mubr.msk.bf16.vlgmr.msra.gmra.mrb[48].mxu1 %vm2823_vm5, %v4462_v37  ;;  %v5811_v37 = vld [vmem:[%s7073_s7 + $0xe8] sm:$0xff]  }
 0x9d6   :  { %5475 = vmatpush3.bf16.msra.mxu1 %v6726_v26  ;;  %5478 = vmatprep.mubr.msk.bf16.mxu1 %vm5861_vm1, %v5860_v48 }
 0x9d7   :  { %5476 = vmatprep.subr.bf16.mxu1 %v5860_v48 }
 0x9da   :  { %5477 = vmatpush3.bf16.msra.mxu1 %v6732_v10 }
 0x9db   :  { %5494 = vmatprep.subr.bf16.mxu1 %v5860_v48 }
 0x9dd   :  { %5479 = vmatmul.mubr.msk.bf16.vlgmr.msra.gmra.mrb[52].mxu1 %vm2823_vm5, %v4477_v39  ;;  %v5812_v39 = vld [vmem:[%s7073_s7 + $0xf0] sm:$0xff]  }
 0x9de   :  { %5495 = vmatpush3.bf16.msra.mxu1 %v6726_v26  ;;  %5498 = vmatprep.mubr.msk.bf16.mxu1 %vm5861_vm1, %v5860_v48 }
 0x9df   :  { %5496 = vmatprep.subr.bf16.mxu1 %v5860_v48 }
 0x9e2   :  { %5497 = vmatpush3.bf16.msra.mxu1 %v6732_v10 }
 0x9e3   :  { %5514 = vmatprep.subr.bf16.mxu1 %v5860_v48 }
 0x9e5   :  { %5499 = vmatmul.mubr.msk.bf16.vlgmr.msra.gmra.mrb[56].mxu1 %vm2823_vm5, %v4492_v40  ;;  %v5813_v40 = vld [vmem:[%s7073_s7 + $0xf8] sm:$0xff]  }
 0x9e6   :  { %5515 = vmatpush3.bf16.msra.mxu1 %v6726_v26  ;;  %5518 = vmatprep.mubr.msk.bf16.mxu1 %vm5861_vm1, %v5860_v48 }
 0x9e7   :  { %5516 = vmatprep.subr.bf16.mxu1 %v5860_v48 }
 0x9ea   :  { %5517 = vmatpush3.bf16.msra.mxu1 %v6732_v10 }
 0x9eb   :  { %5534 = vmatprep.subr.bf16.mxu1 %v5860_v48 }
 0x9ed   :  { %5519 = vmatmul.mubr.msk.bf16.vlgmr.msra.gmra.mrb[60].mxu1 %vm2823_vm5, %v4507_v42 }
 0x9ee   :  { %5535 = vmatpush3.bf16.msra.mxu1 %v6726_v26  ;;  %5538 = vmatprep.mubr.msk.bf16.mxu1 %vm5861_vm1, %v5860_v48 }
 0x9ef   :  { %5536 = vmatprep.subr.bf16.mxu1 %v5860_v48 }
 0x9f2   :  { %5537 = vmatpush3.bf16.msra.mxu1 %v6732_v10  ;;  %v5801_v10 = vld [vmem:[%s7073_s7 + $0x98] sm:$0xff]  }
 0x9f3   :  { %5554 = vmatprep.subr.bf16.mxu1 %v5860_v48 }
 0x9f5   :  { %5539 = vmatmul.mubr.msk.bf16.vlgmr.msra.gmra.mrb[64].mxu1 %vm2823_vm5, %v4522_v43  ;;  %v5814_v43 = vld [vmem:[%s7073_s7 + $0x100] sm:$0xff]  }
 0x9f6   :  { %5562 = vmatprep.mubr.msk.bf16.mxu1 %vm5861_vm1, %v5860_v48 }
 0xa90   :  { %v6874_v46 = vpop.f32.mrb[36].mxu1 }
 0xa91   :  { %v5400_v47 = vpop.f32.mrb[37].mxu1 }
 0xa92   :  { %v2999_v49 = vpop.f32.mrb[38].mxu1  ;;  %v5817_v47 = vld [vmem:[%s7073_s7 + $0x118] sm:$0xff]   ;;  %s4170_s7 = sshll.u32 %s5862_s4, 4  ;;  %s4171_s7 = int_to_ptr.vmem [resolvable:$true] %s4170_s7 }
 0xa93   :  { %v5401_v50 = vpop.f32.mrb[39].mxu1  ;;  %p5841_p1 = scmp.lt.s32.totalorder %s4171_s7, %s4171_s7 }
 0xa94   :  { %v5818_v50 = vld [vmem:[%s7075_s9] sm:$0xff]  }
 0xa95   :  { %5555 = vmatpush3.bf16.msra.mxu1 %v5818_v50 }
 0xa96   :  { %5556 = vmatprep.subr.bf16.mxu1 %v5860_v48 }
 0xa98   :  { %v3108_v51 = vpop.f32.mrb[40].mxu1 }
 0xa99   :  { %v3114_v55 = vpack.c.bf16 %v3108_v51, %v3108_v51  ;;  %v5420_v56 = vpop.f32.mrb[41].mxu1  ;;  %v5819_v51 = vld [vmem:[%s7075_s9 + $0x8] sm:$0xff]  }
 0xa9a   :  { %v3111_v57 = vpop.f32.mrb[42].mxu1  ;;  %5557 = vmatpush3.bf16.msra.mxu1 %v5819_v51 }
 0xa9b   :  { %v5421_v58 = vpop.f32.mrb[43].mxu1  ;;  %5431 = vmatmul.mubr.msk.bf16.vlgmr.msra.gmra.mrb[72].mxu0 %vm2763_vm2, %v3114_v55  ;;  %5558 = vmatprep.subr.bf16.mxu1 %v5860_v48  ;;  %v5821_v55 = vld [vmem:[%s7075_s9 + $0x18] sm:$0xff]  }
 0xa9c   :  { %5443 = vmatpush3.bf16.msra.mxu0 %v5794_v52  ;;  %5450 = vmatprep.mubr.msk.bf16.mxu0 %vm5861_vm1, %v5860_v48  ;;  %v5820_v52 = vld [vmem:[%s7075_s9 + $0x10] sm:$0xff]  }
 0xa9d   :  { %5444 = vmatprep.subr.bf16.mxu0 %v5860_v48 }
 0xa9e   :  { %5559 = vmatpush3.bf16.msra.mxu1 %v5820_v52 }
 0xa9f   :  { %5560 = vmatprep.subr.bf16.mxu1 %v5860_v48 }
 0xaa0   :  { %5445 = vmatpush3.bf16.msra.mxu0 %v5795_v60  ;;  %v3231_v62 = vpop.f32.mrb[44].mxu1 }
 0xaa1   :  { %5446 = vmatprep.subr.bf16.mxu0 %v5860_v48  ;;  %v5440_v63 = vpop.f32.mrb[45].mxu1  ;;  %v3237_v4 = vpack.c.bf16 %v3231_v62, %v3231_v62 }
 0xaa2   :  { %v3234_v0 = vpop.f32.mrb[46].mxu1  ;;  %5561 = vmatpush3.bf16.msra.mxu1 %v5821_v55 }
 0xaa3   :  { %v5441_v1 = vpop.f32.mrb[47].mxu1  ;;  %5566 = vmatprep.subr.bf16.mxu1 %v5860_v48 }
 0xaa4   :  { %5447 = vmatpush3.bf16.msra.mxu0 %v5796_v61 }
 0xaa5   :  { %5448 = vmatprep.subr.bf16.mxu0 %v5860_v48 }
 0xaa8   :  { %5449 = vmatpush3.bf16.msra.mxu0 %v5797_v3  ;;  %v3354_v20 = vpop.f32.mrb[48].mxu1 }
 0xaa9   :  { %5462 = vmatprep.subr.bf16.mxu0 %v5860_v48  ;;  %v5460_v8 = vpop.f32.mrb[49].mxu1  ;;  %v3360_v11 = vpack.c.bf16 %v3354_v20, %v3354_v20 }
 0xaaa   :  { %v3357_v21 = vpop.f32.mrb[50].mxu1 }
 0xaab   :  { %5451 = vmatmul.mubr.msk.bf16.vlgmr.msra.gmra.mrb[72].mxu0 %vm2763_vm2, %v3237_v4  ;;  %v5461_v22 = vpop.f32.mrb[51].mxu1 }
 0xaac   :  { %5463 = vmatpush3.bf16.msra.mxu0 %v5798_v19  ;;  %5470 = vmatprep.mubr.msk.bf16.mxu0 %vm5861_vm1, %v5860_v48 }
 0xaad   :  { %5464 = vmatprep.subr.bf16.mxu0 %v5860_v48 }
 0xab0   :  { %5465 = vmatpush3.bf16.msra.mxu0 %v5799_v24  ;;  %v3477_v5 = vpop.f32.mrb[52].mxu1 }
 0xab1   :  { %5466 = vmatprep.subr.bf16.mxu0 %v5860_v48  ;;  %v5480_v6 = vpop.f32.mrb[53].mxu1  ;;  %v3483_v13 = vpack.c.bf16 %v3477_v5, %v3477_v5 }
 0xab2   :  { %v3480_v26 = vpop.f32.mrb[54].mxu1 }
 0xab3   :  { %v5481_v9 = vpop.f32.mrb[55].mxu1 }
 0xab4   :  { %5467 = vmatpush3.bf16.msra.mxu0 %v5800_v25 }
 0xab5   :  { %5468 = vmatprep.subr.bf16.mxu0 %v5860_v48 }
 0xab8   :  { %5469 = vmatpush3.bf16.msra.mxu0 %v5801_v10  ;;  %v3600_v14 = vpop.f32.mrb[56].mxu1 }
 0xab9   :  { %5482 = vmatprep.subr.bf16.mxu0 %v5860_v48  ;;  %v5500_v34 = vpop.f32.mrb[57].mxu1  ;;  %v3606_v33 = vpack.c.bf16 %v3600_v14, %v3600_v14 }
 0xaba   :  { %v3603_v38 = vpop.f32.mrb[58].mxu1 }
 0xabb   :  { %5471 = vmatmul.mubr.msk.bf16.vlgmr.msra.gmra.mrb[72].mxu0 %vm2763_vm2, %v3360_v11  ;;  %v5501_v53 = vpop.f32.mrb[59].mxu1 }
 0xabc   :  { %5483 = vmatpush3.bf16.msra.mxu0 %v5802_v12  ;;  %5490 = vmatprep.mubr.msk.bf16.mxu0 %vm5861_vm1, %v5860_v48  ;;  %v3930_v12 = vld [vmem:[%s7074_s8] sm:$0x3] }
 0xabd   :  { %5484 = vmatprep.subr.bf16.mxu0 %v5860_v48  ;;  %v3958_v34 = vrot.slane %v3930_v12, %v6163_v23  ;;  %v5824_v23 = vld [vmem:[%s7077_s11 + $0x10] sm:$0xff]  }
 0xac0   :  { %5485 = vmatpush3.bf16.msra.mxu0 %v5803_v2  ;;  %v3723_v15 = vpop.f32.mrb[60].mxu1  ;;  %v3963_v2 = vrot.slane %v3930_v12, %v6165_v35  ;;  %v5825_v35 = vld [vmem:[%s7077_s11 + $0x18] sm:$0xff]  }
 0xac1   :  { %5486 = vmatprep.subr.bf16.mxu0 %v5860_v48  ;;  %v5520_v18 = vpop.f32.mrb[61].mxu1  ;;  %v3729_v42 = vpack.c.bf16 %v3723_v15, %v3723_v15 }
 0xac2   :  { %v3726_v41 = vpop.f32.mrb[62].mxu1 }
 0xac3   :  { %v5521_v54 = vpop.f32.mrb[63].mxu1  ;;  %v5822_v41 = vld [vmem:[%s7077_s11] sm:$0xff]  }
 0xac4   :  { %5487 = vmatpush3.bf16.msra.mxu0 %v5804_v7 }
 0xac5   :  { %5488 = vmatprep.subr.bf16.mxu0 %v5860_v48 }
 0xac8   :  { %5489 = vmatpush3.bf16.msra.mxu0 %v5805_v59  ;;  %v3846_v17 = vpop.f32.mrb[64].mxu1  ;;  %v5823_v59 = vld [vmem:[%s7077_s11 + $0x8] sm:$0xff]  }
 0xac9   :  { %5502 = vmatprep.subr.bf16.mxu0 %v5860_v48  ;;  %v5540_v27 = vpop.f32.mrb[65].mxu1  ;;  %v3852_v49 = vpack.c.bf16 %v3846_v17, %v3846_v17  ;;  %v5828_v17 = vld [vmem:[%s7077_s11 + $0x30] sm:$0xff]  }
 0xaca   :  { %v3849_v28 = vpop.f32.mrb[66].mxu1  ;;  %v5829_v27 = vld [vmem:[%s7077_s11 + $0x38] sm:$0xff]  }
 0xacb   :  { %5491 = vmatmul.mubr.msk.bf16.vlgmr.msra.gmra.mrb[72].mxu0 %vm2763_vm2, %v3483_v13  ;;  %v5541_v29 = vpop.f32.mrb[67].mxu1  ;;  %v5826_v13 = vld [vmem:[%s7077_s11 + $0x20] sm:$0xff]  }
 0xacc   :  { %5503 = vmatpush3.bf16.msra.mxu0 %v5806_v16  ;;  %5510 = vmatprep.mubr.msk.bf16.mxu0 %vm5861_vm1, %v5860_v48  ;;  %v5827_v16 = vld [vmem:[%s7077_s11 + $0x28] sm:$0xff]   ;;  %v4537_v28 = vld [vmem:[%s7076_s10] ss:$0 sm:$0xff]  ;;  %s5836_s10 = scalar_lea.vmem %s4171_s7, 32 }
 0xacd   :  { %5504 = vmatprep.subr.bf16.mxu0 %v5860_v48  ;;  %p5837_p0 = scmp.ne.s32.totalorder %s4171_s7, %s5836_s10  ;;  %p5842_p2 = scmp.lt.s32.totalorder %s5836_s10, %s5836_s10 }
 0xacf   :  { %p5843_p3 = por %p5842_p2, %p5841_p1 }
 0xad0   :  { %5505 = vmatpush3.bf16.msra.mxu0 %v5807_v30 }
 0xad1   :  { %5506 = vmatprep.subr.bf16.mxu0 %v5860_v48  ;;  %p5844_p4 = pnand %p5843_p3, %p5837_p0 }
 0xad4   :  { %5507 = vmatpush3.bf16.msra.mxu0 %v5808_v31 }
 0xad5   :  { %5508 = vmatprep.subr.bf16.mxu0 %v5860_v48 }
 0xad8   :  { %5509 = vmatpush3.bf16.msra.mxu0 %v5809_v32 }
 0xad9   :  { %5522 = vmatprep.subr.bf16.mxu0 %v5860_v48 }
 0xadb   :  { %5511 = vmatmul.mubr.msk.bf16.vlgmr.msra.gmra.mrb[72].mxu0 %vm2763_vm2, %v3606_v33 }
 0xadc   :  { %5523 = vmatpush3.bf16.msra.mxu0 %v5810_v36  ;;  %5530 = vmatprep.mubr.msk.bf16.mxu0 %vm5861_vm1, %v5860_v48 }
 0xadd   :  { %5524 = vmatprep.subr.bf16.mxu0 %v5860_v48 }
 0xae0   :  { %5525 = vmatpush3.bf16.msra.mxu0 %v5811_v37 }
 0xae1   :  { %5526 = vmatprep.subr.bf16.mxu0 %v5860_v48 }
 0xae4   :  { %5527 = vmatpush3.bf16.msra.mxu0 %v5812_v39 }
 0xae5   :  { %5528 = vmatprep.subr.bf16.mxu0 %v5860_v48 }
 0xae8   :  { %5529 = vmatpush3.bf16.msra.mxu0 %v5813_v40 }
 0xae9   :  { %5542 = vmatprep.subr.bf16.mxu0 %v5860_v48 }
 0xaeb   :  { %5531 = vmatmul.mubr.msk.bf16.vlgmr.msra.gmra.mrb[72].mxu0 %vm2763_vm2, %v3729_v42 }
 0xaec   :  { %5543 = vmatpush3.bf16.msra.mxu0 %v5814_v43  ;;  %5550 = vmatprep.mubr.msk.bf16.mxu0 %vm5861_vm1, %v5860_v48 }
 0xaed   :  { %5544 = vmatprep.subr.bf16.mxu0 %v5860_v48 }
 0xaf0   :  { %5545 = vmatpush3.bf16.msra.mxu0 %v5815_v44 }
 0xaf1   :  { %5546 = vmatprep.subr.bf16.mxu0 %v5860_v48 }
 0xaf4   :  { %5547 = vmatpush3.bf16.msra.mxu0 %v5816_v45 }
 0xaf5   :  { %5548 = vmatprep.subr.bf16.mxu0 %v5860_v48 }
 0xaf8   :  { %5549 = vmatpush3.bf16.msra.mxu0 %v5817_v47 }
 0xafb   :  { %5551 = vmatmul.mubr.msk.bf16.vlgmr.msra.gmra.mrb[72].mxu0 %vm2763_vm2, %v3852_v49 }
 0xbce   :  { %v3923_v56 = vpop.f32.mrb[72].mxu0 }
 0xbcf   :  { %v5586_v57 = vadd.f32 %v3923_v56, %v6874_v46  ;;  %v5552_v58 = vpop.f32.mrb[73].mxu0 }
 0xbd0   :  { %v3926_v60 = vpop.f32.mrb[74].mxu0 }
 0xbd1   :  { %v3931_v61 = vsel %vm2767_vm3, %v5586_v57, 0.0  ;;  %v3940_v62 = vmul.f32 %v5586_v57, %v5586_v57  ;;  %v5553_v63 = vpop.f32.mrb[75].mxu0 }
 0xbd2   :  { %v3932_v0 = vrot.slane %v3931_v61, 4 }
 0xbd3   :  { %v3941_v1 = vsel %vm2767_vm3, %v3940_v62, 0.0 }
 0xbd4   :  { %v3933_v3 = vadd.f32 %v3932_v0, %v3931_v61  ;;  %v3942_v4 = vrot.slane %v3941_v1, 4 }
 0xbd6   :  { %v3934_v19 = vrot.slane %v3933_v3, 2  ;;  %v3943_v20 = vadd.f32 %v3942_v4, %v3941_v1 }
 0xbd8   :  { %v3935_v8 = vadd.f32 %v3934_v19, %v3933_v3  ;;  %v3944_v21 = vrot.slane %v3943_v20, 2 }
 0xbda   :  { %v3936_v22 = vrot.slane %v3935_v8, 1  ;;  %v3945_v24 = vadd.f32 %v3944_v21, %v3943_v20 }
 0xbdc   :  { %v3937_v25 = vadd.f32 %v3936_v22, %v3935_v8  ;;  %v3946_v5 = vrot.slane %v3945_v24, 1 }
 0xbde   :  { %v3939_v46 = vmul.f32 0.5, %v3937_v25  ;;  %v3947_v6 = vadd.f32 %v3946_v5, %v3945_v24 }
 0xbe0   :  { %v3948_v26 = vmul.f32 0.5, %v3947_v6  ;;  %v3949_v9 = vmul.f32 %v3939_v46, %v3939_v46  ;;  %v3951_v14 = vsub.f32 %v5586_v57, %v3939_v46 }
 0xbe2   :  { %v3950_v10 = vsub.f32 %v3948_v26, %v3949_v9 }
 0xbe4   :  { %v3952_v11 = vadd.f32 1e-05, %v3950_v10 }
 0xbe6   :  { %5834 = vrsqrt.f32 %v3952_v11 }
 0xbf0   :  { %v5835_v38 = vpop.eup %5834 }
 0xbf1   :  { %v3954_v53 = vmul.f32 %v5835_v38, %v3951_v14 }
 0xbf3   :  { %v3959_v7 = vmul.f32 %v3958_v34, %v3954_v53 }
 0xbf5   :  { %v3964_v15 = vadd.f32 %v3963_v2, %v3959_v7 }
 0xbf7   :  { %v3965_v18 = vmax.f32 %v3964_v15, 0.0 }
 0xbf9   :  { %v3966_v54 = vpack.c.bf16 %v3965_v18, %v3965_v18 }
 0xbfb   :  { %5563 = vmatmul.mubr.msk.bf16.vlgmr.msra.gmra.mrb[68].mxu1 %vm2763_vm2, %v3966_v54 }
 0xbfc   :  { %5567 = vmatpush3.bf16.msra.mxu1 %v5822_v41  ;;  %5582 = vmatprep.mubr.msk.bf16.mxu1 %vm5861_vm1, %v5860_v48 }
 0xbfd   :  { %5568 = vmatprep.subr.bf16.mxu1 %v5860_v48 }
 0xc00   :  { %5569 = vmatpush3.bf16.msra.mxu1 %v5823_v59 }
 0xc01   :  { %5570 = vmatprep.subr.bf16.mxu1 %v5860_v48 }
 0xc04   :  { %5571 = vmatpush3.bf16.msra.mxu1 %v5824_v23 }
 0xc05   :  { %5572 = vmatprep.subr.bf16.mxu1 %v5860_v48 }
 0xc08   :  { %5573 = vmatpush3.bf16.msra.mxu1 %v5825_v35 }
 0xc09   :  { %5574 = vmatprep.subr.bf16.mxu1 %v5860_v48 }
 0xc0c   :  { %5575 = vmatpush3.bf16.msra.mxu1 %v5826_v13 }
 0xc0d   :  { %5576 = vmatprep.subr.bf16.mxu1 %v5860_v48 }
 0xc10   :  { %5577 = vmatpush3.bf16.msra.mxu1 %v5827_v16 }
 0xc11   :  { %5578 = vmatprep.subr.bf16.mxu1 %v5860_v48 }
 0xc14   :  { %5579 = vmatpush3.bf16.msra.mxu1 %v5828_v17 }
 0xc15   :  { %5580 = vmatprep.subr.bf16.mxu1 %v5860_v48  ;;  %v4543_v48 = vld [vmem:[%s7078_s12] ss:$0 sm:$0xff] }
 0xc18   :  { %5581 = vmatpush3.bf16.msra.mxu1 %v5829_v27 }
 0xcce   :  { %v4043_v29 = vpop.f32.mrb[68].mxu1 }
 0xccf   :  { %v4044_v30 = vadd.f32 %v4537_v28, %v4043_v29  ;;  %v5564_v31 = vpop.f32.mrb[69].mxu1 }
 0xcd0   :  { %v4046_v32 = vpop.f32.mrb[70].mxu1 }
 0xcd1   :  { %v4049_v33 = vmax.f32 %v4044_v30, 0.0  ;;  %v5565_v36 = vpop.f32.mrb[71].mxu1 }
 0xcd3   :  { %v4050_v37 = vpack.c.bf16 %v4049_v33, %v4049_v33 }
 0xcd5   :  { %5583 = vmatmul.mubr.bf16.vlgmr.msra.gmra.mrb[72].mxu1 %v4050_v37 }
 0xda8   :  { %v4156_v39 = vpop.f32.mrb[72].mxu1 }
 0xda9   :  { %v4157_v40 = vadd.f32 %v4543_v48, %v4156_v39  ;;  %v5584_v42 = vpop.f32.mrb[73].mxu1 }
 0xdaa   :  { %v4159_v43 = vpop.f32.mrb[74].mxu1 }
 0xdab   :  { %v5585_v44 = vpop.f32.mrb[75].mxu1  ;;  %4163 = vst.msk [vmem:[#allocation2] sm:$0x3] %vm4162_vm6, %v4157_v40 }
 0xdac   :  { %5847 = shalt.err (!%p5844_p4)
}
 0xdad   :  { %s5848_s12 = scalar_lea.hbm %s7079_s13, 32 }
 0xdae   :  { %p5849_p5 = scmp.ne.s32.totalorder %s7079_s13, %s5848_s12  ;;  %p5852_p6 = scmp.lt.u32.totalorder %s5848_s12, %s7079_s13 }
 0xdb0   :  { %p5854_p7 = pnand %p5852_p6, %p5849_p5 }
 0xdb2   :  { %5857 = shalt.err (!%p5854_p7)
}
 0xdb3   :  { %4173 = dma.vmem_to_hbm [thread:$0]  %s4171_s7, 32, %s7079_s13, [#allocation3]  }
 0xdb4   :  { %5858 = dma.done.wait [#allocation3], 32  }
 0xdb5   :  { %5859 = vsyncadd [#allocation3], 4294967264 }
 0xdb6   :  { %4177 = vsyncpa [#allocation3], 1 }

</bundles_post_ra>
